<compile_context>
chip_gen: v5e
topology: v5e:2x2
jax: 0.10.0
libtpu: 0.0.40
codegen_flags: <defaults>
</compile_context>

<pallas_src>
import functools

import jax
import jax.numpy as jnp
import numpy as np
from jax.experimental import pallas as pl
from jax.experimental.pallas import tpu as pltpu

BN_EPS = 1e-5


# ----------------------------- layout helpers (host side) ----------------------------- #

def _blk(h):
    """Per-batch padded block height: >= h + 2 (one zero row above the data, the rest
    below) and a multiple of 8 so sublane rotates stay tile-aligned."""
    return ((h + 2 + 7) // 8) * 8


def _pool_row_mats(n, h):
    """(2, R_out, R_in) row selectors for the two H taps of a stride-2 H max-pool."""
    ho = h // 2
    hb_in, hb_out = _blk(h), _blk(ho)
    s = np.zeros((2, n * hb_out, n * hb_in), np.float32)
    for b in range(n):
        for j in range(ho):
            ro = b * hb_out + 1 + j
            ri = b * hb_in + 1 + 2 * j
            s[0, ro, ri] = 1.0
            s[1, ro, ri + 1] = 1.0
    return s


def _pool_col_mats(w, c):
    """(2, w*c, (w//2)*c) lane selectors for the two W taps of a stride-2 W max-pool."""
    wo = w // 2
    m = np.zeros((2, w * c, wo * c), np.float32)
    for ww in range(wo):
        for cc in range(c):
            m[0, (2 * ww) * c + cc, ww * c + cc] = 1.0
            m[1, (2 * ww + 1) * c + cc, ww * c + cc] = 1.0
    return m


def _conv_last_row_sel(n, h_in, kh):
    """(kh, n, R_in) per-H-tap row selectors for the final valid conv (H_out == 1)."""
    hb = _blk(h_in)
    s = np.zeros((kh, n, n * hb), np.float32)
    for b in range(n):
        for di in range(kh):
            s[di, b, b * hb + 1 + di] = 1.0
    return s


def _row_shift_mats(n, h):
    """(3, R, R) row-shift matrices (fallback path only, if pltpu.roll cannot lower)."""
    hb = _blk(h)
    r = n * hb
    s = np.zeros((3, r, r), np.float32)
    for b in range(n):
        for hh in range(h):
            row = b * hb + 1 + hh
            for di in range(3):
                s[di, row, row + di - 1] = 1.0
    return s


def _chan_group_mats(w, c):
    """Fallback BN grouping: G sums the W replicas of each channel, GT broadcasts back."""
    g = np.zeros((w * c, c), np.float32)
    for ww in range(w):
        for cc in range(c):
            g[ww * c + cc, cc] = 1.0
    return g, np.ascontiguousarray(g.T)


def _toeplitz_weights(w_hwio, w_in, w_out, pad):
    """(KH, w_in*Cin, w_out*Cout) block-Toeplitz weights, one per H tap (the W taps and
    the W zero-padding are folded into the band structure)."""
    w = np.asarray(w_hwio, np.float32)
    kh, kw = w.shape[0], w.shape[1]
    mats = []
    for di in range(kh):
        t = np.zeros((w_in * w.shape[2], w_out * w.shape[3]), np.float32)
        for j in range(kw):
            eye = np.eye(w_in, w_out, k=pad - j, dtype=np.float32)
            t += np.kron(eye, w[di, j])
        mats.append(t)
    return np.stack(mats)


# ----------------------------- roll-direction probe ----------------------------------- #

@functools.lru_cache(maxsize=None)
def _roll_matches_jnp():
    """True iff pltpu.roll(x, s, axis=0) follows jnp.roll convention on this backend.
    The Toeplitz tap order is flipped host-side when the convention differs."""
    def probe(x_ref, o_ref):
        o_ref[...] = pltpu.roll(x_ref[...], 1, axis=0)

    x = jax.lax.broadcasted_iota(jnp.float32, (8, 128), 0)
    vmem = pl.BlockSpec(memory_space=pltpu.MemorySpace.VMEM)
    out = pl.pallas_call(
        probe,
        out_shape=jax.ShapeDtypeStruct((8, 128), jnp.float32),
        in_specs=[vmem],
        out_specs=vmem,
    )(x)
    return bool(np.asarray(out)[0, 0] > 3.5)   # jnp.roll convention -> row 0 sees row 7


# ----------------------------- fused kernel factory ------------------------------------ #

def _make_kernel(cfg, use_roll):
    f32, bf16 = jnp.float32, jnp.bfloat16
    hs, hbs = cfg["hs"], cfg["hbs"]
    w4, c4 = cfg["w4"], cfg["c4"]
    bn_count = cfg["bn_count"]

    def mm(a, b):
        # bf16 MXU operands, f32 accumulation.  Skip casts on operands already bf16.
        if a.dtype != bf16:
            a = a.astype(bf16)
        if b.dtype != bf16:
            b = b.astype(bf16)
        return jnp.dot(a, b, preferred_element_type=f32)

    def row_mask(rows, hb, h):
        # 1.0 on data rows, 0.0 on per-batch zero-padding rows (built from iota, no DMA).
        r = jax.lax.broadcasted_iota(jnp.int32, (rows, 1), 0) % hb
        return ((r >= 1) & (r <= h)).astype(f32)

    def conv3(a, t_ref, s_ref, hb, h):
        rows = a.shape[0]
        if use_roll:
            up = pltpu.roll(a, 1, axis=0)            # row r sees a[r-1] (jnp convention)
            dn = pltpu.roll(a, rows - 1, axis=0)     # row r sees a[r+1]
            pre = mm(up, t_ref[0]) + mm(a, t_ref[1]) + mm(dn, t_ref[2])
        else:
            ab = a.astype(bf16)
            pre = (mm(mm(s_ref[0], ab), t_ref[0])
                   + mm(mm(s_ref[1], ab), t_ref[1])
                   + mm(mm(s_ref[2], ab), t_ref[2]))
        return pre, row_mask(rows, hb, h)

    def conv_bias_relu(a, t_ref, s_ref, hb, h, brow):
        pre, m = conv3(a, t_ref, s_ref, hb, h)
        return jnp.maximum(pre + brow, 0.0) * m      # mask re-zeros padding rows exactly

    def pool_rows(a, pr_ref):
        ab = a.astype(bf16)
        return jnp.maximum(mm(pr_ref[0], ab), mm(pr_ref[1], ab))

    def pool_cols(a, pc_ref):
        ab = a.astype(bf16)
        return jnp.maximum(mm(ab, pc_ref[0]), mm(ab, pc_ref[1]))

    def group_bcast(v, gm_ref, gt_ref):
        # Lanes are (W, C) with C minor.  Summing all W cyclic lane shifts by multiples
        # of C leaves, in EVERY lane, the per-channel total (rotation direction is
        # irrelevant): per-channel reduce + broadcast-back without touching the MXU.
        if use_roll:
            out = v
            for k in range(1, w4):
                out = out + pltpu.roll(v, k * c4, axis=1)
            return out
        s = jnp.dot(v, gm_ref[...], preferred_element_type=f32)
        return jnp.dot(s, gt_ref[...], preferred_element_type=f32)

    def bn_relu(pre, m, gamma_wc, beta_wc, gm_ref, gt_ref):
        # Train-mode BatchNorm, centered two-pass statistics, all in f32.
        acc = pre * m                                   # exact zeros on padding rows
        mean = group_bcast(jnp.sum(acc, axis=0, keepdims=True), gm_ref, gt_ref) / bn_count
        d = (acc - mean) * m
        var = group_bcast(jnp.sum(d * d, axis=0, keepdims=True), gm_ref, gt_ref) / bn_count
        scale = gamma_wc * jax.lax.rsqrt(var + BN_EPS)
        shift = beta_wc - mean * scale
        return jnp.maximum(acc * scale + shift, 0.0) * m

    def kernel(*refs):
        (x_ref, t1, t2, t3, t4, t5, t6, t7, bias_ref, b6_ref, bn_ref,
         p1r, p2r, p3r, p4r, p1c, p2c, sel7) = refs[:18]
        if use_roll:
            s1 = s2 = s3 = s4 = gm = gt = None
        else:
            s1, s2, s3, s4, gm, gt = refs[18:24]
        o_ref = refs[-1]

        h1, h2, h3, h4, _ = hs
        hb1, hb2, hb3, hb4, _ = hbs

        a = x_ref[...]                                                    # (R1, W1*Cin)
        a = conv_bias_relu(a, t1, s1, hb1, h1, bias_ref[0:1, :])          # conv1 + ReLU
        a = pool_cols(pool_rows(a, p1r), p1c)                             # pool1 2x2
        a = conv_bias_relu(a, t2, s2, hb2, h2, bias_ref[1:2, :])          # conv2 + ReLU
        a = pool_cols(pool_rows(a, p2r), p2c)                             # pool2 2x2
        a = conv_bias_relu(a, t3, s3, hb3, h3, bias_ref[2:3, :])          # conv3 + ReLU
        a = conv_bias_relu(a, t4, s3, hb3, h3, bias_ref[3:4, :])          # conv4 + ReLU
        a = pool_rows(a, p3r)                                             # pool3 (2,1)
        pre, m = conv3(a, t5, s4, hb4, h4)                                # conv5 (no bias)
        a = bn_relu(pre, m, bn_ref[0:1, :], bn_ref[1:2, :], gm, gt)       # BN + ReLU
        pre, m = conv3(a, t6, s4, hb4, h4)                                # conv6 (no bias)
        a = bn_relu(pre, m, bn_ref[2:3, :], bn_ref[3:4, :], gm, gt)       # BN + ReLU
        a = pool_rows(a, p4r)                                             # pool4 (2,1)
        ab = a.astype(bf16)                                               # conv7 2x2 valid
        out = mm(mm(sel7[0], ab), t7[0]) + mm(mm(sel7[1], ab), t7[1])
        o_ref[...] = jnp.maximum(out + b6_ref[...], 0.0)

    return kernel


# ----------------------------- builder / forward wrapper ------------------------------- #

def build_vgg(params, input_shape):
    """Precompute all structural / weight operators once (host side) and return a jitted
    forward(x_nchw) closure.  Operator construction is fully hoisted out of the per-call
    path, so each call is just the layout transform + one pallas_call."""
    n, cin, h1, w1 = (int(d) for d in input_shape)
    c1 = int(params["w0"].shape[-1])
    c2 = int(params["w1"].shape[-1])
    c4 = int(params["w4"].shape[-1])
    c_last = int(params["w6"].shape[-1])

    h2, w2 = h1 // 2, w1 // 2          # after 2x2 pool
    h3, w3 = h2 // 2, w2 // 2          # after 2x2 pool
    h4, w4 = h3 // 2, w3               # after (2,1) pool
    h5, w5 = h4 // 2, w4               # after (2,1) pool
    w_out = w5 - 1                     # final 2x2 valid conv
    hb1, hb2, hb3, hb4, hb5 = (_blk(h) for h in (h1, h2, h3, h4, h5))

    cfg = dict(hs=(h1, h2, h3, h4, h5), hbs=(hb1, hb2, hb3, hb4, hb5),
               w4=w4, c4=c4, bn_count=float(n * h4 * w4))

    f32, bf16 = jnp.float32, jnp.bfloat16

    def _assemble(use_roll, flip_taps):
        def orient(t):
            # Pair tap di with the right rolled copy given the probed roll convention.
            return t[::-1] if (use_roll and flip_taps) else t

        def b16(a):
            return jnp.asarray(np.ascontiguousarray(a), bf16)

        t_ops = [
            b16(orient(_toeplitz_weights(params["w0"], w1, w1, 1))),
            b16(orient(_toeplitz_weights(params["w1"], w2, w2, 1))),
            b16(orient(_toeplitz_weights(params["w2"], w3, w3, 1))),
            b16(orient(_toeplitz_weights(params["w3"], w3, w3, 1))),
            b16(orient(_toeplitz_weights(params["w4"], w4, w4, 1))),
            b16(orient(_toeplitz_weights(params["w5"], w4, w4, 1))),
            b16(_toeplitz_weights(params["w6"], w5, w_out, 0)),   # taps chosen via sel7
        ]
        bias_slab = jnp.asarray(np.stack([
            np.tile(np.asarray(params["b0"], np.float32), w1),
            np.tile(np.asarray(params["b1"], np.float32), w2),
            np.tile(np.asarray(params["b2"], np.float32), w3),
            np.tile(np.asarray(params["b3"], np.float32), w3),
        ]), f32)
        b6_row = jnp.asarray(
            np.tile(np.asarray(params["b6"], np.float32), w_out)[None, :], f32)
        bn_slab = jnp.asarray(np.stack([
            np.tile(np.asarray(params["g4"], np.float32), w4),
            np.tile(np.asarray(params["be4"], np.float32), w4),
            np.tile(np.asarray(params["g5"], np.float32), w4),
            np.tile(np.asarray(params["be5"], np.float32), w4),
        ]), f32)
        pools = [b16(_pool_row_mats(n, h1)), b16(_pool_row_mats(n, h2)),
                 b16(_pool_row_mats(n, h3)), b16(_pool_row_mats(n, h4)),
                 b16(_pool_col_mats(w1, c1)), b16(_pool_col_mats(w2, c2))]
        sel7 = b16(_conv_last_row_sel(n, h5, 2))
        ops = tuple(t_ops + [bias_slab, b6_row, bn_slab] + pools + [sel7])
        if not use_roll:
            gm, gt = _chan_group_mats(w4, c4)
            ops = ops + (b16(_row_shift_mats(n, h1)), b16(_row_shift_mats(n, h2)),
                         b16(_row_shift_mats(n, h3)), b16(_row_shift_mats(n, h4)),
                         jnp.asarray(gm, f32), jnp.asarray(gt, f32))
        return ops

    vmem = pl.BlockSpec(memory_space=pltpu.MemorySpace.VMEM)
    out_struct = jax.ShapeDtypeStruct((n, w_out * c_last), f32)

    def make_forward(ops, use_roll):
        kernel = _make_kernel(cfg, use_roll)
        n_in = 1 + len(ops)

        @jax.jit
        def fwd(x_nchw, *op_arrays):
            # NCHW -> padded-row 2-D layout: rows = (batch, padded H), lanes = (W, C).
            x = jnp.transpose(x_nchw, (0, 2, 3, 1)).astype(f32).reshape(n, h1, w1 * cin)
            x = jnp.pad(x, ((0, 0), (1, hb1 - h1 - 1), (0, 0))).reshape(n * hb1, w1 * cin)
            out2d = pl.pallas_call(
                kernel,
                out_shape=out_struct,
                in_specs=[vmem] * n_in,
                out_specs=vmem,
                compiler_params=pltpu.CompilerParams(
                    vmem_limit_bytes=32 * 1024 * 1024),
            )(x, *op_arrays)
            # (N, W_out*C) -> NCHW (N, C, 1, W_out).
            return out2d.reshape(n, 1, w_out, c_last).transpose(0, 3, 1, 2)

        return lambda x_nchw: fwd(x_nchw, *ops)

    # Preferred path: MXU-free row shifts (pltpu.roll) + non-MXU BN grouping.
    try:
        flip = not _roll_matches_jnp()
        ops = _assemble(True, flip)
        forward = make_forward(ops, True)
        jax.block_until_ready(forward(jnp.zeros(input_shape, f32)))   # compile + validate
        return forward
    except Exception:
        # TODO(synk): fallback only triggers if pltpu.roll fails to lower on this backend;
        # it reverts the row shifts / BN grouping to the previously validated 0/1 matmuls.
        ops = _assemble(False, False)
        forward = make_forward(ops, False)
        jax.block_until_ready(forward(jnp.zeros(input_shape, f32)))
        return forward


# ----------------------------------- parameters ---------------------------------------- #

def init_params(key, input_channel, output_channel=32):
    oc = [output_channel // 8, output_channel // 4, output_channel // 2, output_channel]
    ks = iter(jax.random.split(key, 32))

    def w(cin, cout, k):
        return 0.1 * jax.random.normal(next(ks), (k, k, cin, cout), jnp.float32)

    def b(cout):
        return 0.05 * jax.random.normal(next(ks), (cout,), jnp.float32)

    return {
        "w0": w(input_channel, oc[0], 3), "b0": b(oc[0]),
        "w1": w(oc[0], oc[1], 3),         "b1": b(oc[1]),
        "w2": w(oc[1], oc[2], 3),         "b2": b(oc[2]),
        "w3": w(oc[2], oc[2], 3),         "b3": b(oc[2]),
        "w4": w(oc[2], oc[3], 3),
        "g4": 1.0 + 0.1 * jax.random.normal(next(ks), (oc[3],), jnp.float32),
        "be4": 0.1 * jax.random.normal(next(ks), (oc[3],), jnp.float32),
        "w5": w(oc[3], oc[3], 3),
        "g5": 1.0 + 0.1 * jax.random.normal(next(ks), (oc[3],), jnp.float32),
        "be5": 0.1 * jax.random.normal(next(ks), (oc[3],), jnp.float32),
        "w6": w(oc[3], oc[3], 2),         "b6": b(oc[3]),
    }


# ------------------------------- pure-JAX reference ------------------------------------ #

def _ref_forward(x_nchw, params):
    def conv(x, w, b=None, pad=1):
        y = jax.lax.conv_general_dilated(
            x, w, window_strides=(1, 1), padding=((pad, pad), (pad, pad)),
            dimension_numbers=("NHWC", "HWIO", "NHWC"))
        return y if b is None else y + b

    def bn(x, g, b):
        mean = jnp.mean(x, axis=(0, 1, 2), keepdims=True)
        var = jnp.mean((x - mean) ** 2, axis=(0, 1, 2), keepdims=True)
        return (x - mean) * jax.lax.rsqrt(var + BN_EPS) * g + b

    def pool(x, ph, pw):
        return jax.lax.reduce_window(x, -jnp.inf, jax.lax.max,
                                     (1, ph, pw, 1), (1, ph, pw, 1), "VALID")

    x = jnp.transpose(x_nchw, (0, 2, 3, 1)).astype(jnp.float32)
    x = pool(jax.nn.relu(conv(x, params["w0"], params["b0"])), 2, 2)
    x = pool(jax.nn.relu(conv(x, params["w1"], params["b1"])), 2, 2)
    x = jax.nn.relu(conv(x, params["w2"], params["b2"]))
    x = pool(jax.nn.relu(conv(x, params["w3"], params["b3"])), 2, 1)
    x = jax.nn.relu(bn(conv(x, params["w4"], None), params["g4"], params["be4"]))
    x = pool(jax.nn.relu(bn(conv(x, params["w5"], None), params["g5"], params["be5"])), 2, 1)
    x = jax.nn.relu(conv(x, params["w6"], params["b6"], pad=0))
    return jnp.transpose(x, (0, 3, 1, 2))


if __name__ == "__main__":
    key = jax.random.PRNGKey(0)
    # Small shapes consistent with CRNN: batch=2, C=3, H=32, W=16, output_channel=32.
    x = jax.random.normal(jax.random.fold_in(key, 0), (2, 3, 32, 16), jnp.float32)
    params = init_params(jax.random.fold_in(key, 1), input_channel=3, output_channel=32)

    forward = build_vgg(params, x.shape)
    y = jax.block_until_ready(forward(x))
    assert y.shape == (2, 32, 1, 3), y.shape

    y_ref = jax.block_until_ready(jax.jit(_ref_forward)(x, params))
    np.testing.assert_allclose(np.asarray(y), np.asarray(y_ref), rtol=5e-2, atol=5e-2)

    print("KERNEL_OK")
</pallas_src>

<mosaic_0001>
module attributes {stable_mosaic.version = 11 : i64} {
  func.func @probe(%arg0: memref<8x128xf32, #tpu.memory_space<vmem>>, %arg1: memref<8x128xf32, #tpu.memory_space<vmem>>) attributes {dimension_semantics = [], scalar_prefetch = 0 : i64, scratch_operands = 0 : i64, tpu.core_type = #tpu.core_type<tc>} {
    %c0 = arith.constant 0 : index
    %c0_0 = arith.constant 0 : index
    %0 = vector.load %arg0[%c0, %c0_0] : memref<8x128xf32, #tpu.memory_space<vmem>>, vector<8x128xf32>
    %c1_i32 = arith.constant 1 : i32
    %1 = tpu.dynamic_rotate %0 by %c1_i32 dim 0 : vector<8x128xf32>, i32 -> vector<8x128xf32>
    %c0_1 = arith.constant 0 : index
    %c0_2 = arith.constant 0 : index
    %2 = vector.load %arg1[%c0_1, %c0_2] : memref<8x128xf32, #tpu.memory_space<vmem>>, vector<8x128xf32>
    tpu.vector_store %arg1[%c0_1, %c0_2], %1 {strides = array<i32>} : memref<8x128xf32, #tpu.memory_space<vmem>>, vector<8x128xf32>,
    return
  }
}

module attributes {stable_mosaic.version = 11 : i64} {
  func.func @kernel(%arg0: memref<80x48xf32, #tpu.memory_space<vmem>>, %arg1: memref<3x48x64xbf16, #tpu.memory_space<vmem>>, %arg2: memref<3x32x64xbf16, #tpu.memory_space<vmem>>, %arg3: memref<3x32x64xbf16, #tpu.memory_space<vmem>>, %arg4: memref<3x64x64xbf16, #tpu.memory_space<vmem>>, %arg5: memref<3x64x128xbf16, #tpu.memory_space<vmem>>, %arg6: memref<3x128x128xbf16, #tpu.memory_space<vmem>>, %arg7: memref<2x128x96xbf16, #tpu.memory_space<vmem>>, %arg8: memref<4x64xf32, #tpu.memory_space<vmem>>, %arg9: memref<1x96xf32, #tpu.memory_space<vmem>>, %arg10: memref<4x128xf32, #tpu.memory_space<vmem>>, %arg11: memref<2x48x80xbf16, #tpu.memory_space<vmem>>, %arg12: memref<2x32x48xbf16, #tpu.memory_space<vmem>>, %arg13: memref<2x16x32xbf16, #tpu.memory_space<vmem>>, %arg14: memref<2x16x16xbf16, #tpu.memory_space<vmem>>, %arg15: memref<2x64x32xbf16, #tpu.memory_space<vmem>>, %arg16: memref<2x64x32xbf16, #tpu.memory_space<vmem>>, %arg17: memref<2x2x16xbf16, #tpu.memory_space<vmem>>, %arg18: memref<3x80x80xbf16, #tpu.memory_space<vmem>>, %arg19: memref<3x48x48xbf16, #tpu.memory_space<vmem>>, %arg20: memref<3x32x32xbf16, #tpu.memory_space<vmem>>, %arg21: memref<3x16x16xbf16, #tpu.memory_space<vmem>>, %arg22: memref<128x32xf32, #tpu.memory_space<vmem>>, %arg23: memref<32x128xf32, #tpu.memory_space<vmem>>, %arg24: memref<2x96xf32, #tpu.memory_space<vmem>>) attributes {dimension_semantics = [], scalar_prefetch = 0 : i64, scratch_operands = 0 : i64, tpu.core_type = #tpu.core_type<tc>} {
    %c0 = arith.constant 0 : index
    %c0_0 = arith.constant 0 : index
    %0 = vector.load %arg0[%c0, %c0_0] : memref<80x48xf32, #tpu.memory_space<vmem>>, vector<80x48xf32>
    %c0_1 = arith.constant 0 : index
    %c0_2 = arith.constant 0 : index
    %1 = vector.load %arg8[%c0_1, %c0_2] : memref<4x64xf32, #tpu.memory_space<vmem>>, vector<1x64xf32>
    %2 = arith.truncf %0 : vector<80x48xf32> to vector<80x48xbf16>
    %c0_3 = arith.constant 0 : index
    %c0_4 = arith.constant 0 : index
    %c0_5 = arith.constant 0 : index
    %3 = vector.load %arg18[%c0_3, %c0_4, %c0_5] : memref<3x80x80xbf16, #tpu.memory_space<vmem>>, vector<1x80x80xbf16>
    %4 = vector.shape_cast %3 : vector<1x80x80xbf16> to vector<80x80xbf16>
    %cst = arith.constant dense<0.000000e+00> : vector<80x48xf32>
    %5 = tpu.matmul %4, %2, %cst {dimension_numbers = #tpu.dot_dimension_numbers<[1], [0], [0], [1], [0, 0, 1, 1], [], []>} : vector<80x80xbf16>, vector<80x48xbf16>, vector<80x48xf32> -> vector<80x48xf32>
    %c0_6 = arith.constant 0 : index
    %c0_7 = arith.constant 0 : index
    %c0_8 = arith.constant 0 : index
    %6 = vector.load %arg1[%c0_6, %c0_7, %c0_8] : memref<3x48x64xbf16, #tpu.memory_space<vmem>>, vector<1x48x64xbf16>
    %7 = vector.shape_cast %6 : vector<1x48x64xbf16> to vector<48x64xbf16>
    %8 = arith.truncf %5 : vector<80x48xf32> to vector<80x48xbf16>
    %cst_9 = arith.constant dense<0.000000e+00> : vector<80x64xf32>
    %9 = tpu.matmul %8, %7, %cst_9 {dimension_numbers = #tpu.dot_dimension_numbers<[1], [0], [0], [1], [0, 0, 1, 1], [], []>} : vector<80x48xbf16>, vector<48x64xbf16>, vector<80x64xf32> -> vector<80x64xf32>
    %c1 = arith.constant 1 : index
    %c0_10 = arith.constant 0 : index
    %c0_11 = arith.constant 0 : index
    %10 = vector.load %arg18[%c1, %c0_10, %c0_11] : memref<3x80x80xbf16, #tpu.memory_space<vmem>>, vector<1x80x80xbf16>
    %11 = vector.shape_cast %10 : vector<1x80x80xbf16> to vector<80x80xbf16>
    %cst_12 = arith.constant dense<0.000000e+00> : vector<80x48xf32>
    %12 = tpu.matmul %11, %2, %cst_12 {dimension_numbers = #tpu.dot_dimension_numbers<[1], [0], [0], [1], [0, 0, 1, 1], [], []>} : vector<80x80xbf16>, vector<80x48xbf16>, vector<80x48xf32> -> vector<80x48xf32>
    %c1_13 = arith.constant 1 : index
    %c0_14 = arith.constant 0 : index
    %c0_15 = arith.constant 0 : index
    %13 = vector.load %arg1[%c1_13, %c0_14, %c0_15] : memref<3x48x64xbf16, #tpu.memory_space<vmem>>, vector<1x48x64xbf16>
    %14 = vector.shape_cast %13 : vector<1x48x64xbf16> to vector<48x64xbf16>
    %15 = arith.truncf %12 : vector<80x48xf32> to vector<80x48xbf16>
    %cst_16 = arith.constant dense<0.000000e+00> : vector<80x64xf32>
    %16 = tpu.matmul %15, %14, %cst_16 {dimension_numbers = #tpu.dot_dimension_numbers<[1], [0], [0], [1], [0, 0, 1, 1], [], []>} : vector<80x48xbf16>, vector<48x64xbf16>, vector<80x64xf32> -> vector<80x64xf32>
    %17 = arith.addf %9, %16 : vector<80x64xf32>
    %c2 = arith.constant 2 : index
    %c0_17 = arith.constant 0 : index
    %c0_18 = arith.constant 0 : index
    %18 = vector.load %arg18[%c2, %c0_17, %c0_18] : memref<3x80x80xbf16, #tpu.memory_space<vmem>>, vector<1x80x80xbf16>
    %19 = vector.shape_cast %18 : vector<1x80x80xbf16> to vector<80x80xbf16>
    %cst_19 = arith.constant dense<0.000000e+00> : vector<80x48xf32>
    %20 = tpu.matmul %19, %2, %cst_19 {dimension_numbers = #tpu.dot_dimension_numbers<[1], [0], [0], [1], [0, 0, 1, 1], [], []>} : vector<80x80xbf16>, vector<80x48xbf16>, vector<80x48xf32> -> vector<80x48xf32>
    %c2_20 = arith.constant 2 : index
    %c0_21 = arith.constant 0 : index
    %c0_22 = arith.constant 0 : index
    %21 = vector.load %arg1[%c2_20, %c0_21, %c0_22] : memref<3x48x64xbf16, #tpu.memory_space<vmem>>, vector<1x48x64xbf16>
    %22 = vector.shape_cast %21 : vector<1x48x64xbf16> to vector<48x64xbf16>
    %23 = arith.truncf %20 : vector<80x48xf32> to vector<80x48xbf16>
    %cst_23 = arith.constant dense<0.000000e+00> : vector<80x64xf32>
    %24 = tpu.matmul %23, %22, %cst_23 {dimension_numbers = #tpu.dot_dimension_numbers<[1], [0], [0], [1], [0, 0, 1, 1], [], []>} : vector<80x48xbf16>, vector<48x64xbf16>, vector<80x64xf32> -> vector<80x64xf32>
    %25 = arith.addf %17, %24 : vector<80x64xf32>
    %26 = tpu.iota {dimensions = array<i32: 0>} : vector<80x1xi32>
    %c40_i32 = arith.constant 40 : i32
    %c0_i32 = arith.constant 0 : i32
    %27 = arith.cmpi eq, %c40_i32, %c0_i32 : i32
    %c1_i32 = arith.constant 1 : i32
    %28 = arith.select %27, %c1_i32, %c40_i32 : i32
    %29 = vector.broadcast %28 : i32 to vector<80x1xi32>
    %30 = arith.remsi %26, %29 : vector<80x1xi32>
    %c0_i32_24 = arith.constant 0 : i32
    %31 = vector.broadcast %c0_i32_24 : i32 to vector<80x1xi32>
    %32 = arith.cmpi ne, %30, %31 : vector<80x1xi32>
    %c0_i32_25 = arith.constant 0 : i32
    %33 = vector.broadcast %c0_i32_25 : i32 to vector<80x1xi32>
    %34 = arith.cmpi slt, %30, %33 : vector<80x1xi32>
    %c0_i32_26 = arith.constant 0 : i32
    %35 = arith.cmpi slt, %28, %c0_i32_26 : i32
    %36 = vector.broadcast %35 : i1 to vector<80x1xi1>
    %37 = vector.broadcast %36 : vector<80x1xi1> to vector<80x1xi1>
    %38 = arith.xori %34, %37 : vector<80x1xi1>
    %39 = arith.andi %38, %32 : vector<80x1xi1>
    %40 = vector.broadcast %28 : i32 to vector<80x1xi32>
    %41 = arith.addi %30, %40 : vector<80x1xi32>
    %42 = arith.select %39, %41, %30 : vector<80x1xi1>, vector<80x1xi32>
    %c1_i32_27 = arith.constant 1 : i32
    %43 = vector.broadcast %c1_i32_27 : i32 to vector<80x1xi32>
    %44 = arith.cmpi sge, %42, %43 : vector<80x1xi32>
    %c32_i32 = arith.constant 32 : i32
    %45 = vector.broadcast %c32_i32 : i32 to vector<80x1xi32>
    %46 = arith.cmpi sle, %42, %45 : vector<80x1xi32>
    %47 = arith.andi %44, %46 : vector<80x1xi1>
    %48 = arith.extui %47 : vector<80x1xi1> to vector<80x1xi32>
    %49 = arith.sitofp %48 : vector<80x1xi32> to vector<80x1xf32>
    %50 = vector.broadcast %1 : vector<1x64xf32> to vector<80x64xf32>
    %51 = arith.addf %25, %50 : vector<80x64xf32>
    %cst_28 = arith.constant 0.000000e+00 : f32
    %52 = vector.broadcast %cst_28 : f32 to vector<80x64xf32>
    %53 = arith.maximumf %51, %52 : vector<80x64xf32>
    %54 = vector.broadcast %49 : vector<80x1xf32> to vector<80x64xf32>
    %55 = arith.mulf %53, %54 : vector<80x64xf32>
    %56 = arith.truncf %55 : vector<80x64xf32> to vector<80x64xbf16>
    %c0_29 = arith.constant 0 : index
    %c0_30 = arith.constant 0 : index
    %c0_31 = arith.constant 0 : index
    %57 = vector.load %arg11[%c0_29, %c0_30, %c0_31] : memref<2x48x80xbf16, #tpu.memory_space<vmem>>, vector<1x48x80xbf16>
    %58 = vector.shape_cast %57 : vector<1x48x80xbf16> to vector<48x80xbf16>
    %cst_32 = arith.constant dense<0.000000e+00> : vector<48x64xf32>
    %59 = tpu.matmul %58, %56, %cst_32 {dimension_numbers = #tpu.dot_dimension_numbers<[1], [0], [0], [1], [0, 0, 1, 1], [], []>} : vector<48x80xbf16>, vector<80x64xbf16>, vector<48x64xf32> -> vector<48x64xf32>
    %c1_33 = arith.constant 1 : index
    %c0_34 = arith.constant 0 : index
    %c0_35 = arith.constant 0 : index
    %60 = vector.load %arg11[%c1_33, %c0_34, %c0_35] : memref<2x48x80xbf16, #tpu.memory_space<vmem>>, vector<1x48x80xbf16>
    %61 = vector.shape_cast %60 : vector<1x48x80xbf16> to vector<48x80xbf16>
    %cst_36 = arith.constant dense<0.000000e+00> : vector<48x64xf32>
    %62 = tpu.matmul %61, %56, %cst_36 {dimension_numbers = #tpu.dot_dimension_numbers<[1], [0], [0], [1], [0, 0, 1, 1], [], []>} : vector<48x80xbf16>, vector<80x64xbf16>, vector<48x64xf32> -> vector<48x64xf32>
    %63 = arith.maximumf %59, %62 : vector<48x64xf32>
    %64 = arith.truncf %63 : vector<48x64xf32> to vector<48x64xbf16>
    %c0_37 = arith.constant 0 : index
    %c0_38 = arith.constant 0 : index
    %c0_39 = arith.constant 0 : index
    %65 = vector.load %arg15[%c0_37, %c0_38, %c0_39] : memref<2x64x32xbf16, #tpu.memory_space<vmem>>, vector<1x64x32xbf16>
    %66 = vector.shape_cast %65 : vector<1x64x32xbf16> to vector<64x32xbf16>
    %cst_40 = arith.constant dense<0.000000e+00> : vector<48x32xf32>
    %67 = tpu.matmul %64, %66, %cst_40 {dimension_numbers = #tpu.dot_dimension_numbers<[1], [0], [0], [1], [0, 0, 1, 1], [], []>} : vector<48x64xbf16>, vector<64x32xbf16>, vector<48x32xf32> -> vector<48x32xf32>
    %c1_41 = arith.constant 1 : index
    %c0_42 = arith.constant 0 : index
    %c0_43 = arith.constant 0 : index
    %68 = vector.load %arg15[%c1_41, %c0_42, %c0_43] : memref<2x64x32xbf16, #tpu.memory_space<vmem>>, vector<1x64x32xbf16>
    %69 = vector.shape_cast %68 : vector<1x64x32xbf16> to vector<64x32xbf16>
    %cst_44 = arith.constant dense<0.000000e+00> : vector<48x32xf32>
    %70 = tpu.matmul %64, %69, %cst_44 {dimension_numbers = #tpu.dot_dimension_numbers<[1], [0], [0], [1], [0, 0, 1, 1], [], []>} : vector<48x64xbf16>, vector<64x32xbf16>, vector<48x32xf32> -> vector<48x32xf32>
    %71 = arith.maximumf %67, %70 : vector<48x32xf32>
    %c1_45 = arith.constant 1 : index
    %c0_46 = arith.constant 0 : index
    %72 = vector.load %arg8[%c1_45, %c0_46] : memref<4x64xf32, #tpu.memory_space<vmem>>, vector<1x64xf32>
    %73 = arith.truncf %71 : vector<48x32xf32> to vector<48x32xbf16>
    %c0_47 = arith.constant 0 : index
    %c0_48 = arith.constant 0 : index
    %c0_49 = arith.constant 0 : index
    %74 = vector.load %arg19[%c0_47, %c0_48, %c0_49] : memref<3x48x48xbf16, #tpu.memory_space<vmem>>, vector<1x48x48xbf16>
    %75 = vector.shape_cast %74 : vector<1x48x48xbf16> to vector<48x48xbf16>
    %cst_50 = arith.constant dense<0.000000e+00> : vector<48x32xf32>
    %76 = tpu.matmul %75, %73, %cst_50 {dimension_numbers = #tpu.dot_dimension_numbers<[1], [0], [0], [1], [0, 0, 1, 1], [], []>} : vector<48x48xbf16>, vector<48x32xbf16>, vector<48x32xf32> -> vector<48x32xf32>
    %c0_51 = arith.constant 0 : index
    %c0_52 = arith.constant 0 : index
    %c0_53 = arith.constant 0 : index
    %77 = vector.load %arg2[%c0_51, %c0_52, %c0_53] : memref<3x32x64xbf16, #tpu.memory_space<vmem>>, vector<1x32x64xbf16>
    %78 = vector.shape_cast %77 : vector<1x32x64xbf16> to vector<32x64xbf16>
    %79 = arith.truncf %76 : vector<48x32xf32> to vector<48x32xbf16>
    %cst_54 = arith.constant dense<0.000000e+00> : vector<48x64xf32>
    %80 = tpu.matmul %79, %78, %cst_54 {dimension_numbers = #tpu.dot_dimension_numbers<[1], [0], [0], [1], [0, 0, 1, 1], [], []>} : vector<48x32xbf16>, vector<32x64xbf16>, vector<48x64xf32> -> vector<48x64xf32>
    %c1_55 = arith.constant 1 : index
    %c0_56 = arith.constant 0 : index
    %c0_57 = arith.constant 0 : index
    %81 = vector.load %arg19[%c1_55, %c0_56, %c0_57] : memref<3x48x48xbf16, #tpu.memory_space<vmem>>, vector<1x48x48xbf16>
    %82 = vector.shape_cast %81 : vector<1x48x48xbf16> to vector<48x48xbf16>
    %cst_58 = arith.constant dense<0.000000e+00> : vector<48x32xf32>
    %83 = tpu.matmul %82, %73, %cst_58 {dimension_numbers = #tpu.dot_dimension_numbers<[1], [0], [0], [1], [0, 0, 1, 1], [], []>} : vector<48x48xbf16>, vector<48x32xbf16>, vector<48x32xf32> -> vector<48x32xf32>
    %c1_59 = arith.constant 1 : index
    %c0_60 = arith.constant 0 : index
    %c0_61 = arith.constant 0 : index
    %84 = vector.load %arg2[%c1_59, %c0_60, %c0_61] : memref<3x32x64xbf16, #tpu.memory_space<vmem>>, vector<1x32x64xbf16>
    %85 = vector.shape_cast %84 : vector<1x32x64xbf16> to vector<32x64xbf16>
    %86 = arith.truncf %83 : vector<48x32xf32> to vector<48x32xbf16>
    %cst_62 = arith.constant dense<0.000000e+00> : vector<48x64xf32>
    %87 = tpu.matmul %86, %85, %cst_62 {dimension_numbers = #tpu.dot_dimension_numbers<[1], [0], [0], [1], [0, 0, 1, 1], [], []>} : vector<48x32xbf16>, vector<32x64xbf16>, vector<48x64xf32> -> vector<48x64xf32>
    %88 = arith.addf %80, %87 : vector<48x64xf32>
    %c2_63 = arith.constant 2 : index
    %c0_64 = arith.constant 0 : index
    %c0_65 = arith.constant 0 : index
    %89 = vector.load %arg19[%c2_63, %c0_64, %c0_65] : memref<3x48x48xbf16, #tpu.memory_space<vmem>>, vector<1x48x48xbf16>
    %90 = vector.shape_cast %89 : vector<1x48x48xbf16> to vector<48x48xbf16>
    %cst_66 = arith.constant dense<0.000000e+00> : vector<48x32xf32>
    %91 = tpu.matmul %90, %73, %cst_66 {dimension_numbers = #tpu.dot_dimension_numbers<[1], [0], [0], [1], [0, 0, 1, 1], [], []>} : vector<48x48xbf16>, vector<48x32xbf16>, vector<48x32xf32> -> vector<48x32xf32>
    %c2_67 = arith.constant 2 : index
    %c0_68 = arith.constant 0 : index
    %c0_69 = arith.constant 0 : index
    %92 = vector.load %arg2[%c2_67, %c0_68, %c0_69] : memref<3x32x64xbf16, #tpu.memory_space<vmem>>, vector<1x32x64xbf16>
    %93 = vector.shape_cast %92 : vector<1x32x64xbf16> to vector<32x64xbf16>
    %94 = arith.truncf %91 : vector<48x32xf32> to vector<48x32xbf16>
    %cst_70 = arith.constant dense<0.000000e+00> : vector<48x64xf32>
    %95 = tpu.matmul %94, %93, %cst_70 {dimension_numbers = #tpu.dot_dimension_numbers<[1], [0], [0], [1], [0, 0, 1, 1], [], []>} : vector<48x32xbf16>, vector<32x64xbf16>, vector<48x64xf32> -> vector<48x64xf32>
    %96 = arith.addf %88, %95 : vector<48x64xf32>
    %97 = tpu.iota {dimensions = array<i32: 0>} : vector<48x1xi32>
    %c24_i32 = arith.constant 24 : i32
    %c0_i32_71 = arith.constant 0 : i32
    %98 = arith.cmpi eq, %c24_i32, %c0_i32_71 : i32
    %c1_i32_72 = arith.constant 1 : i32
    %99 = arith.select %98, %c1_i32_72, %c24_i32 : i32
    %100 = vector.broadcast %99 : i32 to vector<48x1xi32>
    %101 = arith.remsi %97, %100 : vector<48x1xi32>
    %c0_i32_73 = arith.constant 0 : i32
    %102 = vector.broadcast %c0_i32_73 : i32 to vector<48x1xi32>
    %103 = arith.cmpi ne, %101, %102 : vector<48x1xi32>
    %c0_i32_74 = arith.constant 0 : i32
    %104 = vector.broadcast %c0_i32_74 : i32 to vector<48x1xi32>
    %105 = arith.cmpi slt, %101, %104 : vector<48x1xi32>
    %c0_i32_75 = arith.constant 0 : i32
    %106 = arith.cmpi slt, %99, %c0_i32_75 : i32
    %107 = vector.broadcast %106 : i1 to vector<48x1xi1>
    %108 = vector.broadcast %107 : vector<48x1xi1> to vector<48x1xi1>
    %109 = arith.xori %105, %108 : vector<48x1xi1>
    %110 = arith.andi %109, %103 : vector<48x1xi1>
    %111 = vector.broadcast %99 : i32 to vector<48x1xi32>
    %112 = arith.addi %101, %111 : vector<48x1xi32>
    %113 = arith.select %110, %112, %101 : vector<48x1xi1>, vector<48x1xi32>
    %c1_i32_76 = arith.constant 1 : i32
    %114 = vector.broadcast %c1_i32_76 : i32 to vector<48x1xi32>
    %115 = arith.cmpi sge, %113, %114 : vector<48x1xi32>
    %c16_i32 = arith.constant 16 : i32
    %116 = vector.broadcast %c16_i32 : i32 to vector<48x1xi32>
    %117 = arith.cmpi sle, %113, %116 : vector<48x1xi32>
    %118 = arith.andi %115, %117 : vector<48x1xi1>
    %119 = arith.extui %118 : vector<48x1xi1> to vector<48x1xi32>
    %120 = arith.sitofp %119 : vector<48x1xi32> to vector<48x1xf32>
    %121 = vector.broadcast %72 : vector<1x64xf32> to vector<48x64xf32>
    %122 = arith.addf %96, %121 : vector<48x64xf32>
    %cst_77 = arith.constant 0.000000e+00 : f32
    %123 = vector.broadcast %cst_77 : f32 to vector<48x64xf32>
    %124 = arith.maximumf %122, %123 : vector<48x64xf32>
    %125 = vector.broadcast %120 : vector<48x1xf32> to vector<48x64xf32>
    %126 = arith.mulf %124, %125 : vector<48x64xf32>
    %127 = arith.truncf %126 : vector<48x64xf32> to vector<48x64xbf16>
    %c0_78 = arith.constant 0 : index
    %c0_79 = arith.constant 0 : index
    %c0_80 = arith.constant 0 : index
    %128 = vector.load %arg12[%c0_78, %c0_79, %c0_80] : memref<2x32x48xbf16, #tpu.memory_space<vmem>>, vector<1x32x48xbf16>
    %129 = vector.shape_cast %128 : vector<1x32x48xbf16> to vector<32x48xbf16>
    %cst_81 = arith.constant dense<0.000000e+00> : vector<32x64xf32>
    %130 = tpu.matmul %129, %127, %cst_81 {dimension_numbers = #tpu.dot_dimension_numbers<[1], [0], [0], [1], [0, 0, 1, 1], [], []>} : vector<32x48xbf16>, vector<48x64xbf16>, vector<32x64xf32> -> vector<32x64xf32>
    %c1_82 = arith.constant 1 : index
    %c0_83 = arith.constant 0 : index
    %c0_84 = arith.constant 0 : index
    %131 = vector.load %arg12[%c1_82, %c0_83, %c0_84] : memref<2x32x48xbf16, #tpu.memory_space<vmem>>, vector<1x32x48xbf16>
    %132 = vector.shape_cast %131 : vector<1x32x48xbf16> to vector<32x48xbf16>
    %cst_85 = arith.constant dense<0.000000e+00> : vector<32x64xf32>
    %133 = tpu.matmul %132, %127, %cst_85 {dimension_numbers = #tpu.dot_dimension_numbers<[1], [0], [0], [1], [0, 0, 1, 1], [], []>} : vector<32x48xbf16>, vector<48x64xbf16>, vector<32x64xf32> -> vector<32x64xf32>
    %134 = arith.maximumf %130, %133 : vector<32x64xf32>
    %135 = arith.truncf %134 : vector<32x64xf32> to vector<32x64xbf16>
    %c0_86 = arith.constant 0 : index
    %c0_87 = arith.constant 0 : index
    %c0_88 = arith.constant 0 : index
    %136 = vector.load %arg16[%c0_86, %c0_87, %c0_88] : memref<2x64x32xbf16, #tpu.memory_space<vmem>>, vector<1x64x32xbf16>
    %137 = vector.shape_cast %136 : vector<1x64x32xbf16> to vector<64x32xbf16>
    %cst_89 = arith.constant dense<0.000000e+00> : vector<32x32xf32>
    %138 = tpu.matmul %135, %137, %cst_89 {dimension_numbers = #tpu.dot_dimension_numbers<[1], [0], [0], [1], [0, 0, 1, 1], [], []>} : vector<32x64xbf16>, vector<64x32xbf16>, vector<32x32xf32> -> vector<32x32xf32>
    %c1_90 = arith.constant 1 : index
    %c0_91 = arith.constant 0 : index
    %c0_92 = arith.constant 0 : index
    %139 = vector.load %arg16[%c1_90, %c0_91, %c0_92] : memref<2x64x32xbf16, #tpu.memory_space<vmem>>, vector<1x64x32xbf16>
    %140 = vector.shape_cast %139 : vector<1x64x32xbf16> to vector<64x32xbf16>
    %cst_93 = arith.constant dense<0.000000e+00> : vector<32x32xf32>
    %141 = tpu.matmul %135, %140, %cst_93 {dimension_numbers = #tpu.dot_dimension_numbers<[1], [0], [0], [1], [0, 0, 1, 1], [], []>} : vector<32x64xbf16>, vector<64x32xbf16>, vector<32x32xf32> -> vector<32x32xf32>
    %142 = arith.maximumf %138, %141 : vector<32x32xf32>
    %c2_94 = arith.constant 2 : index
    %c0_95 = arith.constant 0 : index
    %143 = vector.load %arg8[%c2_94, %c0_95] : memref<4x64xf32, #tpu.memory_space<vmem>>, vector<1x64xf32>
    %144 = arith.truncf %142 : vector<32x32xf32> to vector<32x32xbf16>
    %c0_96 = arith.constant 0 : index
    %c0_97 = arith.constant 0 : index
    %c0_98 = arith.constant 0 : index
    %145 = vector.load %arg20[%c0_96, %c0_97, %c0_98] : memref<3x32x32xbf16, #tpu.memory_space<vmem>>, vector<1x32x32xbf16>
    %146 = vector.shape_cast %145 : vector<1x32x32xbf16> to vector<32x32xbf16>
    %cst_99 = arith.constant dense<0.000000e+00> : vector<32x32xf32>
    %147 = tpu.matmul %146, %144, %cst_99 {dimension_numbers = #tpu.dot_dimension_numbers<[1], [0], [0], [1], [0, 0, 1, 1], [], []>} : vector<32x32xbf16>, vector<32x32xbf16>, vector<32x32xf32> -> vector<32x32xf32>
    %c0_100 = arith.constant 0 : index
    %c0_101 = arith.constant 0 : index
    %c0_102 = arith.constant 0 : index
    %148 = vector.load %arg3[%c0_100, %c0_101, %c0_102] : memref<3x32x64xbf16, #tpu.memory_space<vmem>>, vector<1x32x64xbf16>
    %149 = vector.shape_cast %148 : vector<1x32x64xbf16> to vector<32x64xbf16>
    %150 = arith.truncf %147 : vector<32x32xf32> to vector<32x32xbf16>
    %cst_103 = arith.constant dense<0.000000e+00> : vector<32x64xf32>
    %151 = tpu.matmul %150, %149, %cst_103 {dimension_numbers = #tpu.dot_dimension_numbers<[1], [0], [0], [1], [0, 0, 1, 1], [], []>} : vector<32x32xbf16>, vector<32x64xbf16>, vector<32x64xf32> -> vector<32x64xf32>
    %c1_104 = arith.constant 1 : index
    %c0_105 = arith.constant 0 : index
    %c0_106 = arith.constant 0 : index
    %152 = vector.load %arg20[%c1_104, %c0_105, %c0_106] : memref<3x32x32xbf16, #tpu.memory_space<vmem>>, vector<1x32x32xbf16>
    %153 = vector.shape_cast %152 : vector<1x32x32xbf16> to vector<32x32xbf16>
    %cst_107 = arith.constant dense<0.000000e+00> : vector<32x32xf32>
    %154 = tpu.matmul %153, %144, %cst_107 {dimension_numbers = #tpu.dot_dimension_numbers<[1], [0], [0], [1], [0, 0, 1, 1], [], []>} : vector<32x32xbf16>, vector<32x32xbf16>, vector<32x32xf32> -> vector<32x32xf32>
    %c1_108 = arith.constant 1 : index
    %c0_109 = arith.constant 0 : index
    %c0_110 = arith.constant 0 : index
    %155 = vector.load %arg3[%c1_108, %c0_109, %c0_110] : memref<3x32x64xbf16, #tpu.memory_space<vmem>>, vector<1x32x64xbf16>
    %156 = vector.shape_cast %155 : vector<1x32x64xbf16> to vector<32x64xbf16>
    %157 = arith.truncf %154 : vector<32x32xf32> to vector<32x32xbf16>
    %cst_111 = arith.constant dense<0.000000e+00> : vector<32x64xf32>
    %158 = tpu.matmul %157, %156, %cst_111 {dimension_numbers = #tpu.dot_dimension_numbers<[1], [0], [0], [1], [0, 0, 1, 1], [], []>} : vector<32x32xbf16>, vector<32x64xbf16>, vector<32x64xf32> -> vector<32x64xf32>
    %159 = arith.addf %151, %158 : vector<32x64xf32>
    %c2_112 = arith.constant 2 : index
    %c0_113 = arith.constant 0 : index
    %c0_114 = arith.constant 0 : index
    %160 = vector.load %arg20[%c2_112, %c0_113, %c0_114] : memref<3x32x32xbf16, #tpu.memory_space<vmem>>, vector<1x32x32xbf16>
    %161 = vector.shape_cast %160 : vector<1x32x32xbf16> to vector<32x32xbf16>
    %cst_115 = arith.constant dense<0.000000e+00> : vector<32x32xf32>
    %162 = tpu.matmul %161, %144, %cst_115 {dimension_numbers = #tpu.dot_dimension_numbers<[1], [0], [0], [1], [0, 0, 1, 1], [], []>} : vector<32x32xbf16>, vector<32x32xbf16>, vector<32x32xf32> -> vector<32x32xf32>
    %c2_116 = arith.constant 2 : index
    %c0_117 = arith.constant 0 : index
    %c0_118 = arith.constant 0 : index
    %163 = vector.load %arg3[%c2_116, %c0_117, %c0_118] : memref<3x32x64xbf16, #tpu.memory_space<vmem>>, vector<1x32x64xbf16>
    %164 = vector.shape_cast %163 : vector<1x32x64xbf16> to vector<32x64xbf16>
    %165 = arith.truncf %162 : vector<32x32xf32> to vector<32x32xbf16>
    %cst_119 = arith.constant dense<0.000000e+00> : vector<32x64xf32>
    %166 = tpu.matmul %165, %164, %cst_119 {dimension_numbers = #tpu.dot_dimension_numbers<[1], [0], [0], [1], [0, 0, 1, 1], [], []>} : vector<32x32xbf16>, vector<32x64xbf16>, vector<32x64xf32> -> vector<32x64xf32>
    %167 = arith.addf %159, %166 : vector<32x64xf32>
    %168 = tpu.iota {dimensions = array<i32: 0>} : vector<32x1xi32>
    %c16_i32_120 = arith.constant 16 : i32
    %c0_i32_121 = arith.constant 0 : i32
    %169 = arith.cmpi eq, %c16_i32_120, %c0_i32_121 : i32
    %c1_i32_122 = arith.constant 1 : i32
    %170 = arith.select %169, %c1_i32_122, %c16_i32_120 : i32
    %171 = vector.broadcast %170 : i32 to vector<32x1xi32>
    %172 = arith.remsi %168, %171 : vector<32x1xi32>
    %c0_i32_123 = arith.constant 0 : i32
    %173 = vector.broadcast %c0_i32_123 : i32 to vector<32x1xi32>
    %174 = arith.cmpi ne, %172, %173 : vector<32x1xi32>
    %c0_i32_124 = arith.constant 0 : i32
    %175 = vector.broadcast %c0_i32_124 : i32 to vector<32x1xi32>
    %176 = arith.cmpi slt, %172, %175 : vector<32x1xi32>
    %c0_i32_125 = arith.constant 0 : i32
    %177 = arith.cmpi slt, %170, %c0_i32_125 : i32
    %178 = vector.broadcast %177 : i1 to vector<32x1xi1>
    %179 = vector.broadcast %178 : vector<32x1xi1> to vector<32x1xi1>
    %180 = arith.xori %176, %179 : vector<32x1xi1>
    %181 = arith.andi %180, %174 : vector<32x1xi1>
    %182 = vector.broadcast %170 : i32 to vector<32x1xi32>
    %183 = arith.addi %172, %182 : vector<32x1xi32>
    %184 = arith.select %181, %183, %172 : vector<32x1xi1>, vector<32x1xi32>
    %c1_i32_126 = arith.constant 1 : i32
    %185 = vector.broadcast %c1_i32_126 : i32 to vector<32x1xi32>
    %186 = arith.cmpi sge, %184, %185 : vector<32x1xi32>
    %c8_i32 = arith.constant 8 : i32
    %187 = vector.broadcast %c8_i32 : i32 to vector<32x1xi32>
    %188 = arith.cmpi sle, %184, %187 : vector<32x1xi32>
    %189 = arith.andi %186, %188 : vector<32x1xi1>
    %190 = arith.extui %189 : vector<32x1xi1> to vector<32x1xi32>
    %191 = arith.sitofp %190 : vector<32x1xi32> to vector<32x1xf32>
    %192 = vector.broadcast %143 : vector<1x64xf32> to vector<32x64xf32>
    %193 = arith.addf %167, %192 : vector<32x64xf32>
    %cst_127 = arith.constant 0.000000e+00 : f32
    %194 = vector.broadcast %cst_127 : f32 to vector<32x64xf32>
    %195 = arith.maximumf %193, %194 : vector<32x64xf32>
    %196 = vector.broadcast %191 : vector<32x1xf32> to vector<32x64xf32>
    %197 = arith.mulf %195, %196 : vector<32x64xf32>
    %c3 = arith.constant 3 : index
    %c0_128 = arith.constant 0 : index
    %198 = vector.load %arg8[%c3, %c0_128] : memref<4x64xf32, #tpu.memory_space<vmem>>, vector<1x64xf32>
    %199 = arith.truncf %197 : vector<32x64xf32> to vector<32x64xbf16>
    %c0_129 = arith.constant 0 : index
    %c0_130 = arith.constant 0 : index
    %c0_131 = arith.constant 0 : index
    %200 = vector.load %arg20[%c0_129, %c0_130, %c0_131] : memref<3x32x32xbf16, #tpu.memory_space<vmem>>, vector<1x32x32xbf16>
    %201 = vector.shape_cast %200 : vector<1x32x32xbf16> to vector<32x32xbf16>
    %cst_132 = arith.constant dense<0.000000e+00> : vector<32x64xf32>
    %202 = tpu.matmul %201, %199, %cst_132 {dimension_numbers = #tpu.dot_dimension_numbers<[1], [0], [0], [1], [0, 0, 1, 1], [], []>} : vector<32x32xbf16>, vector<32x64xbf16>, vector<32x64xf32> -> vector<32x64xf32>
    %c0_133 = arith.constant 0 : index
    %c0_134 = arith.constant 0 : index
    %c0_135 = arith.constant 0 : index
    %203 = vector.load %arg4[%c0_133, %c0_134, %c0_135] : memref<3x64x64xbf16, #tpu.memory_space<vmem>>, vector<1x64x64xbf16>
    %204 = vector.shape_cast %203 : vector<1x64x64xbf16> to vector<64x64xbf16>
    %205 = arith.truncf %202 : vector<32x64xf32> to vector<32x64xbf16>
    %cst_136 = arith.constant dense<0.000000e+00> : vector<32x64xf32>
    %206 = tpu.matmul %205, %204, %cst_136 {dimension_numbers = #tpu.dot_dimension_numbers<[1], [0], [0], [1], [0, 0, 1, 1], [], []>} : vector<32x64xbf16>, vector<64x64xbf16>, vector<32x64xf32> -> vector<32x64xf32>
    %c1_137 = arith.constant 1 : index
    %c0_138 = arith.constant 0 : index
    %c0_139 = arith.constant 0 : index
    %207 = vector.load %arg20[%c1_137, %c0_138, %c0_139] : memref<3x32x32xbf16, #tpu.memory_space<vmem>>, vector<1x32x32xbf16>
    %208 = vector.shape_cast %207 : vector<1x32x32xbf16> to vector<32x32xbf16>
    %cst_140 = arith.constant dense<0.000000e+00> : vector<32x64xf32>
    %209 = tpu.matmul %208, %199, %cst_140 {dimension_numbers = #tpu.dot_dimension_numbers<[1], [0], [0], [1], [0, 0, 1, 1], [], []>} : vector<32x32xbf16>, vector<32x64xbf16>, vector<32x64xf32> -> vector<32x64xf32>
    %c1_141 = arith.constant 1 : index
    %c0_142 = arith.constant 0 : index
    %c0_143 = arith.constant 0 : index
    %210 = vector.load %arg4[%c1_141, %c0_142, %c0_143] : memref<3x64x64xbf16, #tpu.memory_space<vmem>>, vector<1x64x64xbf16>
    %211 = vector.shape_cast %210 : vector<1x64x64xbf16> to vector<64x64xbf16>
    %212 = arith.truncf %209 : vector<32x64xf32> to vector<32x64xbf16>
    %cst_144 = arith.constant dense<0.000000e+00> : vector<32x64xf32>
    %213 = tpu.matmul %212, %211, %cst_144 {dimension_numbers = #tpu.dot_dimension_numbers<[1], [0], [0], [1], [0, 0, 1, 1], [], []>} : vector<32x64xbf16>, vector<64x64xbf16>, vector<32x64xf32> -> vector<32x64xf32>
    %214 = arith.addf %206, %213 : vector<32x64xf32>
    %c2_145 = arith.constant 2 : index
    %c0_146 = arith.constant 0 : index
    %c0_147 = arith.constant 0 : index
    %215 = vector.load %arg20[%c2_145, %c0_146, %c0_147] : memref<3x32x32xbf16, #tpu.memory_space<vmem>>, vector<1x32x32xbf16>
    %216 = vector.shape_cast %215 : vector<1x32x32xbf16> to vector<32x32xbf16>
    %cst_148 = arith.constant dense<0.000000e+00> : vector<32x64xf32>
    %217 = tpu.matmul %216, %199, %cst_148 {dimension_numbers = #tpu.dot_dimension_numbers<[1], [0], [0], [1], [0, 0, 1, 1], [], []>} : vector<32x32xbf16>, vector<32x64xbf16>, vector<32x64xf32> -> vector<32x64xf32>
    %c2_149 = arith.constant 2 : index
    %c0_150 = arith.constant 0 : index
    %c0_151 = arith.constant 0 : index
    %218 = vector.load %arg4[%c2_149, %c0_150, %c0_151] : memref<3x64x64xbf16, #tpu.memory_space<vmem>>, vector<1x64x64xbf16>
    %219 = vector.shape_cast %218 : vector<1x64x64xbf16> to vector<64x64xbf16>
    %220 = arith.truncf %217 : vector<32x64xf32> to vector<32x64xbf16>
    %cst_152 = arith.constant dense<0.000000e+00> : vector<32x64xf32>
    %221 = tpu.matmul %220, %219, %cst_152 {dimension_numbers = #tpu.dot_dimension_numbers<[1], [0], [0], [1], [0, 0, 1, 1], [], []>} : vector<32x64xbf16>, vector<64x64xbf16>, vector<32x64xf32> -> vector<32x64xf32>
    %222 = arith.addf %214, %221 : vector<32x64xf32>
    %223 = tpu.iota {dimensions = array<i32: 0>} : vector<32x1xi32>
    %c16_i32_153 = arith.constant 16 : i32
    %c0_i32_154 = arith.constant 0 : i32
    %224 = arith.cmpi eq, %c16_i32_153, %c0_i32_154 : i32
    %c1_i32_155 = arith.constant 1 : i32
    %225 = arith.select %224, %c1_i32_155, %c16_i32_153 : i32
    %226 = vector.broadcast %225 : i32 to vector<32x1xi32>
    %227 = arith.remsi %223, %226 : vector<32x1xi32>
    %c0_i32_156 = arith.constant 0 : i32
    %228 = vector.broadcast %c0_i32_156 : i32 to vector<32x1xi32>
    %229 = arith.cmpi ne, %227, %228 : vector<32x1xi32>
    %c0_i32_157 = arith.constant 0 : i32
    %230 = vector.broadcast %c0_i32_157 : i32 to vector<32x1xi32>
    %231 = arith.cmpi slt, %227, %230 : vector<32x1xi32>
    %c0_i32_158 = arith.constant 0 : i32
    %232 = arith.cmpi slt, %225, %c0_i32_158 : i32
    %233 = vector.broadcast %232 : i1 to vector<32x1xi1>
    %234 = vector.broadcast %233 : vector<32x1xi1> to vector<32x1xi1>
    %235 = arith.xori %231, %234 : vector<32x1xi1>
    %236 = arith.andi %235, %229 : vector<32x1xi1>
    %237 = vector.broadcast %225 : i32 to vector<32x1xi32>
    %238 = arith.addi %227, %237 : vector<32x1xi32>
    %239 = arith.select %236, %238, %227 : vector<32x1xi1>, vector<32x1xi32>
    %c1_i32_159 = arith.constant 1 : i32
    %240 = vector.broadcast %c1_i32_159 : i32 to vector<32x1xi32>
    %241 = arith.cmpi sge, %239, %240 : vector<32x1xi32>
    %c8_i32_160 = arith.constant 8 : i32
    %242 = vector.broadcast %c8_i32_160 : i32 to vector<32x1xi32>
    %243 = arith.cmpi sle, %239, %242 : vector<32x1xi32>
    %244 = arith.andi %241, %243 : vector<32x1xi1>
    %245 = arith.extui %244 : vector<32x1xi1> to vector<32x1xi32>
    %246 = arith.sitofp %245 : vector<32x1xi32> to vector<32x1xf32>
    %247 = vector.broadcast %198 : vector<1x64xf32> to vector<32x64xf32>
    %248 = arith.addf %222, %247 : vector<32x64xf32>
    %cst_161 = arith.constant 0.000000e+00 : f32
    %249 = vector.broadcast %cst_161 : f32 to vector<32x64xf32>
    %250 = arith.maximumf %248, %249 : vector<32x64xf32>
    %251 = vector.broadcast %246 : vector<32x1xf32> to vector<32x64xf32>
    %252 = arith.mulf %250, %251 : vector<32x64xf32>
    %253 = arith.truncf %252 : vector<32x64xf32> to vector<32x64xbf16>
    %c0_162 = arith.constant 0 : index
    %c0_163 = arith.constant 0 : index
    %c0_164 = arith.constant 0 : index
    %254 = vector.load %arg13[%c0_162, %c0_163, %c0_164] : memref<2x16x32xbf16, #tpu.memory_space<vmem>>, vector<1x16x32xbf16>
    %255 = vector.shape_cast %254 : vector<1x16x32xbf16> to vector<16x32xbf16>
    %cst_165 = arith.constant dense<0.000000e+00> : vector<16x64xf32>
    %256 = tpu.matmul %255, %253, %cst_165 {dimension_numbers = #tpu.dot_dimension_numbers<[1], [0], [0], [1], [0, 0, 1, 1], [], []>} : vector<16x32xbf16>, vector<32x64xbf16>, vector<16x64xf32> -> vector<16x64xf32>
    %c1_166 = arith.constant 1 : index
    %c0_167 = arith.constant 0 : index
    %c0_168 = arith.constant 0 : index
    %257 = vector.load %arg13[%c1_166, %c0_167, %c0_168] : memref<2x16x32xbf16, #tpu.memory_space<vmem>>, vector<1x16x32xbf16>
    %258 = vector.shape_cast %257 : vector<1x16x32xbf16> to vector<16x32xbf16>
    %cst_169 = arith.constant dense<0.000000e+00> : vector<16x64xf32>
    %259 = tpu.matmul %258, %253, %cst_169 {dimension_numbers = #tpu.dot_dimension_numbers<[1], [0], [0], [1], [0, 0, 1, 1], [], []>} : vector<16x32xbf16>, vector<32x64xbf16>, vector<16x64xf32> -> vector<16x64xf32>
    %260 = arith.maximumf %256, %259 : vector<16x64xf32>
    %261 = arith.truncf %260 : vector<16x64xf32> to vector<16x64xbf16>
    %c0_170 = arith.constant 0 : index
    %c0_171 = arith.constant 0 : index
    %c0_172 = arith.constant 0 : index
    %262 = vector.load %arg21[%c0_170, %c0_171, %c0_172] : memref<3x16x16xbf16, #tpu.memory_space<vmem>>, vector<1x16x16xbf16>
    %263 = vector.shape_cast %262 : vector<1x16x16xbf16> to vector<16x16xbf16>
    %cst_173 = arith.constant dense<0.000000e+00> : vector<16x64xf32>
    %264 = tpu.matmul %263, %261, %cst_173 {dimension_numbers = #tpu.dot_dimension_numbers<[1], [0], [0], [1], [0, 0, 1, 1], [], []>} : vector<16x16xbf16>, vector<16x64xbf16>, vector<16x64xf32> -> vector<16x64xf32>
    %c0_174 = arith.constant 0 : index
    %c0_175 = arith.constant 0 : index
    %c0_176 = arith.constant 0 : index
    %265 = vector.load %arg5[%c0_174, %c0_175, %c0_176] : memref<3x64x128xbf16, #tpu.memory_space<vmem>>, vector<1x64x128xbf16>
    %266 = vector.shape_cast %265 : vector<1x64x128xbf16> to vector<64x128xbf16>
    %267 = arith.truncf %264 : vector<16x64xf32> to vector<16x64xbf16>
    %cst_177 = arith.constant dense<0.000000e+00> : vector<16x128xf32>
    %268 = tpu.matmul %267, %266, %cst_177 {dimension_numbers = #tpu.dot_dimension_numbers<[1], [0], [0], [1], [0, 0, 1, 1], [], []>} : vector<16x64xbf16>, vector<64x128xbf16>, vector<16x128xf32> -> vector<16x128xf32>
    %c1_178 = arith.constant 1 : index
    %c0_179 = arith.constant 0 : index
    %c0_180 = arith.constant 0 : index
    %269 = vector.load %arg21[%c1_178, %c0_179, %c0_180] : memref<3x16x16xbf16, #tpu.memory_space<vmem>>, vector<1x16x16xbf16>
    %270 = vector.shape_cast %269 : vector<1x16x16xbf16> to vector<16x16xbf16>
    %cst_181 = arith.constant dense<0.000000e+00> : vector<16x64xf32>
    %271 = tpu.matmul %270, %261, %cst_181 {dimension_numbers = #tpu.dot_dimension_numbers<[1], [0], [0], [1], [0, 0, 1, 1], [], []>} : vector<16x16xbf16>, vector<16x64xbf16>, vector<16x64xf32> -> vector<16x64xf32>
    %c1_182 = arith.constant 1 : index
    %c0_183 = arith.constant 0 : index
    %c0_184 = arith.constant 0 : index
    %272 = vector.load %arg5[%c1_182, %c0_183, %c0_184] : memref<3x64x128xbf16, #tpu.memory_space<vmem>>, vector<1x64x128xbf16>
    %273 = vector.shape_cast %272 : vector<1x64x128xbf16> to vector<64x128xbf16>
    %274 = arith.truncf %271 : vector<16x64xf32> to vector<16x64xbf16>
    %cst_185 = arith.constant dense<0.000000e+00> : vector<16x128xf32>
    %275 = tpu.matmul %274, %273, %cst_185 {dimension_numbers = #tpu.dot_dimension_numbers<[1], [0], [0], [1], [0, 0, 1, 1], [], []>} : vector<16x64xbf16>, vector<64x128xbf16>, vector<16x128xf32> -> vector<16x128xf32>
    %276 = arith.addf %268, %275 : vector<16x128xf32>
    %c2_186 = arith.constant 2 : index
    %c0_187 = arith.constant 0 : index
    %c0_188 = arith.constant 0 : index
    %277 = vector.load %arg21[%c2_186, %c0_187, %c0_188] : memref<3x16x16xbf16, #tpu.memory_space<vmem>>, vector<1x16x16xbf16>
    %278 = vector.shape_cast %277 : vector<1x16x16xbf16> to vector<16x16xbf16>
    %cst_189 = arith.constant dense<0.000000e+00> : vector<16x64xf32>
    %279 = tpu.matmul %278, %261, %cst_189 {dimension_numbers = #tpu.dot_dimension_numbers<[1], [0], [0], [1], [0, 0, 1, 1], [], []>} : vector<16x16xbf16>, vector<16x64xbf16>, vector<16x64xf32> -> vector<16x64xf32>
    %c2_190 = arith.constant 2 : index
    %c0_191 = arith.constant 0 : index
    %c0_192 = arith.constant 0 : index
    %280 = vector.load %arg5[%c2_190, %c0_191, %c0_192] : memref<3x64x128xbf16, #tpu.memory_space<vmem>>, vector<1x64x128xbf16>
    %281 = vector.shape_cast %280 : vector<1x64x128xbf16> to vector<64x128xbf16>
    %282 = arith.truncf %279 : vector<16x64xf32> to vector<16x64xbf16>
    %cst_193 = arith.constant dense<0.000000e+00> : vector<16x128xf32>
    %283 = tpu.matmul %282, %281, %cst_193 {dimension_numbers = #tpu.dot_dimension_numbers<[1], [0], [0], [1], [0, 0, 1, 1], [], []>} : vector<16x64xbf16>, vector<64x128xbf16>, vector<16x128xf32> -> vector<16x128xf32>
    %284 = arith.addf %276, %283 : vector<16x128xf32>
    %285 = tpu.iota {dimensions = array<i32: 0>} : vector<16x1xi32>
    %c8_i32_194 = arith.constant 8 : i32
    %c0_i32_195 = arith.constant 0 : i32
    %286 = arith.cmpi eq, %c8_i32_194, %c0_i32_195 : i32
    %c1_i32_196 = arith.constant 1 : i32
    %287 = arith.select %286, %c1_i32_196, %c8_i32_194 : i32
    %288 = vector.broadcast %287 : i32 to vector<16x1xi32>
    %289 = arith.remsi %285, %288 : vector<16x1xi32>
    %c0_i32_197 = arith.constant 0 : i32
    %290 = vector.broadcast %c0_i32_197 : i32 to vector<16x1xi32>
    %291 = arith.cmpi ne, %289, %290 : vector<16x1xi32>
    %c0_i32_198 = arith.constant 0 : i32
    %292 = vector.broadcast %c0_i32_198 : i32 to vector<16x1xi32>
    %293 = arith.cmpi slt, %289, %292 : vector<16x1xi32>
    %c0_i32_199 = arith.constant 0 : i32
    %294 = arith.cmpi slt, %287, %c0_i32_199 : i32
    %295 = vector.broadcast %294 : i1 to vector<16x1xi1>
    %296 = vector.broadcast %295 : vector<16x1xi1> to vector<16x1xi1>
    %297 = arith.xori %293, %296 : vector<16x1xi1>
    %298 = arith.andi %297, %291 : vector<16x1xi1>
    %299 = vector.broadcast %287 : i32 to vector<16x1xi32>
    %300 = arith.addi %289, %299 : vector<16x1xi32>
    %301 = arith.select %298, %300, %289 : vector<16x1xi1>, vector<16x1xi32>
    %c1_i32_200 = arith.constant 1 : i32
    %302 = vector.broadcast %c1_i32_200 : i32 to vector<16x1xi32>
    %303 = arith.cmpi sge, %301, %302 : vector<16x1xi32>
    %c4_i32 = arith.constant 4 : i32
    %304 = vector.broadcast %c4_i32 : i32 to vector<16x1xi32>
    %305 = arith.cmpi sle, %301, %304 : vector<16x1xi32>
    %306 = arith.andi %303, %305 : vector<16x1xi1>
    %307 = arith.extui %306 : vector<16x1xi1> to vector<16x1xi32>
    %308 = arith.sitofp %307 : vector<16x1xi32> to vector<16x1xf32>
    %c0_201 = arith.constant 0 : index
    %c0_202 = arith.constant 0 : index
    %309 = vector.load %arg10[%c0_201, %c0_202] : memref<4x128xf32, #tpu.memory_space<vmem>>, vector<1x128xf32>
    %c1_203 = arith.constant 1 : index
    %c0_204 = arith.constant 0 : index
    %310 = vector.load %arg10[%c1_203, %c0_204] : memref<4x128xf32, #tpu.memory_space<vmem>>, vector<1x128xf32>
    %311 = vector.broadcast %308 : vector<16x1xf32> to vector<16x128xf32>
    %312 = arith.mulf %284, %311 : vector<16x128xf32>
    %cst_205 = arith.constant dense<0.000000e+00> : vector<128xf32>
    %313 = vector.multi_reduction <add>, %312, %cst_205 [0] : vector<16x128xf32> to vector<128xf32>
    %314 = vector.shape_cast %313 : vector<128xf32> to vector<1x128xf32>
    %c0_206 = arith.constant 0 : index
    %c0_207 = arith.constant 0 : index
    %315 = vector.load %arg22[%c0_206, %c0_207] : memref<128x32xf32, #tpu.memory_space<vmem>>, vector<128x32xf32>
    %cst_208 = arith.constant dense<0.000000e+00> : vector<1x32xf32>
    %316 = tpu.matmul %314, %315, %cst_208 {dimension_numbers = #tpu.dot_dimension_numbers<[1], [0], [0], [1], [0, 0, 1, 1], [], []>} : vector<1x128xf32>, vector<128x32xf32>, vector<1x32xf32> -> vector<1x32xf32>
    %c0_209 = arith.constant 0 : index
    %c0_210 = arith.constant 0 : index
    %317 = vector.load %arg23[%c0_209, %c0_210] : memref<32x128xf32, #tpu.memory_space<vmem>>, vector<32x128xf32>
    %cst_211 = arith.constant dense<0.000000e+00> : vector<1x128xf32>
    %318 = tpu.matmul %316, %317, %cst_211 {dimension_numbers = #tpu.dot_dimension_numbers<[1], [0], [0], [1], [0, 0, 1, 1], [], []>} : vector<1x32xf32>, vector<32x128xf32>, vector<1x128xf32> -> vector<1x128xf32>
    %cst_212 = arith.constant 3.200000e+01 : f32
    %319 = vector.broadcast %cst_212 : f32 to vector<1x128xf32>
    %320 = arith.divf %318, %319 : vector<1x128xf32>
    %321 = vector.broadcast %320 : vector<1x128xf32> to vector<16x128xf32>
    %322 = arith.subf %312, %321 : vector<16x128xf32>
    %323 = vector.broadcast %308 : vector<16x1xf32> to vector<16x128xf32>
    %324 = arith.mulf %322, %323 : vector<16x128xf32>
    %325 = arith.mulf %324, %324 : vector<16x128xf32>
    %cst_213 = arith.constant dense<0.000000e+00> : vector<128xf32>
    %326 = vector.multi_reduction <add>, %325, %cst_213 [0] : vector<16x128xf32> to vector<128xf32>
    %327 = vector.shape_cast %326 : vector<128xf32> to vector<1x128xf32>
    %c0_214 = arith.constant 0 : index
    %c0_215 = arith.constant 0 : index
    %328 = vector.load %arg22[%c0_214, %c0_215] : memref<128x32xf32, #tpu.memory_space<vmem>>, vector<128x32xf32>
    %cst_216 = arith.constant dense<0.000000e+00> : vector<1x32xf32>
    %329 = tpu.matmul %327, %328, %cst_216 {dimension_numbers = #tpu.dot_dimension_numbers<[1], [0], [0], [1], [0, 0, 1, 1], [], []>} : vector<1x128xf32>, vector<128x32xf32>, vector<1x32xf32> -> vector<1x32xf32>
    %c0_217 = arith.constant 0 : index
    %c0_218 = arith.constant 0 : index
    %330 = vector.load %arg23[%c0_217, %c0_218] : memref<32x128xf32, #tpu.memory_space<vmem>>, vector<32x128xf32>
    %cst_219 = arith.constant dense<0.000000e+00> : vector<1x128xf32>
    %331 = tpu.matmul %329, %330, %cst_219 {dimension_numbers = #tpu.dot_dimension_numbers<[1], [0], [0], [1], [0, 0, 1, 1], [], []>} : vector<1x32xf32>, vector<32x128xf32>, vector<1x128xf32> -> vector<1x128xf32>
    %cst_220 = arith.constant 3.200000e+01 : f32
    %332 = vector.broadcast %cst_220 : f32 to vector<1x128xf32>
    %333 = arith.divf %331, %332 : vector<1x128xf32>
    %cst_221 = arith.constant 9.99999974E-6 : f32
    %334 = vector.broadcast %cst_221 : f32 to vector<1x128xf32>
    %335 = arith.addf %333, %334 : vector<1x128xf32>
    %336 = math.rsqrt %335 : vector<1x128xf32>
    %337 = arith.mulf %309, %336 : vector<1x128xf32>
    %338 = arith.mulf %320, %337 : vector<1x128xf32>
    %339 = arith.subf %310, %338 : vector<1x128xf32>
    %340 = vector.broadcast %337 : vector<1x128xf32> to vector<16x128xf32>
    %341 = arith.mulf %312, %340 : vector<16x128xf32>
    %342 = vector.broadcast %339 : vector<1x128xf32> to vector<16x128xf32>
    %343 = arith.addf %341, %342 : vector<16x128xf32>
    %cst_222 = arith.constant 0.000000e+00 : f32
    %344 = vector.broadcast %cst_222 : f32 to vector<16x128xf32>
    %345 = arith.maximumf %343, %344 : vector<16x128xf32>
    %346 = vector.broadcast %308 : vector<16x1xf32> to vector<16x128xf32>
    %347 = arith.mulf %345, %346 : vector<16x128xf32>
    %348 = arith.truncf %347 : vector<16x128xf32> to vector<16x128xbf16>
    %c0_223 = arith.constant 0 : index
    %c0_224 = arith.constant 0 : index
    %c0_225 = arith.constant 0 : index
    %349 = vector.load %arg21[%c0_223, %c0_224, %c0_225] : memref<3x16x16xbf16, #tpu.memory_space<vmem>>, vector<1x16x16xbf16>
    %350 = vector.shape_cast %349 : vector<1x16x16xbf16> to vector<16x16xbf16>
    %cst_226 = arith.constant dense<0.000000e+00> : vector<16x128xf32>
    %351 = tpu.matmul %350, %348, %cst_226 {dimension_numbers = #tpu.dot_dimension_numbers<[1], [0], [0], [1], [0, 0, 1, 1], [], []>} : vector<16x16xbf16>, vector<16x128xbf16>, vector<16x128xf32> -> vector<16x128xf32>
    %c0_227 = arith.constant 0 : index
    %c0_228 = arith.constant 0 : index
    %c0_229 = arith.constant 0 : index
    %352 = vector.load %arg6[%c0_227, %c0_228, %c0_229] : memref<3x128x128xbf16, #tpu.memory_space<vmem>>, vector<1x128x128xbf16>
    %353 = vector.shape_cast %352 : vector<1x128x128xbf16> to vector<128x128xbf16>
    %354 = arith.truncf %351 : vector<16x128xf32> to vector<16x128xbf16>
    %cst_230 = arith.constant dense<0.000000e+00> : vector<16x128xf32>
    %355 = tpu.matmul %354, %353, %cst_230 {dimension_numbers = #tpu.dot_dimension_numbers<[1], [0], [0], [1], [0, 0, 1, 1], [], []>} : vector<16x128xbf16>, vector<128x128xbf16>, vector<16x128xf32> -> vector<16x128xf32>
    %c1_231 = arith.constant 1 : index
    %c0_232 = arith.constant 0 : index
    %c0_233 = arith.constant 0 : index
    %356 = vector.load %arg21[%c1_231, %c0_232, %c0_233] : memref<3x16x16xbf16, #tpu.memory_space<vmem>>, vector<1x16x16xbf16>
    %357 = vector.shape_cast %356 : vector<1x16x16xbf16> to vector<16x16xbf16>
    %cst_234 = arith.constant dense<0.000000e+00> : vector<16x128xf32>
    %358 = tpu.matmul %357, %348, %cst_234 {dimension_numbers = #tpu.dot_dimension_numbers<[1], [0], [0], [1], [0, 0, 1, 1], [], []>} : vector<16x16xbf16>, vector<16x128xbf16>, vector<16x128xf32> -> vector<16x128xf32>
    %c1_235 = arith.constant 1 : index
    %c0_236 = arith.constant 0 : index
    %c0_237 = arith.constant 0 : index
    %359 = vector.load %arg6[%c1_235, %c0_236, %c0_237] : memref<3x128x128xbf16, #tpu.memory_space<vmem>>, vector<1x128x128xbf16>
    %360 = vector.shape_cast %359 : vector<1x128x128xbf16> to vector<128x128xbf16>
    %361 = arith.truncf %358 : vector<16x128xf32> to vector<16x128xbf16>
    %cst_238 = arith.constant dense<0.000000e+00> : vector<16x128xf32>
    %362 = tpu.matmul %361, %360, %cst_238 {dimension_numbers = #tpu.dot_dimension_numbers<[1], [0], [0], [1], [0, 0, 1, 1], [], []>} : vector<16x128xbf16>, vector<128x128xbf16>, vector<16x128xf32> -> vector<16x128xf32>
    %363 = arith.addf %355, %362 : vector<16x128xf32>
    %c2_239 = arith.constant 2 : index
    %c0_240 = arith.constant 0 : index
    %c0_241 = arith.constant 0 : index
    %364 = vector.load %arg21[%c2_239, %c0_240, %c0_241] : memref<3x16x16xbf16, #tpu.memory_space<vmem>>, vector<1x16x16xbf16>
    %365 = vector.shape_cast %364 : vector<1x16x16xbf16> to vector<16x16xbf16>
    %cst_242 = arith.constant dense<0.000000e+00> : vector<16x128xf32>
    %366 = tpu.matmul %365, %348, %cst_242 {dimension_numbers = #tpu.dot_dimension_numbers<[1], [0], [0], [1], [0, 0, 1, 1], [], []>} : vector<16x16xbf16>, vector<16x128xbf16>, vector<16x128xf32> -> vector<16x128xf32>
    %c2_243 = arith.constant 2 : index
    %c0_244 = arith.constant 0 : index
    %c0_245 = arith.constant 0 : index
    %367 = vector.load %arg6[%c2_243, %c0_244, %c0_245] : memref<3x128x128xbf16, #tpu.memory_space<vmem>>, vector<1x128x128xbf16>
    %368 = vector.shape_cast %367 : vector<1x128x128xbf16> to vector<128x128xbf16>
    %369 = arith.truncf %366 : vector<16x128xf32> to vector<16x128xbf16>
    %cst_246 = arith.constant dense<0.000000e+00> : vector<16x128xf32>
    %370 = tpu.matmul %369, %368, %cst_246 {dimension_numbers = #tpu.dot_dimension_numbers<[1], [0], [0], [1], [0, 0, 1, 1], [], []>} : vector<16x128xbf16>, vector<128x128xbf16>, vector<16x128xf32> -> vector<16x128xf32>
    %371 = arith.addf %363, %370 : vector<16x128xf32>
    %372 = tpu.iota {dimensions = array<i32: 0>} : vector<16x1xi32>
    %c8_i32_247 = arith.constant 8 : i32
    %c0_i32_248 = arith.constant 0 : i32
    %373 = arith.cmpi eq, %c8_i32_247, %c0_i32_248 : i32
    %c1_i32_249 = arith.constant 1 : i32
    %374 = arith.select %373, %c1_i32_249, %c8_i32_247 : i32
    %375 = vector.broadcast %374 : i32 to vector<16x1xi32>
    %376 = arith.remsi %372, %375 : vector<16x1xi32>
    %c0_i32_250 = arith.constant 0 : i32
    %377 = vector.broadcast %c0_i32_250 : i32 to vector<16x1xi32>
    %378 = arith.cmpi ne, %376, %377 : vector<16x1xi32>
    %c0_i32_251 = arith.constant 0 : i32
    %379 = vector.broadcast %c0_i32_251 : i32 to vector<16x1xi32>
    %380 = arith.cmpi slt, %376, %379 : vector<16x1xi32>
    %c0_i32_252 = arith.constant 0 : i32
    %381 = arith.cmpi slt, %374, %c0_i32_252 : i32
    %382 = vector.broadcast %381 : i1 to vector<16x1xi1>
    %383 = vector.broadcast %382 : vector<16x1xi1> to vector<16x1xi1>
    %384 = arith.xori %380, %383 : vector<16x1xi1>
    %385 = arith.andi %384, %378 : vector<16x1xi1>
    %386 = vector.broadcast %374 : i32 to vector<16x1xi32>
    %387 = arith.addi %376, %386 : vector<16x1xi32>
    %388 = arith.select %385, %387, %376 : vector<16x1xi1>, vector<16x1xi32>
    %c1_i32_253 = arith.constant 1 : i32
    %389 = vector.broadcast %c1_i32_253 : i32 to vector<16x1xi32>
    %390 = arith.cmpi sge, %388, %389 : vector<16x1xi32>
    %c4_i32_254 = arith.constant 4 : i32
    %391 = vector.broadcast %c4_i32_254 : i32 to vector<16x1xi32>
    %392 = arith.cmpi sle, %388, %391 : vector<16x1xi32>
    %393 = arith.andi %390, %392 : vector<16x1xi1>
    %394 = arith.extui %393 : vector<16x1xi1> to vector<16x1xi32>
    %395 = arith.sitofp %394 : vector<16x1xi32> to vector<16x1xf32>
    %c2_255 = arith.constant 2 : index
    %c0_256 = arith.constant 0 : index
    %396 = vector.load %arg10[%c2_255, %c0_256] : memref<4x128xf32, #tpu.memory_space<vmem>>, vector<1x128xf32>
    %c3_257 = arith.constant 3 : index
    %c0_258 = arith.constant 0 : index
    %397 = vector.load %arg10[%c3_257, %c0_258] : memref<4x128xf32, #tpu.memory_space<vmem>>, vector<1x128xf32>
    %398 = vector.broadcast %395 : vector<16x1xf32> to vector<16x128xf32>
    %399 = arith.mulf %371, %398 : vector<16x128xf32>
    %cst_259 = arith.constant dense<0.000000e+00> : vector<128xf32>
    %400 = vector.multi_reduction <add>, %399, %cst_259 [0] : vector<16x128xf32> to vector<128xf32>
    %401 = vector.shape_cast %400 : vector<128xf32> to vector<1x128xf32>
    %c0_260 = arith.constant 0 : index
    %c0_261 = arith.constant 0 : index
    %402 = vector.load %arg22[%c0_260, %c0_261] : memref<128x32xf32, #tpu.memory_space<vmem>>, vector<128x32xf32>
    %cst_262 = arith.constant dense<0.000000e+00> : vector<1x32xf32>
    %403 = tpu.matmul %401, %402, %cst_262 {dimension_numbers = #tpu.dot_dimension_numbers<[1], [0], [0], [1], [0, 0, 1, 1], [], []>} : vector<1x128xf32>, vector<128x32xf32>, vector<1x32xf32> -> vector<1x32xf32>
    %c0_263 = arith.constant 0 : index
    %c0_264 = arith.constant 0 : index
    %404 = vector.load %arg23[%c0_263, %c0_264] : memref<32x128xf32, #tpu.memory_space<vmem>>, vector<32x128xf32>
    %cst_265 = arith.constant dense<0.000000e+00> : vector<1x128xf32>
    %405 = tpu.matmul %403, %404, %cst_265 {dimension_numbers = #tpu.dot_dimension_numbers<[1], [0], [0], [1], [0, 0, 1, 1], [], []>} : vector<1x32xf32>, vector<32x128xf32>, vector<1x128xf32> -> vector<1x128xf32>
    %cst_266 = arith.constant 3.200000e+01 : f32
    %406 = vector.broadcast %cst_266 : f32 to vector<1x128xf32>
    %407 = arith.divf %405, %406 : vector<1x128xf32>
    %408 = vector.broadcast %407 : vector<1x128xf32> to vector<16x128xf32>
    %409 = arith.subf %399, %408 : vector<16x128xf32>
    %410 = vector.broadcast %395 : vector<16x1xf32> to vector<16x128xf32>
    %411 = arith.mulf %409, %410 : vector<16x128xf32>
    %412 = arith.mulf %411, %411 : vector<16x128xf32>
    %cst_267 = arith.constant dense<0.000000e+00> : vector<128xf32>
    %413 = vector.multi_reduction <add>, %412, %cst_267 [0] : vector<16x128xf32> to vector<128xf32>
    %414 = vector.shape_cast %413 : vector<128xf32> to vector<1x128xf32>
    %c0_268 = arith.constant 0 : index
    %c0_269 = arith.constant 0 : index
    %415 = vector.load %arg22[%c0_268, %c0_269] : memref<128x32xf32, #tpu.memory_space<vmem>>, vector<128x32xf32>
    %cst_270 = arith.constant dense<0.000000e+00> : vector<1x32xf32>
    %416 = tpu.matmul %414, %415, %cst_270 {dimension_numbers = #tpu.dot_dimension_numbers<[1], [0], [0], [1], [0, 0, 1, 1], [], []>} : vector<1x128xf32>, vector<128x32xf32>, vector<1x32xf32> -> vector<1x32xf32>
    %c0_271 = arith.constant 0 : index
    %c0_272 = arith.constant 0 : index
    %417 = vector.load %arg23[%c0_271, %c0_272] : memref<32x128xf32, #tpu.memory_space<vmem>>, vector<32x128xf32>
    %cst_273 = arith.constant dense<0.000000e+00> : vector<1x128xf32>
    %418 = tpu.matmul %416, %417, %cst_273 {dimension_numbers = #tpu.dot_dimension_numbers<[1], [0], [0], [1], [0, 0, 1, 1], [], []>} : vector<1x32xf32>, vector<32x128xf32>, vector<1x128xf32> -> vector<1x128xf32>
    %cst_274 = arith.constant 3.200000e+01 : f32
    %419 = vector.broadcast %cst_274 : f32 to vector<1x128xf32>
    %420 = arith.divf %418, %419 : vector<1x128xf32>
    %cst_275 = arith.constant 9.99999974E-6 : f32
    %421 = vector.broadcast %cst_275 : f32 to vector<1x128xf32>
    %422 = arith.addf %420, %421 : vector<1x128xf32>
    %423 = math.rsqrt %422 : vector<1x128xf32>
    %424 = arith.mulf %396, %423 : vector<1x128xf32>
    %425 = arith.mulf %407, %424 : vector<1x128xf32>
    %426 = arith.subf %397, %425 : vector<1x128xf32>
    %427 = vector.broadcast %424 : vector<1x128xf32> to vector<16x128xf32>
    %428 = arith.mulf %399, %427 : vector<16x128xf32>
    %429 = vector.broadcast %426 : vector<1x128xf32> to vector<16x128xf32>
    %430 = arith.addf %428, %429 : vector<16x128xf32>
    %cst_276 = arith.constant 0.000000e+00 : f32
    %431 = vector.broadcast %cst_276 : f32 to vector<16x128xf32>
    %432 = arith.maximumf %430, %431 : vector<16x128xf32>
    %433 = vector.broadcast %395 : vector<16x1xf32> to vector<16x128xf32>
    %434 = arith.mulf %432, %433 : vector<16x128xf32>
    %435 = arith.truncf %434 : vector<16x128xf32> to vector<16x128xbf16>
    %c0_277 = arith.constant 0 : index
    %c0_278 = arith.constant 0 : index
    %c0_279 = arith.constant 0 : index
    %436 = vector.load %arg14[%c0_277, %c0_278, %c0_279] : memref<2x16x16xbf16, #tpu.memory_space<vmem>>, vector<1x16x16xbf16>
    %437 = vector.shape_cast %436 : vector<1x16x16xbf16> to vector<16x16xbf16>
    %cst_280 = arith.constant dense<0.000000e+00> : vector<16x128xf32>
    %438 = tpu.matmul %437, %435, %cst_280 {dimension_numbers = #tpu.dot_dimension_numbers<[1], [0], [0], [1], [0, 0, 1, 1], [], []>} : vector<16x16xbf16>, vector<16x128xbf16>, vector<16x128xf32> -> vector<16x128xf32>
    %c1_281 = arith.constant 1 : index
    %c0_282 = arith.constant 0 : index
    %c0_283 = arith.constant 0 : index
    %439 = vector.load %arg14[%c1_281, %c0_282, %c0_283] : memref<2x16x16xbf16, #tpu.memory_space<vmem>>, vector<1x16x16xbf16>
    %440 = vector.shape_cast %439 : vector<1x16x16xbf16> to vector<16x16xbf16>
    %cst_284 = arith.constant dense<0.000000e+00> : vector<16x128xf32>
    %441 = tpu.matmul %440, %435, %cst_284 {dimension_numbers = #tpu.dot_dimension_numbers<[1], [0], [0], [1], [0, 0, 1, 1], [], []>} : vector<16x16xbf16>, vector<16x128xbf16>, vector<16x128xf32> -> vector<16x128xf32>
    %442 = arith.maximumf %438, %441 : vector<16x128xf32>
    %443 = arith.truncf %442 : vector<16x128xf32> to vector<16x128xbf16>
    %c0_285 = arith.constant 0 : index
    %c0_286 = arith.constant 0 : index
    %c0_287 = arith.constant 0 : index
    %444 = vector.load %arg17[%c0_285, %c0_286, %c0_287] : memref<2x2x16xbf16, #tpu.memory_space<vmem>>, vector<1x2x16xbf16>
    %445 = vector.shape_cast %444 : vector<1x2x16xbf16> to vector<2x16xbf16>
    %cst_288 = arith.constant dense<0.000000e+00> : vector<2x128xf32>
    %446 = tpu.matmul %445, %443, %cst_288 {dimension_numbers = #tpu.dot_dimension_numbers<[1], [0], [0], [1], [0, 0, 1, 1], [], []>} : vector<2x16xbf16>, vector<16x128xbf16>, vector<2x128xf32> -> vector<2x128xf32>
    %c0_289 = arith.constant 0 : index
    %c0_290 = arith.constant 0 : index
    %c0_291 = arith.constant 0 : index
    %447 = vector.load %arg7[%c0_289, %c0_290, %c0_291] : memref<2x128x96xbf16, #tpu.memory_space<vmem>>, vector<1x128x96xbf16>
    %448 = vector.shape_cast %447 : vector<1x128x96xbf16> to vector<128x96xbf16>
    %449 = arith.truncf %446 : vector<2x128xf32> to vector<2x128xbf16>
    %cst_292 = arith.constant dense<0.000000e+00> : vector<2x96xf32>
    %450 = tpu.matmul %449, %448, %cst_292 {dimension_numbers = #tpu.dot_dimension_numbers<[1], [0], [0], [1], [0, 0, 1, 1], [], []>} : vector<2x128xbf16>, vector<128x96xbf16>, vector<2x96xf32> -> vector<2x96xf32>
    %c1_293 = arith.constant 1 : index
    %c0_294 = arith.constant 0 : index
    %c0_295 = arith.constant 0 : index
    %451 = vector.load %arg17[%c1_293, %c0_294, %c0_295] : memref<2x2x16xbf16, #tpu.memory_space<vmem>>, vector<1x2x16xbf16>
    %452 = vector.shape_cast %451 : vector<1x2x16xbf16> to vector<2x16xbf16>
    %cst_296 = arith.constant dense<0.000000e+00> : vector<2x128xf32>
    %453 = tpu.matmul %452, %443, %cst_296 {dimension_numbers = #tpu.dot_dimension_numbers<[1], [0], [0], [1], [0, 0, 1, 1], [], []>} : vector<2x16xbf16>, vector<16x128xbf16>, vector<2x128xf32> -> vector<2x128xf32>
    %c1_297 = arith.constant 1 : index
    %c0_298 = arith.constant 0 : index
    %c0_299 = arith.constant 0 : index
    %454 = vector.load %arg7[%c1_297, %c0_298, %c0_299] : memref<2x128x96xbf16, #tpu.memory_space<vmem>>, vector<1x128x96xbf16>
    %455 = vector.shape_cast %454 : vector<1x128x96xbf16> to vector<128x96xbf16>
    %456 = arith.truncf %453 : vector<2x128xf32> to vector<2x128xbf16>
    %cst_300 = arith.constant dense<0.000000e+00> : vector<2x96xf32>
    %457 = tpu.matmul %456, %455, %cst_300 {dimension_numbers = #tpu.dot_dimension_numbers<[1], [0], [0], [1], [0, 0, 1, 1], [], []>} : vector<2x128xbf16>, vector<128x96xbf16>, vector<2x96xf32> -> vector<2x96xf32>
    %458 = arith.addf %450, %457 : vector<2x96xf32>
    %c0_301 = arith.constant 0 : index
    %c0_302 = arith.constant 0 : index
    %459 = vector.load %arg9[%c0_301, %c0_302] : memref<1x96xf32, #tpu.memory_space<vmem>>, vector<1x96xf32>
    %460 = vector.broadcast %459 : vector<1x96xf32> to vector<2x96xf32>
    %461 = arith.addf %458, %460 : vector<2x96xf32>
    %cst_303 = arith.constant 0.000000e+00 : f32
    %462 = vector.broadcast %cst_303 : f32 to vector<2x96xf32>
    %463 = arith.maximumf %461, %462 : vector<2x96xf32>
    %c0_304 = arith.constant 0 : index
    %c0_305 = arith.constant 0 : index
    %464 = vector.load %arg24[%c0_304, %c0_305] : memref<2x96xf32, #tpu.memory_space<vmem>>, vector<2x96xf32>
    tpu.vector_store %arg24[%c0_304, %c0_305], %463 {strides = array<i32>} : memref<2x96xf32, #tpu.memory_space<vmem>>, vector<2x96xf32>,
    return
  }
}

</mosaic_0001>

<bundles_post_ra>
// kernel: tpu_custom_call.1
= control target key start
LH: loop header
LB: loop body
LE: loop exit
PB: predicated region body
PF: predicated region fallthrough
CT: control target
= control target key end

     0   :  { %6 = vsyncpa [#allocation3], 0  ;;  %s115_s0 = inlined_call_operand.hbm [shape: f32[8,128], index: 0, kind: input, shape index: {}]   ;;  %s116_s1 = inlined_call_operand.hbm [shape: f32[8,128], index: 1, kind: output, shape index: {}]  }
   0x1   :  { %7 = vsyncpa [#allocation4], 0  ;;  %s13_s8 = sshll.u32 %s115_s0, 4  ;;  %s97_s9 = smov [#allocation2]   ;;  %s14_s8 = int_to_ptr.hbm [resolvable:$true] %s13_s8 }
   0x2   :  { %s15_s10 = sshll.u32 %s97_s9, 4  ;;  %s16_s10 = int_to_ptr.vmem [resolvable:$true] %s15_s10 }
   0x3   :  { %18 = dma.hbm_to_vmem [thread:$0]  %s14_s8, 128, %s16_s10, [#allocation3]  }
   0x4   :  { %93 = dma.done.wait [#allocation3], 128  }
   0x5   :  { %94 = vsyncadd [#allocation3], 4294967168  ;;  %s98_s11 = smov [#allocation5]   ;;  %s33_s15 = sshll.u32 %s116_s1, 4  ;;  %v23_v0 = vld [vmem:[#allocation2] sm:$0xff]  ;;  %s34_s15 = int_to_ptr.hbm [resolvable:$true] %s33_s15 }
   0x6   :  { %s31_s12 = sshll.u32 %s98_s11, 4  ;;  %v24_v1 = vrot.slane %v23_v0, 7  ;;  %s32_s12 = int_to_ptr.vmem [resolvable:$true] %s31_s12 }
   0x8   :  { %25 = vst [vmem:[#allocation5] sm:$0xff] %v24_v1 }
   0x9   :  { %36 = dma.vmem_to_hbm [thread:$0]  %s32_s12, 128, %s34_s15, [#allocation4]  }
   0xa   :  { %95 = dma.done.wait [#allocation4], 128  }
   0xb   :  { %96 = vsyncadd [#allocation4], 4294967168 }
   0xc   :  { %41 = vsyncpa [#allocation3], 1 }
   0xd   :  { %42 = vsyncpa [#allocation4], 1 }

// kernel: fwd.1
= control target key start
LH: loop header
LB: loop body
LE: loop exit
PB: predicated region body
PF: predicated region fallthrough
CT: control target
= control target key end

     0   :  { %s6764_s0 = inlined_call_operand.vmem [shape: f32[80,48], index: 0, kind: input, shape index: {}]   ;;  %s6765_s1 = inlined_call_operand.vmem [shape: bf16[3,48,64], index: 1, kind: input, shape index: {}]   ;;  %s6766_s2 = inlined_call_operand.vmem [shape: bf16[3,32,64], index: 2, kind: input, shape index: {}]   ;;  %s6767_s3 = inlined_call_operand.vmem [shape: bf16[3,32,64], index: 3, kind: input, shape index: {}]   ;;  %s6768_s4 = inlined_call_operand.vmem [shape: bf16[3,64,64], index: 4, kind: input, shape index: {}]   ;;  %s6769_s5 = inlined_call_operand.vmem [shape: bf16[3,64,128], index: 5, kind: input, shape index: {}]   ;;  %s6770_s6 = inlined_call_operand.vmem [shape: bf16[3,128,128], index: 6, kind: input, shape index: {}]   ;;  %s6771_s7 = inlined_call_operand.vmem [shape: bf16[2,128,96], index: 7, kind: input, shape index: {}]   ;;  %s6772_s8 = inlined_call_operand.vmem [shape: f32[4,64], index: 8, kind: input, shape index: {}]   ;;  %s6773_s9 = inlined_call_operand.hbm [shape: f32[1,96], index: 9, kind: input, shape index: {}]   ;;  %s6774_s10 = inlined_call_operand.hbm [shape: f32[4,128], index: 10, kind: input, shape index: {}]   ;;  %s6775_s11 = inlined_call_operand.vmem [shape: bf16[2,48,80], index: 11, kind: input, shape index: {}]   ;;  %s6776_s12 = inlined_call_operand.vmem [shape: bf16[2,32,48], index: 12, kind: input, shape index: {}]   ;;  %s6777_s13 = inlined_call_operand.hbm [shape: bf16[2,16,32], index: 13, kind: input, shape index: {}]   ;;  %s6778_s14 = inlined_call_operand.hbm [shape: bf16[2,16,16], index: 14, kind: input, shape index: {}]   ;;  %s6779_s15 = inlined_call_operand.vmem [shape: bf16[2,64,32], index: 15, kind: input, shape index: {}]   ;;  %s6780_s16 = inlined_call_operand.vmem [shape: bf16[2,64,32], index: 16, kind: input, shape index: {}]   ;;  %s6781_s17 = inlined_call_operand.vmem [shape: bf16[2,2,16], index: 17, kind: input, shape index: {}]   ;;  %s6782_s18 = inlined_call_operand.vmem [shape: bf16[3,80,80], index: 18, kind: input, shape index: {}]   ;;  %s6783_s19 = inlined_call_operand.vmem [shape: bf16[3,48,48], index: 19, kind: input, shape index: {}]   ;;  %s6784_s20 = inlined_call_operand.hbm [shape: bf16[3,32,32], index: 20, kind: input, shape index: {}]   ;;  %s6785_s21 = inlined_call_operand.hbm [shape: bf16[3,16,16], index: 21, kind: input, shape index: {}]   ;;  %s6786_s22 = inlined_call_operand.vmem [shape: f32[128,32], index: 22, kind: input, shape index: {}]   ;;  %s6787_s23 = inlined_call_operand.hbm [shape: f32[32,128], index: 23, kind: input, shape index: {}]   ;;  %s6788_s24 = inlined_call_operand.vmem [shape: f32[2,96], index: 24, kind: output, shape index: {}]  }
   0x1   :  { %6829 = sst [smem:[#allocation45_spill]] %s6764_s0 }
   0x2   :  { %6830 = sst [smem:[#allocation46_spill]] %s6765_s1 }
   0x3   :  { %6831 = sst [smem:[#allocation47_spill]] %s6766_s2 }
   0x4   :  { %6832 = sst [smem:[#allocation48_spill]] %s6767_s3 }
   0x5   :  { %6833 = sst [smem:[#allocation49_spill]] %s6768_s4 }
   0x6   :  { %6834 = sst [smem:[#allocation50_spill]] %s6769_s5 }
   0x7   :  { %6835 = sst [smem:[#allocation51_spill]] %s6770_s6 }
   0x8   :  { %6836 = sst [smem:[#allocation52_spill]] %s6771_s7 }
   0x9   :  { %6837 = sst [smem:[#allocation53_spill]] %s6772_s8 }
   0xa   :  { %29 = vsyncpa [#allocation3], 0 }
   0xb   :  { %30 = vsyncpa [#allocation5], 0 }
   0xc   :  { %31 = vsyncpa [#allocation8], 0  ;;  %s67_s27 = sshll.u32 %s6774_s10, 4  ;;  %s68_s27 = int_to_ptr.hbm [resolvable:$true] %s67_s27 }
   0xd   :  { %32 = vsyncpa [#allocation11], 0  ;;  %s5177_s28 = smov [#allocation4]   ;;  %s94_s0 = sshll.u32 %s6778_s14, 4  ;;  %s95_s0 = int_to_ptr.hbm [resolvable:$true] %s94_s0 }
   0xe   :  { %s69_s6 = sshll.u32 %s5177_s28, 4  ;;  %s5178_s7 = smov [#allocation7]   ;;  %s70_s6 = int_to_ptr.vmem [resolvable:$true] %s69_s6 }
   0xf   :  { %72 = dma.hbm_to_vmem [thread:$0]  %s68_s27, 64, %s70_s6, [#allocation5]  }
  0x10   :  { %s96_s30 = sshll.u32 %s5178_s7, 4  ;;  %s130_s8 = sshll.u32 %s6785_s21, 4  ;;  %s97_s30 = int_to_ptr.vmem [resolvable:$true] %s96_s30  ;;  %s131_s8 = int_to_ptr.hbm [resolvable:$true] %s130_s8 }
  0x11   :  { %s5179_s10 = smov 64   ;;  %s5180_s4 = smov 4  }
  0x12   :  { %102 = dma.hbm_to_vmem [thread:$0]  %s95_s0, 256, %s97_s30, [#allocation8], %s5179_s10, %s5179_s10, %s5180_s4  }
  0x13   :  { %s56_s26 = sshll.u32 %s6773_s9, 4  ;;  %s5181_s27 = smov [#allocation10]   ;;  %s57_s26 = int_to_ptr.hbm [resolvable:$true] %s56_s26 }
  0x14   :  { %s132_s28 = sshll.u32 %s5181_s27, 4  ;;  %s5182_s14 = smov [#allocation2]   ;;  %s133_s28 = int_to_ptr.vmem [resolvable:$true] %s132_s28 }
  0x15   :  { %138 = dma.hbm_to_vmem [thread:$0]  %s131_s8, 384, %s133_s28, [#allocation11], %s5179_s10, %s5179_s10, %s5180_s4  }
  0x16   :  { %s58_s6 = sshll.u32 %s5182_s14, 4  ;;  %s81_s21 = sshll.u32 %s6777_s13, 4  ;;  %s59_s6 = int_to_ptr.vmem [resolvable:$true] %s58_s6  ;;  %s82_s21 = int_to_ptr.hbm [resolvable:$true] %s81_s21 }
  0x17   :  { %61 = dma.hbm_to_vmem [thread:$0]  %s57_s26, 16, %s59_s6, [#allocation3]  }
  0x18   :  { %s117_s30 = sshll.u32 %s6784_s20, 4  ;;  %s5183_s3 = smov [#allocation6]   ;;  %s118_s30 = int_to_ptr.hbm [resolvable:$true] %s117_s30 }
  0x19   :  { %s83_s9 = sshll.u32 %s5183_s3, 4  ;;  %s5184_s25 = smov [#allocation9]   ;;  %s84_s9 = int_to_ptr.vmem [resolvable:$true] %s83_s9 }
  0x1a   :  { %89 = dma.hbm_to_vmem [thread:$0]  %s82_s21, 256, %s84_s9, [#allocation5], %s5179_s10, %s5179_s10, %s5180_s4  }
  0x1b   :  { %s119_s8 = sshll.u32 %s5184_s25, 4  ;;  %s145_s27 = sshll.u32 %s6787_s23, 4  ;;  %s120_s8 = int_to_ptr.vmem [resolvable:$true] %s119_s8  ;;  %s146_s27 = int_to_ptr.hbm [resolvable:$true] %s145_s27 }
  0x1c   :  { %125 = dma.hbm_to_vmem [thread:$0]  %s118_s30, 768, %s120_s8, [#allocation8], %s5179_s10, %s5179_s10, %s5180_s4  }
  0x1d   :  { %s5185_s13 = smov [#allocation12]   ;;  %s5186_s28 = smov 128  }
  0x1e   :  { %s147_s26 = sshll.u32 %s5185_s13, 4  ;;  %s5187_s14 = smov 8   ;;  %s148_s26 = int_to_ptr.vmem [resolvable:$true] %s147_s26 }
  0x1f   :  { %153 = dma.hbm_to_vmem [thread:$0]  %s146_s27, 512, %s148_s26, [#allocation11], %s5186_s28, %s5186_s28, %s5187_s14  }
  0x20   :  { %5169 = dma.done.wait [#allocation3], 16  }
  0x21   :  { %5170 = vsyncadd [#allocation3], 4294967280 }
  0x22   :  { %5171 = dma.done.wait [#allocation5], 320  }
  0x23   :  { %5172 = vsyncadd [#allocation5], 4294966976 }
  0x24   :  { %5173 = dma.done.wait [#allocation8], 1024  }
  0x25   :  { %5174 = vsyncadd [#allocation8], 4294966272 }
  0x26   :  { %5175 = dma.done.wait [#allocation11], 896  }
  0x27   :  { %5176 = vsyncadd [#allocation11], 4294966400  ;;  %s6838_s23 = sld [smem:[#allocation45_spill]]  ;;  %v4821_v15 = vld [vmem:[%s6782_s18] sm:$0xff]  ;;  %v4829_v16 = vld [vmem:[%s6782_s18 + $0x28] sm:$0xff]  ;;  %vm6828_vm0 = vcmask 654336  }
  0x28   :  { %v4822_v17 = vld [vmem:[%s6782_s18 + $0x8] sm:$0xff]  ;;  %v4830_v18 = vld [vmem:[%s6782_s18 + $0x30] sm:$0xff]  ;;  %v4831_v20 = vld [vmem:[%s6782_s18 + $0x38] sm:$0xff]  ;;  %s6839_s14 = sld [smem:[#allocation46_spill]]  ;;  %vm6827_vm1 = vcmask 392192  }
  0x29   :  { %v4823_v19 = vld [vmem:[%s6782_s18 + $0x10] sm:$0xff]  ;;  %v4824_v21 = vld [vmem:[%s6782_s18 + $0x18] sm:$0xff]  ;;  %v4832_v22 = vld [vmem:[%s6782_s18 + $0x40] sm:$0xff]  ;;  %s6915_s4 = sld [smem:[#allocation53_spill]] }
  0x2a   :  { %v4825_v23 = vld [vmem:[%s6782_s18 + $0x20] sm:$0xff]  ;;  %v4833_v24 = vld [vmem:[%s6782_s18 + $0x48] sm:$0xff]  ;;  %v4837_v61 = vld [vmem:[%s6782_s18 + $0x50] sm:$0xff]  ;;  %s6946_s21 = sld [smem:[#allocation47_spill]] }
  0x2b   :  { %v4838_v62 = vld [vmem:[%s6782_s18 + $0x58] sm:$0xff]  ;;  %v4839_v63 = vld [vmem:[%s6782_s18 + $0x60] sm:$0xff]  ;;  %s6956_s27 = sld [smem:[#allocation48_spill]] }
  0x2c   :  { %s6958_s7 = sld [smem:[#allocation50_spill]] }
  0x2d   :  { %v191_v0 = vld [vmem:[%s6838_s23 + $0x40] sm:$0xff]  ;;  %v192_v1 = vld [vmem:[%s6838_s23 + $0x48] sm:$0xff]  ;;  %v189_v2 = vld [vmem:[%s6838_s23 + $0x30] sm:$0xff]  ;;  %s6968_s2 = sld [smem:[#allocation52_spill]] }
  0x2e   :  { %v198_v3 = vpack.c.bf16 %v192_v1, %v191_v0  ;;  %v190_v4 = vld [vmem:[%s6838_s23 + $0x38] sm:$0xff]  ;;  %v187_v6 = vld [vmem:[%s6838_s23 + $0x20] sm:$0xff]  ;;  %v188_v7 = vld [vmem:[%s6838_s23 + $0x28] sm:$0xff] }
  0x2f   :  { %v197_v5 = vpack.c.bf16 %v190_v4, %v189_v2  ;;  %v196_v8 = vpack.c.bf16 %v188_v7, %v187_v6  ;;  %v185_v9 = vld [vmem:[%s6838_s23 + $0x10] sm:$0xff]  ;;  %v186_v10 = vld [vmem:[%s6838_s23 + $0x18] sm:$0xff]  ;;  %v183_v12 = vld [vmem:[%s6838_s23] sm:$0xff] }
  0x30   :  { %253 = vmatpush.bf16.msra.mxu0 %v198_v3  ;;  %349 = vmatpush.bf16.msra.mxu1 %v198_v3  ;;  %v195_v11 = vpack.c.bf16 %v186_v10, %v185_v9  ;;  %v184_v13 = vld [vmem:[%s6838_s23 + $0x8] sm:$0xff]  ;;  %v4828_v26 = vld [vmem:[%s6839_s14 + $0x10] sm:$0xff]  ;;  %v4835_v27 = vld [vmem:[%s6839_s14 + $0x20] sm:$0xff] }
  0x31   :  { %v194_v14 = vpack.c.bf16 %v184_v13, %v183_v12  ;;  %v4836_v25 = vld [vmem:[%s6839_s14 + $0x28] sm:$0xff]  ;;  %498 = vmatpush.bf16.msra.mxu3 %v4828_v26  ;;  %v4834_v29 = vld [vmem:[%s6839_s14 + $0x18] sm:$0xff]  ;;  %v4826_v30 = vld [vmem:[%s6839_s14] sm:$0xff] }
  0x32   :  { %431 = vmatpush.bf16.msra.mxu2 %v4836_v25  ;;  %v4827_v28 = vld [vmem:[%s6839_s14 + $0x8] sm:$0xff]  ;;  %v4841_v6 = vld [vmem:[%s6782_s18 + $0x70] sm:$0xff] }
  0x33   :  { %v4840_v0 = vld [vmem:[%s6782_s18 + $0x68] sm:$0xff] }
  0x34   :  { %254 = vmatpush.bf16.msra.mxu0 %v197_v5  ;;  %350 = vmatpush.bf16.msra.mxu1 %v197_v5 }
  0x35   :  { %499 = vmatpush.bf16.msra.mxu3 %v4827_v28 }
  0x36   :  { %432 = vmatpush.bf16.msra.mxu2 %v4835_v27 }
  0x38   :  { %255 = vmatpush.bf16.msra.mxu0 %v196_v8  ;;  %351 = vmatpush.bf16.msra.mxu1 %v196_v8 }
  0x39   :  { %500 = vmatpush.bf16.msra.mxu3 %v4826_v30 }
  0x3a   :  { %433 = vmatpush.bf16.msra.mxu2 %v4834_v29 }
  0x3c   :  { %256 = vmatpush.bf16.msra.mxu0 %v195_v11  ;;  %352 = vmatpush.bf16.msra.mxu1 %v195_v11 }
  0x3e   :  { %581 = vmatpush.bf16.msrb.mxu2 %v198_v3 }
  0x40   :  { %257 = vmatpush.bf16.msra.mxu0 %v194_v14  ;;  %353 = vmatpush.bf16.msra.mxu1 %v194_v14 }
  0x42   :  { %582 = vmatpush.bf16.msrb.mxu2 %v197_v5 }
  0x43   :  { %3949 = vmatmul.msk.bf16.vlgmr.msra.gmra.mxu0 %vm6828_vm0, %v4821_v15  ;;  %3984 = vmatmul.msk.bf16.vlgmr.msra.gmra.mxu1 %vm6828_vm0, %v4829_v16 }
  0x46   :  { %583 = vmatpush.bf16.msrb.mxu2 %v196_v8 }
  0x4a   :  { %584 = vmatpush.bf16.msrb.mxu2 %v195_v11 }
  0x4e   :  { %585 = vmatpush.bf16.msrb.mxu2 %v194_v14 }
  0x53   :  { %3950 = vmatmul.msk.bf16.gmra.mxu0 %vm6828_vm0, %v4822_v17  ;;  %3985 = vmatmul.msk.bf16.gmra.mxu1 %vm6828_vm0, %v4830_v18  ;;  %v4844_v17 = vld [vmem:[%s6839_s14 + $0x40] sm:$0xff] }
  0x54   :  { %662 = vmatpush.bf16.msrb.mxu3 %v4844_v17 }
  0x63   :  { %3951 = vmatmul.msk.bf16.gmra.mxu0 %vm6828_vm0, %v4823_v19  ;;  %3986 = vmatmul.msk.bf16.gmra.mxu1 %vm6828_vm0, %v4831_v20  ;;  %v4843_v20 = vld [vmem:[%s6839_s14 + $0x38] sm:$0xff] }
  0x64   :  { %663 = vmatpush.bf16.msrb.mxu3 %v4843_v20 }
  0x73   :  { %3952 = vmatmul.msk.bf16.gmra.mxu0 %vm6828_vm0, %v4824_v21  ;;  %3987 = vmatmul.msk.bf16.gmra.mxu1 %vm6828_vm0, %v4832_v22  ;;  %v4842_v22 = vld [vmem:[%s6839_s14 + $0x30] sm:$0xff] }
  0x74   :  { %664 = vmatpush.bf16.msrb.mxu3 %v4842_v22 }
  0x83   :  { %3953 = vmatmul.msk.bf16.gmra.mxu0 %vm6828_vm0, %v4825_v23  ;;  %3988 = vmatmul.msk.bf16.gmra.mxu1 %vm6828_vm0, %v4833_v24 }
  0xc0   :  { %v259_v31 = vpop.f32.mrf.mxu0  ;;  %v355_v32 = vpop.f32.mrf.mxu1 }
  0xc8   :  { %v261_v33 = vpop.f32.mrf.mxu0  ;;  %v357_v34 = vpop.f32.mrf.mxu1 }
  0xc9   :  { %v290_v35 = vpack.c.bf16 %v261_v33, %v259_v31  ;;  %v387_v36 = vpack.c.bf16 %v357_v34, %v355_v32 }
  0xcb   :  { %4007 = vmatmul.msk.bf16.vlgmr.msra.gmra.mxu2 %vm6827_vm1, %v387_v36  ;;  %4024 = vmatmul.msk.bf16.vlgmr.msra.gmra.mxu3 %vm6827_vm1, %v290_v35 }
  0xd0   :  { %v264_v37 = vpop.f32.mrf.mxu0  ;;  %v360_v38 = vpop.f32.mrf.mxu1 }
  0xd8   :  { %v266_v39 = vpop.f32.mrf.mxu0  ;;  %v362_v40 = vpop.f32.mrf.mxu1 }
  0xd9   :  { %v291_v41 = vpack.c.bf16 %v266_v39, %v264_v37  ;;  %v388_v42 = vpack.c.bf16 %v362_v40, %v360_v38 }
  0xdb   :  { %4008 = vmatmul.msk.bf16.gmra.mxu2 %vm6827_vm1, %v388_v42  ;;  %4025 = vmatmul.msk.bf16.gmra.mxu3 %vm6827_vm1, %v291_v41 }
  0xe0   :  { %v269_v43 = vpop.f32.mrf.mxu0  ;;  %v365_v44 = vpop.f32.mrf.mxu1 }
  0xe8   :  { %v271_v45 = vpop.f32.mrf.mxu0  ;;  %v367_v46 = vpop.f32.mrf.mxu1 }
  0xe9   :  { %v292_v47 = vpack.c.bf16 %v271_v45, %v269_v43  ;;  %v389_v48 = vpack.c.bf16 %v367_v46, %v365_v44  ;;  %v701_v44 = vlaneseq }
  0xeb   :  { %4009 = vmatmul.msk.bf16.gmra.mxu2 %vm6827_vm1, %v389_v48  ;;  %4026 = vmatmul.msk.bf16.gmra.mxu3 %vm6827_vm1, %v292_v47  ;;  %v5497_v45 = vshrl.u32 %v701_v44, 7 }
  0xed   :  { %6851 = vst [vmem:[#allocation28_spill] sm:$0xff] %v5497_v45  ;;  %v5500_v46 = vand.u32 65535, %v5497_v45  ;;  %v5503_v47 = vadd.s32 16, %v5497_v45  ;;  %v5506_v48 = vshrl.u32 %v5497_v45, 16  ;;  %v5580_v44 = vadd.s32 56, %v5497_v45 }
  0xef   :  { %6852 = vst [vmem:[#allocation29_spill] sm:$0xff] %v5500_v46 }
  0xf0   :  { %v274_v49 = vpop.f32.mrf.mxu0  ;;  %v370_v50 = vpop.f32.mrf.mxu1  ;;  %6853 = vst [vmem:[#allocation30_spill] sm:$0xff] %v5503_v47 }
  0xf1   :  { %6854 = vst [vmem:[#allocation31_spill] sm:$0xff] %v5506_v48 }
  0xf2   :  { %6863 = vst [vmem:[#allocation40_spill] sm:$0xff] %v5580_v44 }
  0xf8   :  { %v276_v51 = vpop.f32.mrf.mxu0  ;;  %v372_v52 = vpop.f32.mrf.mxu1 }
  0xf9   :  { %v293_v53 = vpack.c.bf16 %v276_v51, %v274_v49  ;;  %v390_v54 = vpack.c.bf16 %v372_v52, %v370_v50  ;;  %v5511_v50 = vadd.s32 8, %v5497_v45  ;;  %v719_v51 = vmul.u32 52428, %v5500_v46 }
  0xfa   :  { %v5515_v52 = vand.u32 65535, %v5503_v47 }
  0xfb   :  { %4010 = vmatmul.msk.bf16.gmra.mxu2 %vm6827_vm1, %v390_v54  ;;  %4027 = vmatmul.msk.bf16.gmra.mxu3 %vm6827_vm1, %v293_v53  ;;  %6856 = vst [vmem:[#allocation33_spill] sm:$0xff] %v5511_v50  ;;  %v720_v53 = vmul.u32 52429, %v5506_v48  ;;  %v718_v54 = vmul.u32 52429, %v5500_v46 }
  0xfc   :  { %6857 = vst [vmem:[#allocation34_spill] sm:$0xff] %v5515_v52 }
 0x100   :  { %v279_v55 = vpop.f32.mrf.mxu0  ;;  %v375_v56 = vpop.f32.mrf.mxu1 }
 0x108   :  { %v281_v57 = vpop.f32.mrf.mxu0  ;;  %v377_v58 = vpop.f32.mrf.mxu1 }
 0x109   :  { %v294_v59 = vpack.c.bf16 %v281_v57, %v279_v55  ;;  %v391_v60 = vpack.c.bf16 %v377_v58, %v375_v56  ;;  %v722_v55 = vshll.u32 %v719_v51, 16  ;;  %v5520_v56 = vand.u32 65535, %v5511_v50 }
 0x10a   :  { %v5523_v57 = vshrl.u32 %v5503_v47, 16  ;;  %v777_v58 = vmul.u32 52428, %v5515_v52 }
 0x10b   :  { %4011 = vmatmul.msk.bf16.gmra.mxu2 %vm6827_vm1, %v391_v60  ;;  %4028 = vmatmul.msk.bf16.gmra.mxu3 %vm6827_vm1, %v294_v59  ;;  %v724_v59 = vshll.u32 %v720_v53, 16  ;;  %vm726_vm2 = vc.u32 %v718_v54, %v722_v55  ;;  %v747_v17 = vmul.u32 52429, %v5520_v56 }
 0x11b   :  { %4059 = vmatmul.msk.bf16.vlgmr.msrb.gmra.mxu2 %vm6828_vm0, %v4837_v61  ;;  %v5527_v61 = vadd.s32 24, %v5497_v45 }
 0x11d   :  { %6858 = vst [vmem:[#allocation35_spill] sm:$0xff] %v5527_v61 }
 0x12b   :  { %4060 = vmatmul.msk.bf16.gmra.mxu2 %vm6828_vm0, %v4838_v62  ;;  %v728_v62 = vadd.s32 %v722_v55, %v718_v54  ;;  %v5585_v54 = vshrl.u32 %v720_v53, 16 }
 0x12d   :  { %vm730_vm3 = vc.u32 %v728_v62, %v724_v59 }
 0x13b   :  { %4061 = vmatmul.msk.bf16.gmra.mxu2 %vm6828_vm0, %v4839_v63  ;;  %v6799_v63 = vmul.u32 52428, %v5520_v56 }
 0x14b   :  { %4062 = vmatmul.msk.bf16.gmra.mxu2 %vm6828_vm0, %v4840_v0 }
 0x14e   :  { %v435_v1 = vpop.f32.mrf.mxu2  ;;  %v502_v2 = vpop.f32.mrf.mxu3 }
 0x14f   :  { %v5451_v3 = vadd.f32 %v502_v2, %v435_v1  ;;  %v721_v1 = vmul.u32 52428, %v5506_v48  ;;  %v776_v2 = vmul.u32 52429, %v5515_v52 }
 0x156   :  { %v5453_v4 = vpop.f32.mrf.mxu2  ;;  %v5455_v5 = vpop.f32.mrf.mxu3 }
 0x157   :  { %6840 = vst [vmem:[#allocation17_spill] sm:$0xff] %v5455_v5 }
 0x15b   :  { %4063 = vmatmul.msk.bf16.gmra.mxu2 %vm6828_vm0, %v4841_v6  ;;  %v6801_v6 = vmul.u32 52429, %v5523_v57 }
 0x15d   :  { %v782_v20 = vshll.u32 %v6801_v6, 16  ;;  %v919_v6 = vshrl.u32 %v5580_v44, 16 }
 0x15e   :  { %v440_v7 = vpop.f32.mrf.mxu2  ;;  %v507_v8 = vpop.f32.mrf.mxu3 }
 0x15f   :  { %v5461_v9 = vadd.f32 %v507_v8, %v440_v7  ;;  %v780_v7 = vshll.u32 %v777_v58, 16  ;;  %v6807_v8 = vmov 0  }
 0x161   :  { %v786_v22 = vadd.s32 %v780_v7, %v776_v2  ;;  %vm784_vm4 = vc.u32 %v776_v2, %v780_v7  ;;  %v5598_v2 = vadd.s32 48, %v5497_v45  ;;  %v5600_v7 = vshrl.u32 %v777_v58, 16 }
 0x162   :  { %v5617_v58 = vadd.s32 72, %v5497_v45 }
 0x163   :  { %vm788_vm6 = vc.u32 %v786_v22, %v782_v20  ;;  %6864 = vst [vmem:[#allocation41_spill] sm:$0xff] %v5598_v2  ;;  %v918_v20 = vand.u32 65535, %v5580_v44 }
 0x164   :  { %v5604_v53 = vsel %vm788_vm6, 1, %v6807_v8  ;;  %6866 = vst [vmem:[#allocation43_spill] sm:$0xff] %v5617_v58 }
 0x165   :  { %v5645_v52 = vmul.u32 52428, %v918_v20 }
 0x166   :  { %v5463_v10 = vpop.f32.mrf.mxu2  ;;  %v5465_v11 = vpop.f32.mrf.mxu3 }
 0x167   :  { %6841 = vst [vmem:[#allocation18_spill] sm:$0xff] %v5463_v10 }
 0x168   :  { %6842 = vst [vmem:[#allocation19_spill] sm:$0xff] %v5465_v11  ;;  %v924_v11 = vmul.u32 52428, %v919_v6 }
 0x16e   :  { %v445_v12 = vpop.f32.mrf.mxu2  ;;  %v512_v13 = vpop.f32.mrf.mxu3 }
 0x16f   :  { %v5467_v14 = vadd.f32 %v512_v13, %v445_v12  ;;  %v727_v12 = vsel %vm726_vm2, 1, %v6807_v8  ;;  %v5538_v13 = vand.u32 65535, %v5527_v61 }
 0x171   :  { %6843 = vst [vmem:[#allocation20_spill] sm:$0xff] %v5467_v14 }
 0x176   :  { %v5469_v15 = vpop.f32.mrf.mxu2  ;;  %v5471_v16 = vpop.f32.mrf.mxu3 }
 0x177   :  { %6844 = vst [vmem:[#allocation21_spill] sm:$0xff] %v5469_v15 }
 0x178   :  { %6845 = vst [vmem:[#allocation22_spill] sm:$0xff] %v5471_v16 }
 0x17e   :  { %v450_v18 = vpop.f32.mrf.mxu2  ;;  %v517_v19 = vpop.f32.mrf.mxu3 }
 0x17f   :  { %v5479_v21 = vadd.f32 %v517_v19, %v450_v18  ;;  %v5544_v18 = vshrl.u32 %v5511_v50, 16  ;;  %v729_v19 = vadd.s32 %v727_v12, %v721_v1 }
 0x181   :  { %6846 = vst [vmem:[#allocation23_spill] sm:$0xff] %v5479_v21 }
 0x186   :  { %v5484_v23 = vpop.f32.mrf.mxu2  ;;  %v5486_v24 = vpop.f32.mrf.mxu3 }
 0x187   :  { %6847 = vst [vmem:[#allocation24_spill] sm:$0xff] %v5484_v23 }
 0x188   :  { %6848 = vst [vmem:[#allocation25_spill] sm:$0xff] %v5486_v24 }
 0x18e   :  { %v455_v25 = vpop.f32.mrf.mxu2  ;;  %v522_v26 = vpop.f32.mrf.mxu3 }
 0x18f   :  { %v5488_v27 = vadd.f32 %v522_v26, %v455_v25  ;;  %v731_v25 = vsel %vm730_vm3, 1, %v6807_v8 }
 0x191   :  { %6849 = vst [vmem:[#allocation26_spill] sm:$0xff] %v5488_v27 }
 0x196   :  { %v5490_v28 = vpop.f32.mrf.mxu2  ;;  %v5508_v49 = vpop.f32.mrf.mxu3 }
 0x197   :  { %6850 = vst [vmem:[#allocation27_spill] sm:$0xff] %v5490_v28 }
 0x198   :  { %6855 = vst [vmem:[#allocation32_spill] sm:$0xff] %v5508_v49 }
 0x19e   :  { %v587_v29 = vpop.f32.mrf.mxu2 }
 0x1a6   :  { %v589_v30 = vpop.f32.mrf.mxu2 }
 0x1a7   :  { %v619_v31 = vpack.c.bf16 %v589_v30, %v587_v29  ;;  %v5552_v29 = vadd.s32 32, %v5497_v45  ;;  %v6800_v30 = vmul.u32 52428, %v5538_v13 }
 0x1a9   :  { %4082 = vmatmul.msk.bf16.vlgmr.msrb.gmra.mxu3 %vm6827_vm1, %v619_v31  ;;  %6861 = vst [vmem:[#allocation38_spill] sm:$0xff] %v5552_v29  ;;  %v5555_v31 = vshrl.u32 %v719_v51, 16  ;;  %v5583_v51 = vshrl.u32 %v5552_v29, 16 }
 0x1ab   :  { %v6867_v48 = vmul.u32 52429, %v5583_v51 }
 0x1ae   :  { %v592_v32 = vpop.f32.mrf.mxu2 }
 0x1b6   :  { %v594_v33 = vpop.f32.mrf.mxu2 }
 0x1b7   :  { %v620_v34 = vpack.c.bf16 %v594_v33, %v592_v32  ;;  %v6798_v32 = vmul.u32 52429, %v5544_v18  ;;  %v5559_v33 = vadd.s32 64, %v5497_v45 }
 0x1b9   :  { %4083 = vmatmul.msk.bf16.gmra.mxu3 %vm6827_vm1, %v620_v34  ;;  %v779_v34 = vmul.u32 52428, %v5523_v57  ;;  %v5589_v55 = vshll.u32 %v6798_v32, 16  ;;  %v947_v59 = vand.u32 65535, %v5559_v33 }
 0x1bb   :  { %v950_v46 = vmul.u32 52429, %v947_v59 }
 0x1be   :  { %v597_v35 = vpop.f32.mrf.mxu2 }
 0x1c6   :  { %v599_v36 = vpop.f32.mrf.mxu2 }
 0x1c7   :  { %v621_v37 = vpack.c.bf16 %v599_v36, %v597_v35  ;;  %v5563_v35 = vshrl.u32 %v5527_v61, 16  ;;  %v5565_v36 = vadd.s32 %v731_v25, %v729_v19 }
 0x1c9   :  { %4084 = vmatmul.msk.bf16.gmra.mxu3 %vm6827_vm1, %v621_v37  ;;  %v785_v37 = vsel %vm784_vm4, 1, %v6807_v8  ;;  %v6802_v62 = vmul.u32 52429, %v5563_v35 }
 0x1ce   :  { %v602_v38 = vpop.f32.mrf.mxu2 }
 0x1d6   :  { %v604_v39 = vpop.f32.mrf.mxu2 }
 0x1d7   :  { %v622_v40 = vpack.c.bf16 %v604_v39, %v602_v38  ;;  %v750_v38 = vmul.u32 52428, %v5544_v18 }
 0x1d9   :  { %4085 = vmatmul.msk.bf16.gmra.mxu3 %vm6827_vm1, %v622_v40  ;;  %v5571_v40 = vadd.s32 40, %v5497_v45 }
 0x1db   :  { %6862 = vst [vmem:[#allocation39_spill] sm:$0xff] %v5571_v40  ;;  %v5640_v22 = vshrl.u32 %v5571_v40, 16 }
 0x1dd   :  { %v866_v5 = vmul.u32 52428, %v5640_v22 }
 0x1de   :  { %v607_v41 = vpop.f32.mrf.mxu2 }
 0x1e6   :  { %v609_v42 = vpop.f32.mrf.mxu2 }
 0x1e7   :  { %v623_v43 = vpack.c.bf16 %v609_v42, %v607_v41  ;;  %v5574_v41 = vand.u32 65535, %v5552_v29  ;;  %v805_v42 = vmul.u32 52429, %v5538_v13 }
 0x1e9   :  { %4086 = vmatmul.msk.bf16.gmra.mxu3 %vm6827_vm1, %v623_v43  ;;  %v809_v43 = vshll.u32 %v6800_v30, 16  ;;  %v6811_v25 = vmul.u32 52428, %v5574_v41 }
 0x1eb   :  { %vm813_vm7 = vc.u32 %v805_v42, %v809_v43  ;;  %v5628_v32 = vadd.s32 %v809_v43, %v805_v42  ;;  %v977_v43 = vshrl.u32 %v5617_v58, 16 }
 0x1ec   :  { %v5634_v30 = vsel %vm813_vm7, 1, %v6807_v8 }
 0x1ed   :  { %v5656_v14 = vmul.u32 52429, %v977_v43  ;;  %v982_v47 = vmul.u32 52428, %v977_v43 }
 0x1ef   :  { %v985_v24 = vshll.u32 %v5656_v14, 16 }
 0x22c   :  { %v666_v60 = vpop.f32.mrf.mxu3 }
 0x22d   :  { %v5531_v0 = vadd.f32 %v666_v60, %v5451_v3  ;;  %v751_v3 = vshll.u32 %v6799_v63, 16  ;;  %v5592_v60 = vadd.s32 %v785_v37, %v779_v34  ;;  %v5610_v34 = vand.u32 65535, %v5571_v40 }
 0x22e   :  { %v948_v37 = vshrl.u32 %v5559_v33, 16  ;;  %v834_v63 = vmul.u32 52429, %v5574_v41  ;;  %v925_v40 = vshll.u32 %v5645_v52, 16 }
 0x22f   :  { %6859 = vst [vmem:[#allocation36_spill] sm:$0xff] %v5531_v0  ;;  %vm755_vm5 = vc.u32 %v747_v17, %v751_v3  ;;  %v5595_v1 = vadd.s32 %v751_v3, %v747_v17  ;;  %v838_v17 = vshll.u32 %v6811_v25, 16  ;;  %v863_v21 = vmul.u32 52429, %v5610_v34 }
 0x230   :  { %v756_v39 = vsel %vm755_vm5, 1, %v6807_v8  ;;  %v5649_v8 = vshll.u32 %v6867_v48, 16  ;;  %v5651_v0 = vmul.u32 52429, %v948_v37  ;;  %v5664_v48 = vmul.u32 52429, %v919_v6 }
 0x231   :  { %v5606_v12 = vadd.s32 %v756_v39, %v750_v38  ;;  %v5622_v38 = vmul.u32 52428, %v947_v59  ;;  %v5626_v39 = vshll.u32 %v6802_v62, 16  ;;  %v890_v62 = vshrl.u32 %v5598_v2, 16 }
 0x232   :  { %vm5666_vm8 = vc.u32 %v834_v63, %v838_v17  ;;  %v844_v44 = vadd.s32 %v838_v17, %v834_v63  ;;  %v6872_v63 = vmul.u32 52429, %v5640_v22  ;;  %vm759_vm3 = vc.u32 %v5595_v1, %v5589_v55 }
 0x233   :  { %v954_v25 = vshll.u32 %v5622_v38, 16  ;;  %v5675_v28 = vmul.u32 52429, %v890_v62  ;;  %vm817_vm11 = vc.u32 %v5628_v32, %v5626_v39  ;;  %v986_v32 = vshrl.u32 %v5656_v14, 16 }
 0x234   :  { %v5549_v26 = vpop.f32.mrf.mxu3  ;;  %v869_v17 = vshll.u32 %v6872_v63, 16  ;;  %vm846_vm7 = vc.u32 %v844_v44, %v5649_v8  ;;  %v6879_v44 = vmul.u32 52428, %v5538_v13  ;;  %v6883_v1 = vmul.u32 52428, %v5520_v56 }
 0x235   :  { %6860 = vst [vmem:[#allocation37_spill] sm:$0xff] %v5549_v26  ;;  %vm958_vm9 = vc.u32 %v950_v46, %v954_v25  ;;  %v960_v49 = vadd.s32 %v954_v25, %v950_v46  ;;  %v6875_v46 = vmov 0   ;;  %v898_v16 = vshll.u32 %v5675_v28, 16 }
 0x236   :  { %v959_v25 = vsel %vm958_vm9, 1, %v6875_v46  ;;  %v847_v59 = vsel %vm846_vm7, 1, %v6875_v46  ;;  %v760_v14 = vsel %vm759_vm3, 1, %v6875_v46 }
 0x23c   :  { %v671_v19 = vpop.f32.mrf.mxu3 }
 0x23d   :  { %v5614_v3 = vadd.f32 %v671_v19, %v5461_v9  ;;  %v976_v9 = vand.u32 65535, %v5617_v58  ;;  %v889_v19 = vand.u32 65535, %v5598_v2  ;;  %v921_v2 = vmul.u32 52429, %v918_v20 }
 0x23e   :  { %v927_v20 = vshll.u32 %v5664_v48, 16 }
 0x23f   :  { %6865 = vst [vmem:[#allocation42_spill] sm:$0xff] %v5614_v3  ;;  %v5654_v3 = vmul.u32 52428, %v976_v9  ;;  %v979_v26 = vmul.u32 52429, %v976_v9  ;;  %v5658_v42 = vmul.u32 52428, %v889_v19  ;;  %v6871_v9 = vmul.u32 52428, %v5610_v34 }
 0x240   :  { %v892_v45 = vmul.u32 52429, %v889_v19  ;;  %v953_v19 = vmul.u32 52428, %v948_v37  ;;  %vm929_vm13 = vc.u32 %v921_v2, %v925_v40 }
 0x241   :  { %v983_v27 = vshll.u32 %v5654_v3, 16  ;;  %v867_v61 = vshll.u32 %v6871_v9, 16  ;;  %v896_v29 = vshll.u32 %v5658_v42, 16  ;;  %v930_v58 = vsel %vm929_vm13, 1, %v6875_v46 }
 0x242   :  { %v961_v10 = vadd.s32 %v959_v25, %v953_v19  ;;  %v932_v6 = vadd.s32 %v930_v58, %v924_v11  ;;  %v984_v43 = vshrl.u32 %v5654_v3, 16 }
 0x243   :  { %vm987_vm10 = vc.u32 %v979_v26, %v983_v27  ;;  %v989_v23 = vadd.s32 %v983_v27, %v979_v26  ;;  %vm5684_vm12 = vc.u32 %v863_v21, %v867_v61  ;;  %v931_v27 = vadd.s32 %v925_v40, %v921_v2 }
 0x244   :  { %v5661_v50 = vpop.f32.mrf.mxu3  ;;  %v988_v26 = vsel %vm987_vm10, 1, %v6875_v46  ;;  %v873_v37 = vadd.s32 %v867_v61, %v863_v21  ;;  %vm900_vm2 = vc.u32 %v892_v45, %v896_v29  ;;  %v902_v15 = vadd.s32 %v896_v29, %v892_v45 }
 0x245   :  { %6868 = vst [vmem:[#allocation44_spill] sm:$0xff] %v5661_v50  ;;  %v956_v50 = vshll.u32 %v5651_v0, 16  ;;  %vm991_vm15 = vc.u32 %v989_v23, %v985_v24  ;;  %v990_v23 = vadd.s32 %v988_v26, %v982_v47  ;;  %v895_v24 = vmul.u32 52428, %v890_v62 }
 0x246   :  { %vm933_vm4 = vc.u32 %v931_v27, %v927_v20  ;;  %v992_v45 = vsel %vm991_vm15, 1, %v6875_v46  ;;  %v837_v61 = vmul.u32 52428, %v5583_v51  ;;  %vm875_vm5 = vc.u32 %v873_v37, %v869_v17 }
 0x247   :  { %vm962_vm14 = vc.u32 %v960_v49, %v956_v50  ;;  %v872_v49 = vsel %vm5684_vm12, 1, %v6875_v46  ;;  %v901_v50 = vsel %vm900_vm2, 1, %v6875_v46  ;;  %vm904_vm6 = vc.u32 %v902_v15, %v898_v16 }
 0x248   :  { %v963_v21 = vsel %vm962_vm14, 1, %v6875_v46  ;;  %v843_v29 = vsel %vm5666_vm8, 1, %v6875_v46  ;;  %v955_v40 = vshrl.u32 %v5622_v38, 16  ;;  %v934_v62 = vsel %vm933_vm4, 1, %v6875_v46 }
 0x249   :  { %v965_v47 = vadd.s32 %v963_v21, %v961_v10  ;;  %v874_v2 = vadd.s32 %v872_v49, %v866_v5  ;;  %v994_v19 = vadd.s32 %v992_v45, %v990_v23  ;;  %v903_v20 = vadd.s32 %v901_v50, %v895_v24 }
 0x24a   :  { %v876_v17 = vsel %vm875_vm5, 1, %v6875_v46  ;;  %v905_v11 = vsel %vm904_vm6, 1, %v6875_v46  ;;  %v791_v15 = vadd.s32 %v5604_v53, %v5592_v60  ;;  %v6876_v16 = vmul.u32 52428, %v5563_v35 }
 0x24b   :  { %v818_v5 = vsel %vm817_vm11, 1, %v6875_v46  ;;  %v926_v10 = vshrl.u32 %v5645_v52, 16  ;;  %v936_v3 = vadd.s32 %v934_v62, %v932_v6  ;;  %v845_v38 = vadd.s32 %v843_v29, %v837_v61 }
 0x24c   :  { %v5691_v63 = vpop.f32.mrf.mxu3  ;;  %v816_v58 = vadd.s32 %v5634_v30, %v6876_v16  ;;  %v957_v60 = vshrl.u32 %v5651_v0, 16  ;;  %v966_v53 = vadd.s32 %v965_v47, %v955_v40  ;;  %v6877_v30 = vmul.u32 52428, %v5610_v34 }
 0x24d   :  { %v878_v27 = vadd.s32 %v876_v17, %v874_v2  ;;  %v995_v39 = vadd.s32 %v994_v19, %v984_v43  ;;  %v897_v52 = vshrl.u32 %v5658_v42, 16  ;;  %v907_v26 = vadd.s32 %v905_v11, %v903_v20 }
 0x24e   :  { %v868_v25 = vshrl.u32 %v6877_v30, 16  ;;  %v6878_v37 = vmul.u32 52429, %v5523_v57  ;;  %v792_v8 = vadd.s32 %v791_v15, %v5600_v7  ;;  %v810_v21 = vshrl.u32 %v6879_v44, 16 }
 0x24f   :  { %v820_v0 = vadd.s32 %v818_v5, %v816_v58  ;;  %v928_v23 = vshrl.u32 %v5664_v48, 16  ;;  %v937_v24 = vadd.s32 %v936_v3, %v926_v10  ;;  %v6880_v45 = vmul.u32 52428, %v5574_v41 }
 0x250   :  { %v783_v49 = vshrl.u32 %v6878_v37, 16  ;;  %v967_v42 = vadd.s32 %v966_v53, %v957_v60  ;;  %v849_v61 = vadd.s32 %v847_v59, %v845_v38  ;;  %v6881_v6 = vmul.u32 52429, %v5640_v22 }
 0x251   :  { %v839_v50 = vshrl.u32 %v6880_v45, 16  ;;  %v879_v29 = vadd.s32 %v878_v27, %v868_v25  ;;  %v996_v40 = vadd.s32 %v995_v39, %v986_v32  ;;  %v899_v47 = vshrl.u32 %v5675_v28, 16 }
 0x252   :  { %v870_v7 = vshrl.u32 %v6881_v6, 16  ;;  %v908_v62 = vadd.s32 %v907_v26, %v897_v52  ;;  %v734_v48 = vadd.s32 %v5565_v36, %v5555_v31  ;;  %v793_v2 = vadd.s32 %v792_v8, %v783_v49  ;;  %v6888_v6 = vld [vmem:[#allocation18_spill] sm:$0xff] }
 0x253   :  { %v6882_v43 = vmul.u32 52429, %v5563_v35  ;;  %v821_v20 = vadd.s32 %v820_v0, %v810_v21  ;;  %v938_v55 = vadd.s32 %v937_v24, %v928_v23  ;;  %v752_v17 = vshrl.u32 %v6883_v1, 16  ;;  %v6886_v24 = vld [vmem:[#allocation17_spill] sm:$0xff] }
 0x254   :  { %v5726_v9 = vpop.f32.mrf.mxu3  ;;  %v762_v11 = vadd.s32 %v760_v14, %v5606_v12  ;;  %v968_v16 = vshrl.u32 %v967_v42, 5  ;;  %v6884_v28 = vmul.u32 52429, %v5583_v51  ;;  %v850_v5 = vadd.s32 %v849_v61, %v839_v50  ;;  %v6887_v50 = vld [vmem:[#allocation43_spill] sm:$0xff] }
 0x255   :  { %v812_v19 = vshrl.u32 %v6882_v43, 16  ;;  %v880_v10 = vadd.s32 %v879_v29, %v870_v7  ;;  %v997_v31 = vshrl.u32 %v996_v40, 5  ;;  %v909_v36 = vadd.s32 %v908_v62, %v899_v47  ;;  %v6889_v7 = vld [vmem:[#allocation19_spill] sm:$0xff]  ;;  %v6890_v40 = vld [vmem:[#allocation21_spill] sm:$0xff]  ;;  %v6891_v47 = vld [vmem:[#allocation22_spill] sm:$0xff] }
 0x256   :  { %v841_v58 = vshrl.u32 %v6884_v28, 16  ;;  %v735_v3 = vadd.s32 %v734_v48, %v5585_v54  ;;  %v794_v38 = vshrl.u32 %v793_v2, 5  ;;  %v939_v60 = vshrl.u32 %v938_v55, 5  ;;  %v6892_v48 = vld [vmem:[#allocation30_spill] sm:$0xff]  ;;  %v6893_v43 = vld [vmem:[#allocation24_spill] sm:$0xff] }
 0x257   :  { %v822_v59 = vadd.s32 %v821_v20, %v812_v19  ;;  %v6885_v53 = vmul.u32 52429, %v5544_v18  ;;  %v763_v25 = vadd.s32 %v762_v11, %v752_v17  ;;  %v969_v12 = vmul.u32 40, %v968_v16  ;;  %v6894_v19 = vld [vmem:[#allocation25_spill] sm:$0xff]  ;;  %v6896_v55 = vld [vmem:[#allocation32_spill] sm:$0xff] }
 0x258   :  { %v851_v27 = vadd.s32 %v850_v5, %v841_v58  ;;  %v881_v32 = vshrl.u32 %v880_v10, 5  ;;  %v998_v39 = vmul.u32 40, %v997_v31  ;;  %v910_v52 = vshrl.u32 %v909_v36, 5  ;;  %v6897_v17 = vld [vmem:[#allocation40_spill] sm:$0xff]  ;;  %v6898_v58 = vld [vmem:[#allocation39_spill] sm:$0xff]  ;;  %v6899_v10 = vld [vmem:[#allocation41_spill] sm:$0xff] }
 0x259   :  { %v754_v30 = vshrl.u32 %v6885_v53, 16  ;;  %v736_v26 = vshrl.u32 %v735_v3, 5  ;;  %v795_v37 = vmul.u32 40, %v794_v38  ;;  %v823_v49 = vshrl.u32 %v822_v59, 5  ;;  %v6900_v36 = vld [vmem:[#allocation28_spill] sm:$0xff]  ;;  %v6901_v59 = vld [vmem:[#allocation35_spill] sm:$0xff] }
 0x25a   :  { %v940_v8 = vmul.u32 40, %v939_v60  ;;  %v970_v54 = vsub.s32 %v5559_v33, %v969_v12  ;;  %v852_v0 = vshrl.u32 %v851_v27, 5  ;;  %v882_v23 = vmul.u32 40, %v881_v32  ;;  %v6904_v12 = vld [vmem:[#allocation38_spill] sm:$0xff] }
 0x25b   :  { %v764_v44 = vadd.s32 %v763_v25, %v754_v30  ;;  %v5765_v45 = vadd.f32 %v6886_v24, %v5453_v4  ;;  %v999_v14 = vsub.s32 %v6887_v50, %v998_v39  ;;  %v911_v42 = vmul.u32 40, %v910_v52  ;;  %v6895_v4 = vld [vmem:[#allocation27_spill] sm:$0xff] }
 0x25c   :  { %v5755_v15 = vpop.f32.mrf.mxu3  ;;  %v737_v61 = vmul.u32 40, %v736_v26  ;;  %v5770_v29 = vadd.f32 %v6889_v7, %v6888_v6  ;;  %v5774_v62 = vadd.f32 %v6891_v47, %v6890_v40  ;;  %v796_v33 = vsub.s32 %v6892_v48, %v795_v37  ;;  %v6914_v6 = vld [vmem:[#allocation33_spill] sm:$0xff] }
 0x25d   :  { %v824_v2 = vmul.u32 40, %v823_v49  ;;  %v520_v20 = vadd.f32 %v6894_v19, %v6893_v43  ;;  %v5781_v1 = vadd.f32 %v6896_v55, %v6895_v4  ;;  %v941_v11 = vsub.s32 %v6897_v17, %v940_v8  ;;  %v6918_v19 = vld [vmem:[#allocation23_spill] sm:$0xff]  ;;  %v6929_v43 = vld [vmem:[#allocation42_spill] sm:$0xff] }
 0x25e   :  { %v765_v16 = vshrl.u32 %v764_v44, 5  ;;  %vm1010_vm8 = vcmp.ne.s32.totalorder %v970_v54, 0  ;;  %vm1020_vm9 = vcmp.lt.s32.totalorder %v970_v54, 0  ;;  %v853_v28 = vmul.u32 40, %v852_v0  ;;  %v6909_v44 = vld [vmem:[#allocation26_spill] sm:$0xff] }
 0x25f   :  { %v883_v5 = vsub.s32 %v6898_v58, %v882_v23  ;;  %vm1011_vm10 = vcmp.ne.s32.totalorder %v999_v14, 0  ;;  %vm1021_vm11 = vcmp.lt.s32.totalorder %v999_v14, 0  ;;  %v912_v31 = vsub.s32 %v6899_v10, %v911_v42  ;;  %vm1030_vm14 = vmand %vm1020_vm9, %vm1010_vm8 }
 0x260   :  { %v5787_v3 = vsub.s32 %v6900_v36, %v737_v61  ;;  %v1040_v38 = vadd.s32 40, %v970_v54  ;;  %v825_v60 = vsub.s32 %v6901_v59, %v824_v2  ;;  %vm1004_vm12 = vcmp.ne.s32.totalorder %v796_v33, 0  ;;  %vm5790_vm3 = vmand %vm1021_vm11, %vm1011_vm10 }
 0x261   :  { %vm1014_vm13 = vcmp.lt.s32.totalorder %v796_v33, 0  ;;  %v1041_v53 = vadd.s32 40, %v999_v14  ;;  %vm1009_vm15 = vcmp.ne.s32.totalorder %v941_v11, 0  ;;  %vm1019_vm2 = vcmp.lt.s32.totalorder %v941_v11, 0 }
 0x262   :  { %v854_v27 = vsub.s32 %v6904_v12, %v853_v28  ;;  %vm1007_vm4 = vcmp.ne.s32.totalorder %v883_v5, 0  ;;  %vm1017_vm5 = vcmp.lt.s32.totalorder %v883_v5, 0  ;;  %v766_v32 = vmul.u32 40, %v765_v16  ;;  %vm5796_vm1 = vmand %vm1014_vm13, %vm1004_vm12 }
 0x263   :  { %vm1008_vm6 = vcmp.ne.s32.totalorder %v912_v31, 0  ;;  %vm1018_vm7 = vcmp.lt.s32.totalorder %v912_v31, 0  ;;  %v1039_v39 = vadd.s32 40, %v941_v11  ;;  %v5801_v26 = vadd.s32 40, %v5787_v3  ;;  %vm5803_vm8 = vmand %vm1019_vm2, %vm1009_vm15 }
 0x264   :  { %v683_v21 = vpop.f32.mrf.mxu3  ;;  %v1050_v37 = vsel %vm1030_vm14, %v1040_v38, %v970_v54  ;;  %vm1005_vm9 = vcmp.ne.s32.totalorder %v825_v60, 0  ;;  %vm1015_vm10 = vcmp.lt.s32.totalorder %v825_v60, 0  ;;  %v1034_v8 = vadd.s32 40, %v796_v33  ;;  %vm5812_vm11 = vmand %vm1017_vm5, %vm1007_vm4 }
 0x265   :  { %v1051_v23 = vsel %vm5790_vm3, %v1041_v53, %v999_v14  ;;  %v1038_v24 = vadd.s32 40, %v912_v31  ;;  %v1037_v54 = vadd.s32 40, %v883_v5  ;;  %vm5817_vm12 = vmand %vm1018_vm7, %vm1008_vm6  ;;  %vm1006_vm13 = vcmp.ne.s32.totalorder %v854_v27, 0  ;;  %v5827_v14 = vld [vmem:[%s6915_s4] ss:$0 sm:$0xff] }
 0x266   :  { %vm1016_vm14 = vcmp.lt.s32.totalorder %v854_v27, 0  ;;  %v1035_v61 = vadd.s32 40, %v825_v60  ;;  %v5822_v7 = vsub.s32 %v6914_v6, %v766_v32  ;;  %v698_v40 = vadd.f32 %v683_v21, %v520_v20  ;;  %vm5835_vm7 = vmand %vm1015_vm10, %vm1005_vm9 }
 0x267   :  { %vm1060_vm15 = vcmp.ge.s32.totalorder %v1050_v37, 1  ;;  %vm1070_vm2 = vcmp.le.s32.totalorder %v1050_v37, 32  ;;  %v1049_v47 = vsel %vm5803_vm8, %v1039_v39, %v941_v11  ;;  %vm1002_vm3 = vcmp.ne.s32.totalorder %v5787_v3, 0  ;;  %vm1026_vm8 = vmand %vm1016_vm14, %vm1006_vm13 }
 0x268   :  { %vm1061_vm5 = vcmp.ge.s32.totalorder %v1051_v23, 1  ;;  %vm1071_vm6 = vcmp.le.s32.totalorder %v1051_v23, 32  ;;  %v1036_v2 = vadd.s32 40, %v854_v27  ;;  %v5841_v21 = vsel %vm5796_vm1, %v1034_v8, %v796_v33  ;;  %vm5854_vm9 = vmand %vm1060_vm15, %vm1070_vm2  ;;  %v6925_v23 = vld [vmem:[#allocation37_spill] sm:$0xff] }
 0x269   :  { %v697_v20 = vadd.f32 %v5755_v15, %v6918_v19  ;;  %v1048_v55 = vsel %vm5817_vm12, %v1038_v24, %v912_v31  ;;  %v1047_v17 = vsel %vm5812_vm11, %v1037_v54, %v883_v5  ;;  %vm1059_vm1 = vcmp.ge.s32.totalorder %v1049_v47, 1  ;;  %vm1081_vm11 = vmand %vm1061_vm5, %vm1071_vm6  ;;  %v6921_v31 = vld [vmem:[#allocation20_spill] sm:$0xff] }
 0x26a   :  { %vm1069_vm10 = vcmp.le.s32.totalorder %v1049_v47, 32  ;;  %vm1003_vm0 = vcmp.ne.s32.totalorder %v5822_v7, 0  ;;  %vm1013_vm4 = vcmp.lt.s32.totalorder %v5822_v7, 0  ;;  %v696_v15 = vadd.f32 %v5726_v9, %v5774_v62 }
 0x26b   :  { %v1110_v16 = vadd.f32 %v5827_v14, %v698_v40  ;;  %v1045_v5 = vsel %vm5835_vm7, %v1035_v61, %v825_v60  ;;  %vm1058_vm12 = vcmp.ge.s32.totalorder %v1048_v55, 1  ;;  %vm1068_vm13 = vcmp.le.s32.totalorder %v1048_v55, 32  ;;  %vm1079_vm15 = vmand %vm1059_vm1, %vm1069_vm10 }
 0x26c   :  { %v686_v30 = vpop.f32.mrf.mxu3  ;;  %v1046_v10 = vsel %vm1026_vm8, %v1036_v2, %v854_v27  ;;  %vm1057_vm14 = vcmp.ge.s32.totalorder %v1047_v17, 1  ;;  %v695_v38 = vadd.f32 %v5691_v63, %v6921_v31  ;;  %v1109_v53 = vadd.f32 %v5827_v14, %v697_v20  ;;  %vm1078_vm5 = vmand %vm1058_vm12, %vm1068_vm13 }
 0x26d   :  { %v699_v0 = vadd.f32 %v686_v30, %v6909_v44  ;;  %v5189_v25 = vmov 0.0   ;;  %vm1067_vm2 = vcmp.le.s32.totalorder %v1047_v17, 32  ;;  %v1108_v63 = vadd.f32 %v5827_v14, %v696_v15 }
 0x26e   :  { %v4095_v60 = vsel %vm5854_vm9, 1.0, %v5189_v25  ;;  %v4096_v27 = vsel %vm1081_vm11, 1.0, %v5189_v25  ;;  %v1120_v32 = vmax.f32 %v1110_v16, 0.0  ;;  %v1033_v52 = vadd.s32 40, %v5822_v7  ;;  %vm5889_vm9 = vmand %vm1013_vm4, %vm1003_vm0 }
 0x26f   :  { %v1111_v4 = vadd.f32 %v5827_v14, %v699_v0  ;;  %v4094_v37 = vsel %vm1079_vm15, 1.0, %v5189_v25  ;;  %vm1056_vm6 = vcmp.ge.s32.totalorder %v1046_v10, 1  ;;  %vm1066_vm7 = vcmp.le.s32.totalorder %v1046_v10, 32  ;;  %vm1077_vm1 = vmand %vm1057_vm14, %vm1067_vm2 }
 0x270   :  { %vm1055_vm8 = vcmp.ge.s32.totalorder %v1045_v5, 1  ;;  %v1107_v49 = vadd.f32 %v5827_v14, %v695_v38  ;;  %v1119_v8 = vmax.f32 %v1109_v53, 0.0  ;;  %v692_v24 = vadd.f32 %v6925_v23, %v5765_v45  ;;  %vm1076_vm11 = vmand %vm1056_vm6, %vm1066_vm7  ;;  %v4852_v23 = vld [vmem:[%s6779_s15 + $0x8] sm:$0xff] }
 0x271   :  { %v1121_v9 = vmax.f32 %v1111_v4, 0.0  ;;  %v4093_v54 = vsel %vm1078_vm5, 1.0, %v5189_v25  ;;  %vm1065_vm10 = vcmp.le.s32.totalorder %v1045_v5, 32  ;;  %vm6926_vm0 = vcmp.lt.s32.totalorder %v5787_v3, 0 }
 0x272   :  { %vm5904_vm4 = vmand %vm6926_vm0, %vm1002_vm3  ;;  %v1118_v61 = vmax.f32 %v1108_v63, 0.0  ;;  %v1130_v47 = vmul.f32 %v4094_v37, %v1120_v32  ;;  %v1043_v45 = vsel %vm5889_vm9, %v1033_v52, %v5822_v7  ;;  %v4092_v2 = vsel %vm1077_vm1, 1.0, %v5189_v25  ;;  %v4845_v63 = vld [vmem:[%s6775_s11] sm:$0xff]  ;;  %v4848_v32 = vld [vmem:[%s6775_s11 + $0x18] sm:$0xff] }
 0x273   :  { %v1131_v44 = vmul.f32 %v4095_v60, %v1121_v9  ;;  %vm1054_vm12 = vcmp.ge.s32.totalorder %v5841_v21, 1  ;;  %vm1064_vm13 = vcmp.le.s32.totalorder %v5841_v21, 32  ;;  %v1105_v19 = vadd.f32 %v5827_v14, %v6929_v43  ;;  %vm1075_vm3 = vmand %vm1055_vm8, %vm1065_vm10  ;;  %v4858_v52 = vld [vmem:[%s6779_s15 + $0x38] sm:$0xff]  ;;  %v4846_v37 = vld [vmem:[%s6775_s11 + $0x8] sm:$0xff] }
 0x274   :  { %v688_v11 = vpop.f32.mrf.mxu3  ;;  %v1117_v20 = vmax.f32 %v1107_v49, 0.0  ;;  %v1129_v4 = vmul.f32 %v4093_v54, %v1119_v8  ;;  %v1042_v7 = vsel %vm5904_vm4, %v5801_v26, %v5787_v3  ;;  %v4091_v55 = vsel %vm1076_vm11, 1.0, %v5189_v25  ;;  %vm1074_vm2 = vmand %vm1054_vm12, %vm1064_vm13  ;;  %v4847_v49 = vld [vmem:[%s6775_s11 + $0x10] sm:$0xff]  ;;  %v4850_v8 = vld [vmem:[%s6775_s11 + $0x28] sm:$0xff] }
 0x275   :  { %v700_v28 = vadd.f32 %v688_v11, %v5781_v1  ;;  %v6922_v1 = vld [vmem:[#allocation44_spill] sm:$0xff]  ;;  %vm1053_vm14 = vcmp.ge.s32.totalorder %v1043_v45, 1  ;;  %vm1063_vm15 = vcmp.le.s32.totalorder %v1043_v45, 32  ;;  %v1104_v17 = vadd.f32 %v5827_v14, %v692_v24 }
 0x276   :  { %v694_v30 = vadd.f32 %v6922_v1, %v5770_v29  ;;  %v1136_v33 = vpack.c.bf16 %v1130_v47, %v1129_v4  ;;  %v1128_v15 = vmul.f32 %v4092_v2, %v1118_v61  ;;  %v4090_v16 = vsel %vm1075_vm3, 1.0, %v5189_v25  ;;  %vm1073_vm7 = vmand %vm1053_vm14, %vm1063_vm15  ;;  %v4849_v29 = vld [vmem:[%s6775_s11 + $0x20] sm:$0xff]  ;;  %v4856_v24 = vld [vmem:[%s6779_s15 + $0x28] sm:$0xff] }
 0x277   :  { %v1112_v62 = vadd.f32 %v5827_v14, %v700_v28  ;;  %vm1052_vm5 = vcmp.ge.s32.totalorder %v1042_v7, 1  ;;  %vm1062_vm6 = vcmp.le.s32.totalorder %v1042_v7, 32  ;;  %v6930_v28 = vld [vmem:[#allocation36_spill] sm:$0xff]  ;;  %v1115_v26 = vmax.f32 %v1105_v19, 0.0 }
 0x278   :  { %v1106_v50 = vadd.f32 %v5827_v14, %v694_v30  ;;  %v1103_v3 = vadd.f32 %v5827_v14, %v6930_v28  ;;  %v1127_v5 = vmul.f32 %v4091_v55, %v1117_v20  ;;  %v4089_v10 = vsel %vm1074_vm2, 1.0, %v5189_v25  ;;  %vm1072_vm8 = vmand %vm1052_vm5, %vm1062_vm6  ;;  %v4855_v54 = vld [vmem:[%s6779_s15 + $0x20] sm:$0xff] }
 0x279   :  { %v1122_v39 = vmax.f32 %v1112_v62, 0.0  ;;  %v1114_v31 = vmax.f32 %v1104_v17, 0.0  ;;  %v4088_v21 = vsel %vm1073_vm7, 1.0, %v5189_v25  ;;  %v1125_v62 = vmul.f32 %v4089_v10, %v1115_v26 }
 0x27a   :  { %v1116_v11 = vmax.f32 %v1106_v50, 0.0  ;;  %v1135_v38 = vpack.c.bf16 %v1128_v15, %v1127_v5  ;;  %v1113_v9 = vmax.f32 %v1103_v3, 0.0  ;;  %v4087_v14 = vsel %vm1072_vm8, 1.0, %v5189_v25  ;;  %v4851_v50 = vld [vmem:[%s6779_s15] sm:$0xff] }
 0x27b   :  { %v1132_v0 = vmul.f32 %v4096_v27, %v1122_v39  ;;  %v1124_v30 = vmul.f32 %v4088_v21, %v1114_v31  ;;  %vm6931_vm9 = vcmask 654336   ;;  %v4854_v39 = vld [vmem:[%s6779_s15 + $0x18] sm:$0xff]  ;;  %vm1288_vm12 = vcmask 523264  }
 0x27c   :  { %v1126_v53 = vmul.f32 %v4090_v16, %v1116_v11  ;;  %v1123_v60 = vmul.f32 %v4087_v14, %v1113_v9  ;;  %vm6932_vm1 = vmmov %vm6931_vm9  ;;  %vm6937_vm13 = vcmask 392192  }
 0x27d   :  { %v1137_v40 = vpack.c.bf16 %v1132_v0, %v1131_v44  ;;  %vm6933_vm10 = vmmov %vm6932_vm1  ;;  %v4853_v44 = vld [vmem:[%s6779_s15 + $0x10] sm:$0xff] }
 0x27e   :  { %v1134_v1 = vpack.c.bf16 %v1126_v53, %v1125_v62  ;;  %v1133_v27 = vpack.c.bf16 %v1124_v30, %v1123_v60  ;;  %vm6934_vm0 = vmmov %vm6932_vm1  ;;  %v4857_v0 = vld [vmem:[%s6779_s15 + $0x30] sm:$0xff] }
 0x27f   :  { %1171 = vmatpush.bf16.msrb.mxu0 %v1137_v40  ;;  %1226 = vmatpush.bf16.msrb.mxu1 %v1137_v40  ;;  %vm6935_vm4 = vmmov %vm6934_vm0 }
 0x280   :  { %vm6936_vm11 = vmmov %vm6934_vm0 }
 0x281   :  { %vm6938_vm3 = vmmov %vm6937_vm13 }
 0x282   :  { %vm6939_vm14 = vmmov %vm6938_vm3 }
 0x283   :  { %1172 = vmatpush.bf16.msrb.mxu0 %v1136_v33  ;;  %1227 = vmatpush.bf16.msrb.mxu1 %v1136_v33  ;;  %vm6940_vm15 = vmmov %vm6938_vm3 }
 0x284   :  { %vm6941_vm2 = vmmov %vm6938_vm3 }
 0x285   :  { %vm6942_vm5 = vmmov %vm6941_vm2 }
 0x286   :  { %vm6943_vm6 = vmmov %vm6941_vm2 }
 0x287   :  { %1173 = vmatpush.bf16.msrb.mxu0 %v1135_v38  ;;  %1228 = vmatpush.bf16.msrb.mxu1 %v1135_v38  ;;  %vm6944_vm7 = vmmov %vm6941_vm2 }
 0x288   :  { %vm6945_vm8 = vmmov %vm6941_vm2 }
 0x28b   :  { %1174 = vmatpush.bf16.msrb.mxu0 %v1134_v1  ;;  %1229 = vmatpush.bf16.msrb.mxu1 %v1134_v1 }
 0x28f   :  { %1175 = vmatpush.bf16.msrb.mxu0 %v1133_v27  ;;  %1230 = vmatpush.bf16.msrb.mxu1 %v1133_v27 }
 0x292   :  { %4109 = vmatmul.msk.bf16.vlgmr.msrb.gmra.mxu0 %vm6931_vm9, %v4845_v63  ;;  %4130 = vmatmul.msk.bf16.vlgmr.msrb.gmra.mxu1 %vm6932_vm1, %v4848_v32  ;;  %vm1525_vm9 = vcmask 261120  }
 0x293   :  { %1302 = vmatpush.bf16.msra.mxu0 %v4854_v39  ;;  %1359 = vmatpush.bf16.msra.mxu1 %v4858_v52 }
 0x297   :  { %1303 = vmatpush.bf16.msra.mxu0 %v4853_v44  ;;  %1360 = vmatpush.bf16.msra.mxu1 %v4857_v0  ;;  %v4859_v0 = vld [vmem:[%s6783_s19] sm:$0xff] }
 0x29b   :  { %1304 = vmatpush.bf16.msra.mxu0 %v4852_v23  ;;  %1361 = vmatpush.bf16.msra.mxu1 %v4856_v24  ;;  %v4864_v23 = vld [vmem:[%s6783_s19 + $0x18] sm:$0xff]  ;;  %v4860_v24 = vld [vmem:[%s6783_s19 + $0x8] sm:$0xff] }
 0x29f   :  { %1305 = vmatpush.bf16.msra.mxu0 %v4851_v50  ;;  %1362 = vmatpush.bf16.msra.mxu1 %v4855_v54  ;;  %v4865_v50 = vld [vmem:[%s6783_s19 + $0x20] sm:$0xff]  ;;  %v4861_v54 = vld [vmem:[%s6783_s19 + $0x10] sm:$0xff] }
 0x2a2   :  { %4110 = vmatmul.msk.bf16.gmra.mxu0 %vm6933_vm10, %v4846_v37  ;;  %4131 = vmatmul.msk.bf16.gmra.mxu1 %vm6934_vm0, %v4849_v29 }
 0x2b2   :  { %4111 = vmatmul.msk.bf16.gmra.mxu0 %vm6935_vm4, %v4847_v49  ;;  %4132 = vmatmul.msk.bf16.gmra.mxu1 %vm6936_vm11, %v4850_v8 }
 0x30f   :  { %v1177_v42 = vpop.f32.mrf.mxu0  ;;  %v1232_v61 = vpop.f32.mrf.mxu1 }
 0x310   :  { %v1247_v45 = vmax.f32 %v1177_v42, %v1232_v61  ;;  %v4866_v42 = vld [vmem:[%s6783_s19 + $0x28] sm:$0xff]  ;;  %v4869_v61 = vld [vmem:[%s6783_s19 + $0x30] sm:$0xff] }
 0x317   :  { %v1179_v40 = vpop.f32.mrf.mxu0  ;;  %v1234_v47 = vpop.f32.mrf.mxu1 }
 0x318   :  { %v1248_v2 = vmax.f32 %v1179_v40, %v1234_v47  ;;  %v4870_v40 = vld [vmem:[%s6783_s19 + $0x38] sm:$0xff]  ;;  %v4871_v47 = vld [vmem:[%s6783_s19 + $0x40] sm:$0xff] }
 0x31a   :  { %v1253_v43 = vpack.c.bf16 %v1248_v2, %v1247_v45  ;;  %v4868_v45 = vld [vmem:[%s6946_s21 + $0x18] sm:$0xff]  ;;  %v4863_v2 = vld [vmem:[%s6946_s21 + $0x8] sm:$0xff] }
 0x31b   :  { %1541 = vmatpush.bf16.msrb.mxu0 %v4868_v45  ;;  %1586 = vmatpush.bf16.msrb.mxu1 %v4863_v2  ;;  %v6948_v45 = vld [vmem:[#allocation31_spill] sm:$0xff] }
 0x31c   :  { %4149 = vmatmul.msk.bf16.vlgmr.msra.gmra.mxu0 %vm1288_vm12, %v1253_v43  ;;  %4176 = vmatmul.msk.bf16.vlgmr.msra.gmra.mxu1 %vm1288_vm12, %v1253_v43  ;;  %v4867_v43 = vld [vmem:[%s6946_s21 + $0x10] sm:$0xff]  ;;  %v1726_v2 = vmul.u32 43691, %v6948_v45 }
 0x31f   :  { %v1182_v19 = vpop.f32.mrf.mxu0  ;;  %v1237_v20 = vpop.f32.mrf.mxu1  ;;  %1542 = vmatpush.bf16.msrb.mxu0 %v4867_v43  ;;  %v1727_v43 = vmul.u32 43690, %v6948_v45 }
 0x320   :  { %v1249_v55 = vmax.f32 %v1182_v19, %v1237_v20  ;;  %v4862_v19 = vld [vmem:[%s6946_s21] sm:$0xff] }
 0x321   :  { %1587 = vmatpush.bf16.msrb.mxu1 %v4862_v19 }
 0x327   :  { %v1184_v4 = vpop.f32.mrf.mxu0  ;;  %v1239_v7 = vpop.f32.mrf.mxu1 }
 0x328   :  { %v1250_v17 = vmax.f32 %v1184_v4, %v1239_v7 }
 0x32a   :  { %v1254_v11 = vpack.c.bf16 %v1250_v17, %v1249_v55 }
 0x32c   :  { %4150 = vmatmul.msk.bf16.gmra.mxu0 %vm1288_vm12, %v1254_v11  ;;  %4177 = vmatmul.msk.bf16.gmra.mxu1 %vm1288_vm12, %v1254_v11 }
 0x32f   :  { %v1187_v33 = vpop.f32.mrf.mxu0  ;;  %v1242_v15 = vpop.f32.mrf.mxu1 }
 0x330   :  { %v1251_v3 = vmax.f32 %v1187_v33, %v1242_v15 }
 0x337   :  { %v1189_v16 = vpop.f32.mrf.mxu0  ;;  %v1244_v28 = vpop.f32.mrf.mxu1 }
 0x338   :  { %v1252_v26 = vmax.f32 %v1189_v16, %v1244_v28  ;;  %v4873_v16 = vld [vmem:[%s6946_s21 + $0x28] sm:$0xff] }
 0x33a   :  { %v1255_v5 = vpack.c.bf16 %v1252_v26, %v1251_v3 }
 0x33c   :  { %4151 = vmatmul.msk.bf16.gmra.mxu0 %vm1288_vm12, %v1255_v5  ;;  %4178 = vmatmul.msk.bf16.gmra.mxu1 %vm1288_vm12, %v1255_v5 }
 0x399   :  { %v1307_v10 = vpop.f32.mrf.mxu0  ;;  %v1364_v31 = vpop.f32.mrf.mxu1 }
 0x39a   :  { %v1379_v8 = vmax.f32 %v1307_v10, %v1364_v31  ;;  %v4872_v10 = vld [vmem:[%s6946_s21 + $0x20] sm:$0xff] }
 0x3a1   :  { %v1309_v38 = vpop.f32.mrf.mxu0  ;;  %v1366_v53 = vpop.f32.mrf.mxu1 }
 0x3a2   :  { %v1380_v29 = vmax.f32 %v1309_v38, %v1366_v53 }
 0x3a4   :  { %v1386_v44 = vpack.c.bf16 %v1380_v29, %v1379_v8 }
 0x3a9   :  { %v1312_v21 = vpop.f32.mrf.mxu0  ;;  %v1369_v9 = vpop.f32.mrf.mxu1 }
 0x3aa   :  { %v1381_v37 = vmax.f32 %v1312_v21, %v1369_v9 }
 0x3b1   :  { %v1314_v62 = vpop.f32.mrf.mxu0  ;;  %v1371_v14 = vpop.f32.mrf.mxu1 }
 0x3b2   :  { %v1382_v39 = vmax.f32 %v1314_v62, %v1371_v14 }
 0x3b4   :  { %v1387_v49 = vpack.c.bf16 %v1382_v39, %v1381_v37 }
 0x3b9   :  { %v1317_v1 = vpop.f32.mrf.mxu0  ;;  %v1374_v30 = vpop.f32.mrf.mxu1 }
 0x3ba   :  { %v1383_v63 = vmax.f32 %v1317_v1, %v1374_v30 }
 0x3c1   :  { %v1319_v60 = vpop.f32.mrf.mxu0  ;;  %v1376_v27 = vpop.f32.mrf.mxu1 }
 0x3c2   :  { %v1384_v32 = vmax.f32 %v1319_v60, %v1376_v27 }
 0x3c4   :  { %v1388_v52 = vpack.c.bf16 %v1384_v32, %v1383_v63 }
 0x3c6   :  { %1424 = vmatpush.bf16.msra.mxu2 %v1388_v52  ;;  %1486 = vmatpush.bf16.msra.mxu3 %v1388_v52 }
 0x3ca   :  { %1425 = vmatpush.bf16.msra.mxu2 %v1387_v49  ;;  %1487 = vmatpush.bf16.msra.mxu3 %v1387_v49 }
 0x3ce   :  { %1426 = vmatpush.bf16.msra.mxu2 %v1386_v44  ;;  %1488 = vmatpush.bf16.msra.mxu3 %v1386_v44 }
 0x3d1   :  { %4191 = vmatmul.msk.bf16.vlgmr.msra.gmra.mxu2 %vm6937_vm13, %v4859_v0  ;;  %4212 = vmatmul.msk.bf16.vlgmr.msra.gmra.mxu3 %vm6938_vm3, %v4864_v23 }
 0x3d2   :  { %1640 = vmatpush.bf16.msrb.mxu2 %v1388_v52  ;;  %1694 = vmatpush.bf16.msrb.mxu3 %v4873_v16 }
 0x3d6   :  { %1641 = vmatpush.bf16.msrb.mxu2 %v1387_v49  ;;  %1695 = vmatpush.bf16.msrb.mxu3 %v4872_v10  ;;  %v6947_v49 = vld [vmem:[#allocation29_spill] sm:$0xff] }
 0x3d7   :  { %v1725_v8 = vmul.u32 43690, %v6947_v49  ;;  %v1724_v0 = vmul.u32 43691, %v6947_v49 }
 0x3d9   :  { %v1728_v23 = vshll.u32 %v1725_v8, 16 }
 0x3da   :  { %1642 = vmatpush.bf16.msrb.mxu2 %v1386_v44  ;;  %v1754_v44 = vmul.u32 43690, %v5520_v56 }
 0x3db   :  { %vm1732_vm1 = vc.u32 %v1724_v0, %v1728_v23  ;;  %v1734_v10 = vadd.s32 %v1728_v23, %v1724_v0 }
 0x3e1   :  { %4192 = vmatmul.msk.bf16.gmra.mxu2 %vm6939_vm14, %v4860_v24  ;;  %4213 = vmatmul.msk.bf16.gmra.mxu3 %vm6940_vm15, %v4865_v50  ;;  %v1753_v24 = vmul.u32 43691, %v5520_v56  ;;  %v1755_v50 = vmul.u32 43691, %v5544_v18  ;;  %v1872_v56 = vmul.u32 43690, %v5640_v22 }
 0x3f1   :  { %4193 = vmatmul.msk.bf16.gmra.mxu2 %vm6941_vm2, %v4861_v54  ;;  %4214 = vmatmul.msk.bf16.gmra.mxu3 %vm6942_vm5, %v4866_v42  ;;  %v1757_v54 = vshll.u32 %v1754_v44, 16  ;;  %v1811_v42 = vmul.u32 43691, %v5538_v13 }
 0x3f3   :  { %vm1761_vm0 = vc.u32 %v1753_v24, %v1757_v54 }
 0x401   :  { %4259 = vmatmul.msk.bf16.vlgmr.msrb.gmra.mxu2 %vm6943_vm6, %v4869_v61  ;;  %v1812_v61 = vmul.u32 43690, %v5538_v13  ;;  %v1814_v13 = vmul.u32 43690, %v5563_v35 }
 0x403   :  { %v1815_v19 = vshll.u32 %v1812_v61, 16 }
 0x405   :  { %vm1819_vm10 = vc.u32 %v1811_v42, %v1815_v19 }
 0x411   :  { %4260 = vmatmul.msk.bf16.gmra.mxu2 %vm6944_vm7, %v4870_v40  ;;  %v1813_v40 = vmul.u32 43691, %v5563_v35  ;;  %v1756_v35 = vmul.u32 43690, %v5544_v18 }
 0x421   :  { %4261 = vmatmul.msk.bf16.gmra.mxu2 %vm6945_vm8, %v4871_v47 }
 0x454   :  { %v1428_v20 = vpop.f32.mrf.mxu2  ;;  %v1490_v4 = vpop.f32.mrf.mxu3 }
 0x45c   :  { %v1430_v7 = vpop.f32.mrf.mxu2  ;;  %v1492_v55 = vpop.f32.mrf.mxu3 }
 0x45d   :  { %v1447_v17 = vpack.c.bf16 %v1430_v7, %v1428_v20  ;;  %v1510_v11 = vpack.c.bf16 %v1492_v55, %v1490_v4  ;;  %v1817_v20 = vshll.u32 %v1813_v40, 16  ;;  %v6949_v7 = vld [vmem:[#allocation34_spill] sm:$0xff] }
 0x45e   :  { %v1783_v55 = vmul.u32 43690, %v6949_v7  ;;  %v1782_v16 = vmul.u32 43691, %v6949_v7 }
 0x45f   :  { %4227 = vmatmul.msk.bf16.vlgmr.msrb.gmra.mxu0 %vm1525_vm9, %v1510_v11  ;;  %4238 = vmatmul.msk.bf16.vlgmr.msrb.gmra.mxu1 %vm1525_vm9, %v1447_v17  ;;  %v1759_v17 = vshll.u32 %v1755_v50, 16  ;;  %v1763_v11 = vadd.s32 %v1757_v54, %v1753_v24 }
 0x461   :  { %vm1765_vm13 = vc.u32 %v1763_v11, %v1759_v17  ;;  %v1758_v17 = vshrl.u32 %v1754_v44, 16 }
 0x464   :  { %v1433_v33 = vpop.f32.mrf.mxu2  ;;  %v1495_v15 = vpop.f32.mrf.mxu3 }
 0x46c   :  { %v1435_v28 = vpop.f32.mrf.mxu2  ;;  %v1497_v3 = vpop.f32.mrf.mxu3 }
 0x46d   :  { %v1448_v26 = vpack.c.bf16 %v1435_v28, %v1433_v33  ;;  %v1511_v5 = vpack.c.bf16 %v1497_v3, %v1495_v15  ;;  %v1821_v33 = vadd.s32 %v1815_v19, %v1811_v42  ;;  %v1820_v15 = vsel %vm1819_vm10, 1, %v6875_v46 }
 0x46e   :  { %v1784_v28 = vmul.u32 43691, %v5523_v57  ;;  %v1786_v3 = vshll.u32 %v1783_v55, 16 }
 0x46f   :  { %4228 = vmatmul.msk.bf16.gmra.mxu0 %vm1525_vm9, %v1511_v5  ;;  %4239 = vmatmul.msk.bf16.gmra.mxu1 %vm1525_vm9, %v1448_v26  ;;  %v1730_v26 = vshll.u32 %v1726_v2, 16  ;;  %v1733_v5 = vsel %vm1732_vm1, 1, %v6875_v46  ;;  %vm1823_vm4 = vc.u32 %v1821_v33, %v1817_v20 }
 0x470   :  { %vm1790_vm11 = vc.u32 %v1782_v16, %v1786_v3 }
 0x471   :  { %vm1736_vm3 = vc.u32 %v1734_v10, %v1730_v26  ;;  %v1869_v10 = vmul.u32 43691, %v5610_v34 }
 0x472   :  { %v1737_v19 = vsel %vm1736_vm3, 1, %v6875_v46 }
 0x474   :  { %v1438_v31 = vpop.f32.mrf.mxu2  ;;  %v1500_v38 = vpop.f32.mrf.mxu3 }
 0x47c   :  { %v1440_v53 = vpop.f32.mrf.mxu2  ;;  %v1502_v21 = vpop.f32.mrf.mxu3 }
 0x47d   :  { %v1449_v9 = vpack.c.bf16 %v1440_v53, %v1438_v31  ;;  %v1512_v62 = vpack.c.bf16 %v1502_v21, %v1500_v38  ;;  %v1762_v38 = vsel %vm1761_vm0, 1, %v6875_v46  ;;  %v1822_v53 = vadd.s32 %v1820_v15, %v1814_v13 }
 0x47e   :  { %v1824_v21 = vsel %vm1823_vm4, 1, %v6875_v46  ;;  %v1764_v23 = vadd.s32 %v1762_v38, %v1756_v35  ;;  %v1871_v35 = vmul.u32 43691, %v5640_v22 }
 0x47f   :  { %4229 = vmatmul.msk.bf16.gmra.mxu0 %vm1525_vm9, %v1512_v62  ;;  %4240 = vmatmul.msk.bf16.gmra.mxu1 %vm1525_vm9, %v1449_v9  ;;  %v1840_v9 = vmul.u32 43691, %v5574_v41  ;;  %v1841_v62 = vmul.u32 43690, %v5574_v41  ;;  %v1826_v54 = vadd.s32 %v1824_v21, %v1822_v53  ;;  %v1729_v53 = vshrl.u32 %v1725_v8, 16 }
 0x484   :  { %v1644_v14 = vpop.f32.mrf.mxu2 }
 0x48c   :  { %v1646_v1 = vpop.f32.mrf.mxu2 }
 0x48d   :  { %v1664_v30 = vpack.c.bf16 %v1646_v1, %v1644_v14  ;;  %v1842_v14 = vmul.u32 43691, %v5583_v51  ;;  %v1785_v1 = vmul.u32 43690, %v5523_v57  ;;  %v1766_v57 = vsel %vm1765_vm13, 1, %v6875_v46 }
 0x48e   :  { %v1768_v11 = vadd.s32 %v1766_v57, %v1764_v23 }
 0x48f   :  { %4274 = vmatmul.msk.bf16.vlgmr.msrb.gmra.mxu3 %vm1525_vm9, %v1664_v30  ;;  %v1788_v30 = vshll.u32 %v1784_v28, 16  ;;  %v1846_v0 = vshll.u32 %v1842_v14, 16 }
 0x494   :  { %v1649_v60 = vpop.f32.mrf.mxu2 }
 0x49c   :  { %v1651_v27 = vpop.f32.mrf.mxu2 }
 0x49d   :  { %v1665_v63 = vpack.c.bf16 %v1651_v27, %v1649_v60  ;;  %v1792_v60 = vadd.s32 %v1786_v3, %v1782_v16  ;;  %v1843_v27 = vmul.u32 43690, %v5583_v51  ;;  %v1847_v3 = vshrl.u32 %v1842_v14, 16 }
 0x49f   :  { %4275 = vmatmul.msk.bf16.gmra.mxu3 %vm1525_vm9, %v1665_v63  ;;  %v1844_v63 = vshll.u32 %v1841_v62, 16  ;;  %vm1794_vm15 = vc.u32 %v1792_v60, %v1788_v30  ;;  %v1769_v30 = vadd.s32 %v1768_v11, %v1758_v17 }
 0x4a0   :  { %v1795_v15 = vsel %vm1794_vm15, 1, %v6875_v46 }
 0x4a1   :  { %vm1848_vm14 = vc.u32 %v1840_v9, %v1844_v63  ;;  %v1850_v41 = vadd.s32 %v1844_v63, %v1840_v9 }
 0x4a2   :  { %v1849_v51 = vsel %vm1848_vm14, 1, %v6875_v46 }
 0x4a3   :  { %v1851_v7 = vadd.s32 %v1849_v51, %v1843_v27  ;;  %vm1852_vm2 = vc.u32 %v1850_v41, %v1846_v0  ;;  %v1876_v41 = vshrl.u32 %v1871_v35, 16 }
 0x4a4   :  { %v1654_v32 = vpop.f32.mrf.mxu2  ;;  %v1853_v33 = vsel %vm1852_vm2, 1, %v6875_v46 }
 0x4a5   :  { %v1855_v26 = vadd.s32 %v1853_v33, %v1851_v7 }
 0x4ac   :  { %v1656_v39 = vpop.f32.mrf.mxu2 }
 0x4ad   :  { %v1666_v52 = vpack.c.bf16 %v1656_v39, %v1654_v32  ;;  %v1791_v32 = vsel %vm1790_vm11, 1, %v6875_v46  ;;  %v1735_v39 = vadd.s32 %v1733_v5, %v1727_v43  ;;  %v1818_v43 = vshrl.u32 %v1813_v40, 16 }
 0x4ae   :  { %v1793_v20 = vadd.s32 %v1791_v32, %v1785_v1  ;;  %v1787_v5 = vshrl.u32 %v1783_v55, 16  ;;  %v1870_v40 = vmul.u32 43690, %v5610_v34  ;;  %v1875_v55 = vshll.u32 %v1871_v35, 16 }
 0x4af   :  { %4276 = vmatmul.msk.bf16.gmra.mxu3 %vm1525_vm9, %v1666_v52  ;;  %v1816_v52 = vshrl.u32 %v1812_v61, 16  ;;  %v1845_v61 = vshrl.u32 %v1841_v62, 16  ;;  %v1739_v9 = vadd.s32 %v1737_v19, %v1735_v39  ;;  %v1760_v62 = vshrl.u32 %v1755_v50, 16 }
 0x4b0   :  { %v1797_v38 = vadd.s32 %v1795_v15, %v1793_v20  ;;  %v1873_v44 = vshll.u32 %v1870_v40, 16  ;;  %v1789_v1 = vshrl.u32 %v1784_v28, 16  ;;  %v1731_v32 = vshrl.u32 %v1726_v2, 16 }
 0x4b1   :  { %v1827_v16 = vadd.s32 %v1826_v54, %v1816_v52  ;;  %v1856_v21 = vadd.s32 %v1855_v26, %v1845_v61  ;;  %v1740_v22 = vadd.s32 %v1739_v9, %v1729_v53  ;;  %v1874_v52 = vshrl.u32 %v1870_v40, 16 }
 0x4b2   :  { %vm1877_vm5 = vc.u32 %v1869_v10, %v1873_v44  ;;  %v1879_v34 = vadd.s32 %v1873_v44, %v1869_v10  ;;  %v1798_v27 = vadd.s32 %v1797_v38, %v1787_v5  ;;  %v1770_v54 = vadd.s32 %v1769_v30, %v1760_v62 }
 0x4b3   :  { %v1828_v14 = vadd.s32 %v1827_v16, %v1818_v43  ;;  %v1857_v60 = vadd.s32 %v1856_v21, %v1847_v3  ;;  %v1878_v49 = vsel %vm1877_vm5, 1, %v6875_v46  ;;  %v1741_v19 = vadd.s32 %v1740_v22, %v1731_v32 }
 0x4b4   :  { %v1880_v50 = vadd.s32 %v1878_v49, %v1872_v56  ;;  %vm1881_vm6 = vc.u32 %v1879_v34, %v1875_v55  ;;  %v1799_v28 = vadd.s32 %v1798_v27, %v1789_v1  ;;  %v1771_v2 = vshrl.u32 %v1770_v54, 4 }
 0x4b5   :  { %v1858_v18 = vshrl.u32 %v1857_v60, 4  ;;  %v1829_v0 = vshrl.u32 %v1828_v14, 4  ;;  %v1882_v23 = vsel %vm1881_vm6, 1, %v6875_v46  ;;  %v1742_v7 = vshrl.u32 %v1741_v19, 4 }
 0x4b6   :  { %v1884_v57 = vadd.s32 %v1882_v23, %v1880_v50  ;;  %v1800_v43 = vshrl.u32 %v1799_v28, 4  ;;  %v1772_v26 = vmul.u32 24, %v1771_v2 }
 0x4b7   :  { %v1859_v51 = vmul.u32 24, %v1858_v18  ;;  %v1830_v45 = vmul.u32 24, %v1829_v0  ;;  %v1743_v10 = vmul.u32 24, %v1742_v7 }
 0x4b8   :  { %v1885_v20 = vadd.s32 %v1884_v57, %v1874_v52  ;;  %v1801_v11 = vmul.u32 24, %v1800_v43 }
 0x4b9   :  { %v1860_v15 = vsub.s32 %v6904_v12, %v1859_v51  ;;  %v1831_v46 = vsub.s32 %v6901_v59, %v1830_v45  ;;  %v1773_v12 = vsub.s32 %v6914_v6, %v1772_v26  ;;  %v1744_v21 = vsub.s32 %v6900_v36, %v1743_v10 }
 0x4ba   :  { %v1886_v61 = vadd.s32 %v1885_v20, %v1876_v41  ;;  %v1802_v35 = vsub.s32 %v6892_v48, %v1801_v11 }
 0x4bb   :  { %vm1896_vm7 = vcmp.ne.s32.totalorder %v1860_v15, 0  ;;  %vm1902_vm8 = vcmp.lt.s32.totalorder %v1860_v15, 0  ;;  %vm1895_vm1 = vcmp.ne.s32.totalorder %v1831_v46, 0  ;;  %vm1901_vm10 = vcmp.lt.s32.totalorder %v1831_v46, 0 }
 0x4bc   :  { %v1887_v17 = vshrl.u32 %v1886_v61, 4  ;;  %v1914_v38 = vadd.s32 24, %v1860_v15  ;;  %vm1908_vm0 = vmand %vm1902_vm8, %vm1896_vm7  ;;  %v1913_v9 = vadd.s32 24, %v1831_v46  ;;  %vm1894_vm14 = vcmp.ne.s32.totalorder %v1802_v35, 0 }
 0x4bd   :  { %vm1907_vm3 = vmand %vm1901_vm10, %vm1895_vm1  ;;  %vm1900_vm15 = vcmp.lt.s32.totalorder %v1802_v35, 0  ;;  %vm1893_vm2 = vcmp.ne.s32.totalorder %v1773_v12, 0  ;;  %v1912_v1 = vadd.s32 24, %v1802_v35  ;;  %vm1899_vm5 = vcmp.lt.s32.totalorder %v1773_v12, 0 }
 0x4be   :  { %v1888_v5 = vmul.u32 24, %v1887_v17  ;;  %v1920_v62 = vsel %vm1908_vm0, %v1914_v38, %v1860_v15  ;;  %vm1892_vm6 = vcmp.ne.s32.totalorder %v1744_v21, 0  ;;  %vm1898_vm7 = vcmp.lt.s32.totalorder %v1744_v21, 0  ;;  %vm1906_vm8 = vmand %vm1900_vm15, %vm1894_vm14  ;;  %v4875_v38 = vld [vmem:[%s6776_s12 + $0x8] sm:$0xff] }
 0x4bf   :  { %v1919_v27 = vsel %vm1907_vm3, %v1913_v9, %v1831_v46  ;;  %vm1926_vm1 = vcmp.ge.s32.totalorder %v1920_v62, 1  ;;  %vm1932_vm10 = vcmp.le.s32.totalorder %v1920_v62, 16  ;;  %v1910_v22 = vadd.s32 24, %v1744_v21  ;;  %v4881_v9 = vld [vmem:[%s6780_s16 + $0x18] sm:$0xff] }
 0x4c0   :  { %v1889_v40 = vsub.s32 %v6898_v58, %v1888_v5  ;;  %v1918_v52 = vsel %vm1906_vm8, %v1912_v1, %v1802_v35  ;;  %vm1925_vm3 = vcmp.ge.s32.totalorder %v1919_v27, 1  ;;  %vm1931_vm14 = vcmp.le.s32.totalorder %v1919_v27, 16  ;;  %vm1938_vm15 = vmand %vm1926_vm1, %vm1932_vm10  ;;  %4972 = vmatpush.bf16.msra.mxu3 %v4881_v9  ;;  %2101 = vmatpush.bf16.msra.mxu2 %v4881_v9  ;;  %v4885_v1 = vld [vmem:[%s6780_s16 + $0x38] sm:$0xff] }
 0x4c1   :  { %v4281_v19 = vsel %vm1938_vm15, 1.0, %v5189_v25 }
 0x4c2   :  { %vm1897_vm4 = vcmp.ne.s32.totalorder %v1889_v40, 0  ;;  %vm1903_vm11 = vcmp.lt.s32.totalorder %v1889_v40, 0  ;;  %v1915_v53 = vadd.s32 24, %v1889_v40 }
 0x4c3   :  { %vm1909_vm13 = vmand %vm1903_vm11, %vm1897_vm4 }
 0x4c4   :  { %v1921_v55 = vsel %vm1909_vm13, %v1915_v53, %v1889_v40  ;;  %vm6141_vm11 = vmand %vm1899_vm5, %vm1893_vm2  ;;  %vm1924_vm5 = vcmp.ge.s32.totalorder %v1918_v52, 1  ;;  %v4876_v53 = vld [vmem:[%s6776_s12 + $0x10] sm:$0xff] }
 0x4c5   :  { %vm1927_vm0 = vcmp.ge.s32.totalorder %v1921_v55, 1  ;;  %vm1933_vm4 = vcmp.le.s32.totalorder %v1921_v55, 16  ;;  %vm1904_vm13 = vmand %vm1898_vm7, %vm1892_vm6  ;;  %vm1930_vm6 = vcmp.le.s32.totalorder %v1918_v52, 16 }
 0x4c6   :  { %vm1939_vm2 = vmand %vm1927_vm0, %vm1933_vm4  ;;  %v1916_v54 = vsel %vm1904_vm13, %v1910_v22, %v1744_v21  ;;  %v4877_v21 = vld [vmem:[%s6776_s12 + $0x18] sm:$0xff] }
 0x4c7   :  { %vm1937_vm7 = vmand %vm1925_vm3, %vm1931_vm14  ;;  %vm1922_vm0 = vcmp.ge.s32.totalorder %v1916_v54, 1  ;;  %vm1928_vm4 = vcmp.le.s32.totalorder %v1916_v54, 16  ;;  %vm6952_vm3 = vcmask 392192  }
 0x4c8   :  { %vm1936_vm10 = vmand %vm1924_vm5, %vm1930_vm6  ;;  %v4280_v45 = vsel %vm1937_vm7, 1.0, %v5189_v25 }
 0x4c9   :  { %vm1934_vm13 = vmand %vm1922_vm0, %vm1928_vm4 }
 0x4ca   :  { %v4277_v26 = vsel %vm1934_vm13, 1.0, %v5189_v25  ;;  %vm6953_vm14 = vmmov %vm6952_vm3 }
 0x4cb   :  { %vm6954_vm15 = vmmov %vm6952_vm3 }
 0x4dc   :  { %v6054_v37 = vpop.f32.mrf.mxu0  ;;  %v6056_v29 = vpop.f32.mrf.mxu1 }
 0x4e4   :  { %v6070_v47 = vpop.f32.mrf.mxu0  ;;  %v6074_v4 = vpop.f32.mrf.mxu1 }
 0x4e5   :  { %v1592_v32 = vadd.f32 %v6074_v4, %v6070_v47  ;;  %v1590_v47 = vadd.f32 %v6056_v29, %v6054_v37 }
 0x4ec   :  { %v6097_v24 = vpop.f32.mrf.mxu0  ;;  %v6101_v42 = vpop.f32.mrf.mxu1 }
 0x4ed   :  { %v1595_v30 = vadd.f32 %v6101_v42, %v6097_v24 }
 0x4f4   :  { %v1551_v63 = vpop.f32.mrf.mxu0  ;;  %v1596_v8 = vpop.f32.mrf.mxu1 }
 0x4f5   :  { %v1597_v58 = vadd.f32 %v1596_v8, %v1551_v63  ;;  %v4991_v63 = vld [vmem:[%s6915_s4 + $0x1] ss:$0 sm:$0xff]  ;;  %v1911_v8 = vadd.s32 24, %v1773_v12 }
 0x4fc   :  { %v1554_v16 = vpop.f32.mrf.mxu0  ;;  %v1599_v3 = vpop.f32.mrf.mxu1 }
 0x4fd   :  { %v1600_v44 = vadd.f32 %v1599_v3, %v1554_v16 }
 0x504   :  { %v1556_v60 = vpop.f32.mrf.mxu0  ;;  %v1601_v34 = vpop.f32.mrf.mxu1 }
 0x505   :  { %v1602_v42 = vadd.f32 %v1601_v34, %v1556_v60  ;;  %v4883_v34 = vld [vmem:[%s6780_s16 + $0x28] sm:$0xff] }
 0x512   :  { %v6086_v31 = vpop.f32.mrf.mxu3 }
 0x513   :  { %v1712_v37 = vadd.f32 %v6086_v31, %v1590_v47 }
 0x515   :  { %v1953_v2 = vadd.f32 %v4991_v63, %v1712_v37 }
 0x517   :  { %v1959_v3 = vmax.f32 %v1953_v2, 0.0  ;;  %v6218_v2 = vld [vmem:[#allocation9 + $0x18] sm:$0xff] }
 0x519   :  { %v1965_v40 = vmul.f32 %v4277_v26, %v1959_v3  ;;  %v4897_v3 = vld [vmem:[%s6956_s27 + $0x28] sm:$0xff] }
 0x51a   :  { %v6105_v13 = vpop.f32.mrf.mxu3 }
 0x51b   :  { %v1713_v28 = vadd.f32 %v6105_v13, %v1592_v32  ;;  %v4282_v13 = vsel %vm1939_vm2, 1.0, %v5189_v25  ;;  %vm6955_vm2 = vmmov %vm6952_vm3 }
 0x51d   :  { %v1954_v51 = vadd.f32 %v4991_v63, %v1713_v28 }
 0x51f   :  { %v1960_v15 = vmax.f32 %v1954_v51, 0.0 }
 0x522   :  { %v6122_v39 = vpop.f32.mrf.mxu3 }
 0x523   :  { %v1714_v18 = vadd.f32 %v6122_v39, %v1595_v30  ;;  %v1917_v39 = vsel %vm6141_vm11, %v1911_v8, %v1773_v12  ;;  %v4874_v12 = vld [vmem:[%s6776_s12] sm:$0xff]  ;;  %v4884_v30 = vld [vmem:[%s6780_s16 + $0x30] sm:$0xff]  ;;  %s6957_s12 = sld [smem:[#allocation49_spill]] }
 0x524   :  { %vm1923_vm8 = vcmp.ge.s32.totalorder %v1917_v39, 1  ;;  %vm1929_vm1 = vcmp.le.s32.totalorder %v1917_v39, 16 }
 0x525   :  { %v1955_v29 = vadd.f32 %v4991_v63, %v1714_v18  ;;  %vm1935_vm11 = vmand %vm1923_vm8, %vm1929_vm1  ;;  %vm2827_vm1 = vcmask 130048  }
 0x526   :  { %v4278_v16 = vsel %vm1935_vm11, 1.0, %v5189_v25 }
 0x527   :  { %v1961_v31 = vmax.f32 %v1955_v29, 0.0  ;;  %v1966_v10 = vmul.f32 %v4278_v16, %v1960_v15  ;;  %v4892_v15 = vld [vmem:[%s6956_s27 + $0x10] sm:$0xff] }
 0x529   :  { %v1971_v35 = vpack.c.bf16 %v1966_v10, %v1965_v40  ;;  %v4896_v40 = vld [vmem:[%s6956_s27 + $0x20] sm:$0xff] }
 0x52a   :  { %v1704_v33 = vpop.f32.mrf.mxu3 }
 0x52b   :  { %v1715_v49 = vadd.f32 %v1704_v33, %v1597_v58  ;;  %v4279_v33 = vsel %vm1936_vm10, 1.0, %v5189_v25  ;;  %v4879_v58 = vld [vmem:[%s6780_s16 + $0x8] sm:$0xff] }
 0x52c   :  { %v1967_v46 = vmul.f32 %v4279_v33, %v1961_v31  ;;  %v6224_v31 = vld [vmem:[#allocation9 + $0x20] sm:$0xff] }
 0x52d   :  { %v1956_v0 = vadd.f32 %v4991_v63, %v1715_v49  ;;  %v4889_v33 = vld [vmem:[%s6956_s27 + $0x8] sm:$0xff] }
 0x52f   :  { %v1962_v20 = vmax.f32 %v1956_v0, 0.0 }
 0x531   :  { %v1968_v17 = vmul.f32 %v4280_v45, %v1962_v20  ;;  %v6208_v20 = vld [vmem:[#allocation9] sm:$0xff]  ;;  %v6216_v45 = vld [vmem:[#allocation9 + $0x8] sm:$0xff] }
 0x532   :  { %v1707_v56 = vpop.f32.mrf.mxu3 }
 0x533   :  { %v1716_v14 = vadd.f32 %v1707_v56, %v1600_v44  ;;  %v1972_v5 = vpack.c.bf16 %v1968_v17, %v1967_v46  ;;  %v4880_v44 = vld [vmem:[%s6780_s16 + $0x10] sm:$0xff]  ;;  %v4888_v17 = vld [vmem:[%s6956_s27] sm:$0xff] }
 0x534   :  { %4973 = vmatpush.bf16.msra.mxu3 %v4880_v44  ;;  %2102 = vmatpush.bf16.msra.mxu2 %v4880_v44 }
 0x535   :  { %v1957_v50 = vadd.f32 %v4991_v63, %v1716_v14  ;;  %v4878_v14 = vld [vmem:[%s6780_s16] sm:$0xff] }
 0x537   :  { %v1963_v41 = vmax.f32 %v1957_v50, 0.0 }
 0x538   :  { %4974 = vmatpush.bf16.msra.mxu3 %v4879_v58  ;;  %2103 = vmatpush.bf16.msra.mxu2 %v4879_v58 }
 0x539   :  { %v1969_v61 = vmul.f32 %v4281_v19, %v1963_v41 }
 0x53a   :  { %v1709_v4 = vpop.f32.mrf.mxu3 }
 0x53b   :  { %v1717_v23 = vadd.f32 %v1709_v4, %v1602_v42 }
 0x53c   :  { %4975 = vmatpush.bf16.msra.mxu3 %v4878_v14  ;;  %2104 = vmatpush.bf16.msra.mxu2 %v4878_v14 }
 0x53d   :  { %v1958_v57 = vadd.f32 %v4991_v63, %v1717_v23  ;;  %v4882_v63 = vld [vmem:[%s6780_s16 + $0x20] sm:$0xff] }
 0x53f   :  { %v1964_v43 = vmax.f32 %v1958_v57, 0.0 }
 0x540   :  { %2153 = vmatpush.bf16.msrb.mxu3 %v4885_v1 }
 0x541   :  { %v1970_v7 = vmul.f32 %v4282_v13, %v1964_v43  ;;  %v6210_v43 = vld [vmem:[#allocation9 + $0x10] sm:$0xff] }
 0x543   :  { %v1973_v11 = vpack.c.bf16 %v1970_v7, %v1969_v61  ;;  %v6228_v61 = vld [vmem:[#allocation9 + $0x28] sm:$0xff]  ;;  %v4893_v7 = vld [vmem:[%s6956_s27 + $0x18] sm:$0xff] }
 0x544   :  { %2154 = vmatpush.bf16.msrb.mxu3 %v4884_v30  ;;  %2291 = vmatpush.bf16.msrb.mxu2 %v4893_v7 }
 0x545   :  { %1999 = vmatpush.bf16.msra.mxu0 %v1973_v11  ;;  %4969 = vmatpush.bf16.msra.mxu1 %v1973_v11 }
 0x548   :  { %2155 = vmatpush.bf16.msrb.mxu3 %v4883_v34  ;;  %2292 = vmatpush.bf16.msrb.mxu2 %v4892_v15 }
 0x549   :  { %2000 = vmatpush.bf16.msra.mxu0 %v1972_v5  ;;  %4970 = vmatpush.bf16.msra.mxu1 %v1972_v5 }
 0x54c   :  { %2156 = vmatpush.bf16.msrb.mxu3 %v4882_v63 }
 0x54d   :  { %2001 = vmatpush.bf16.msra.mxu0 %v1971_v35  ;;  %4971 = vmatpush.bf16.msra.mxu1 %v1971_v35 }
 0x550   :  { %4292 = vmatmul.msk.bf16.vlgmr.msra.gmra.mxu1 %vm6952_vm3, %v4875_v38  ;;  %4291 = vmatmul.msk.bf16.vlgmr.msra.gmra.mxu0 %vm6953_vm14, %v4874_v12 }
 0x551   :  { %2039 = vmatpush.bf16.msrb.mxu1 %v1973_v11 }
 0x555   :  { %2040 = vmatpush.bf16.msrb.mxu1 %v1972_v5 }
 0x559   :  { %2041 = vmatpush.bf16.msrb.mxu1 %v1971_v35 }
 0x560   :  { %4305 = vmatmul.msk.bf16.vlgmr.msrb.gmra.mxu1 %vm6954_vm15, %v4876_v53 }
 0x570   :  { %4306 = vmatmul.msk.bf16.gmra.mxu1 %vm6955_vm2, %v4877_v21 }
 0x5cd   :  { %v2008_v56 = vpop.f32.mrf.mxu1  ;;  %v2003_v55 = vpop.f32.mrf.mxu0 }
 0x5d5   :  { %v2010_v62 = vpop.f32.mrf.mxu1  ;;  %v2005_v27 = vpop.f32.mrf.mxu0 }
 0x5dd   :  { %v2043_v60 = vpop.f32.mrf.mxu1 }
 0x5de   :  { %v2053_v8 = vmax.f32 %v2003_v55, %v2043_v60 }
 0x5e5   :  { %v2045_v49 = vpop.f32.mrf.mxu1 }
 0x5e6   :  { %v2054_v32 = vmax.f32 %v2005_v27, %v2045_v49 }
 0x5e8   :  { %v2057_v22 = vpack.c.bf16 %v2054_v32, %v2053_v8 }
 0x5ea   :  { %4323 = vmatmul.msk.bf16.vlgmr.msra.gmra.mxu2 %vm1288_vm12, %v2057_v22 }
 0x5ed   :  { %v2048_v24 = vpop.f32.mrf.mxu1 }
 0x5ee   :  { %v2055_v18 = vmax.f32 %v2008_v56, %v2048_v24 }
 0x5f5   :  { %v2050_v42 = vpop.f32.mrf.mxu1 }
 0x5f6   :  { %v2056_v50 = vmax.f32 %v2010_v62, %v2050_v42 }
 0x5f8   :  { %v2058_v52 = vpack.c.bf16 %v2056_v50, %v2055_v18 }
 0x5fa   :  { %4324 = vmatmul.msk.bf16.vlgmr.msra.gmra.mxu3 %vm1288_vm12, %v2058_v52 }
 0x5fb   :  { %2328 = vmatpush.bf16.msra.mxu3 %v4889_v33 }
 0x5ff   :  { %2329 = vmatpush.bf16.msra.mxu3 %v4888_v17 }
 0x60a   :  { %4349 = vmatmul.msk.bf16.vlgmr.msrb.gmra.mxu3 %vm1288_vm12, %v2057_v22 }
 0x61a   :  { %4350 = vmatmul.msk.bf16.gmra.mxu3 %vm1288_vm12, %v2058_v52 }
 0x66d   :  { %v2106_v23 = vpop.f32.mrf.mxu2 }
 0x675   :  { %v2108_v41 = vpop.f32.mrf.mxu2 }
 0x67d   :  { %v2111_v47 = vpop.f32.mrf.mxu3 }
 0x685   :  { %v2113_v4 = vpop.f32.mrf.mxu3 }
 0x68d   :  { %v2158_v28 = vpop.f32.mrf.mxu3 }
 0x68e   :  { %v2168_v13 = vmax.f32 %v2106_v23, %v2158_v28  ;;  %v2447_v28 = vand.u32 15, %v6892_v48 }
 0x690   :  { %vm2479_vm5 = vcmp.ge.s32.totalorder %v2447_v28, 1 }
 0x691   :  { %v6264_v48 = vsel %vm2479_vm5, 1.0, %v5189_v25 }
 0x695   :  { %v2160_v0 = vpop.f32.mrf.mxu3 }
 0x696   :  { %v2169_v57 = vmax.f32 %v2108_v41, %v2160_v0  ;;  %v2454_v0 = vand.u32 15, %v6901_v59 }
 0x698   :  { %v2173_v51 = vpack.c.bf16 %v2169_v57, %v2168_v13  ;;  %vm2484_vm6 = vcmp.le.s32.totalorder %v2454_v0, 8 }
 0x699   :  { %v6267_v59 = vsel %vm2484_vm6, 1.0, %v5189_v25 }
 0x69d   :  { %v2163_v39 = vpop.f32.mrf.mxu3 }
 0x69e   :  { %v2170_v37 = vmax.f32 %v2111_v47, %v2163_v39  ;;  %v4992_v47 = vld [vmem:[%s6915_s4 + $0x2] ss:$0 sm:$0xff]  ;;  %v2440_v39 = vand.u32 15, %v6914_v6 }
 0x6a0   :  { %vm2482_vm7 = vcmp.le.s32.totalorder %v2440_v39, 8 }
 0x6a1   :  { %v6270_v17 = vsel %vm2482_vm7, 1.0, %v5189_v25 }
 0x6a5   :  { %v2165_v54 = vpop.f32.mrf.mxu3 }
 0x6a6   :  { %v2171_v29 = vmax.f32 %v2113_v4, %v2165_v54 }
 0x6a8   :  { %v2174_v19 = vpack.c.bf16 %v2171_v29, %v2170_v37  ;;  %v2433_v29 = vand.u32 15, %v6900_v36 }
 0x6aa   :  { %2201 = vmatpush.bf16.msrb.mxu0 %v2174_v19  ;;  %2247 = vmatpush.bf16.msra.mxu1 %v2174_v19  ;;  %vm2477_vm8 = vcmp.ge.s32.totalorder %v2433_v29, 1 }
 0x6ae   :  { %2202 = vmatpush.bf16.msrb.mxu0 %v2173_v51  ;;  %2248 = vmatpush.bf16.msra.mxu1 %v2173_v51 }
 0x6b1   :  { %4359 = vmatmul.msk.bf16.vlgmr.msrb.gmra.mxu0 %vm1525_vm9, %v6208_v20  ;;  %4369 = vmatmul.msk.bf16.vlgmr.msra.gmra.mxu1 %vm1525_vm9, %v6210_v43 }
 0x6b2   :  { %2368 = vmatpush.bf16.msra.mxu0 %v2174_v19  ;;  %2412 = vmatpush.bf16.msrb.mxu1 %v4897_v3 }
 0x6b6   :  { %2369 = vmatpush.bf16.msra.mxu0 %v2173_v51  ;;  %2413 = vmatpush.bf16.msrb.mxu1 %v4896_v40 }
 0x6c1   :  { %4360 = vmatmul.msk.bf16.gmra.mxu0 %vm1525_vm9, %v6216_v45  ;;  %4370 = vmatmul.msk.bf16.gmra.mxu1 %vm1525_vm9, %v6218_v2 }
 0x6d1   :  { %4403 = vmatmul.msk.bf16.vlgmr.msra.gmra.mxu0 %vm1525_vm9, %v6224_v31 }
 0x6e1   :  { %4404 = vmatmul.msk.bf16.gmra.mxu0 %vm1525_vm9, %v6228_v61 }
 0x72e   :  { %v2204_v11 = vpop.f32.mrf.mxu0  ;;  %v2250_v16 = vpop.f32.mrf.mxu1 }
 0x736   :  { %v2206_v46 = vpop.f32.mrf.mxu0  ;;  %v2252_v26 = vpop.f32.mrf.mxu1 }
 0x737   :  { %v2218_v5 = vpack.c.bf16 %v2206_v46, %v2204_v11  ;;  %v2265_v10 = vpack.c.bf16 %v2252_v26, %v2250_v16  ;;  %v6275_v46 = vsel %vm2477_vm8, 1.0, %v5189_v25 }
 0x739   :  { %4383 = vmatmul.msk.bf16.vlgmr.msrb.gmra.mxu2 %vm1525_vm9, %v2265_v10  ;;  %4393 = vmatmul.msk.bf16.vlgmr.msra.gmra.mxu3 %vm1525_vm9, %v2218_v5 }
 0x73e   :  { %v2209_v35 = vpop.f32.mrf.mxu0  ;;  %v2255_v38 = vpop.f32.mrf.mxu1 }
 0x746   :  { %v2211_v12 = vpop.f32.mrf.mxu0  ;;  %v2257_v53 = vpop.f32.mrf.mxu1 }
 0x747   :  { %v2219_v21 = vpack.c.bf16 %v2211_v12, %v2209_v35  ;;  %v2266_v9 = vpack.c.bf16 %v2257_v53, %v2255_v38  ;;  %v4899_v35 = vld [vmem:[%s6957_s12 + $0x8] sm:$0xff]  ;;  %v4908_v53 = vld [vmem:[%s6957_s12 + $0x50] sm:$0xff] }
 0x749   :  { %4384 = vmatmul.msk.bf16.gmra.mxu2 %vm1525_vm9, %v2266_v9  ;;  %4394 = vmatmul.msk.bf16.gmra.mxu3 %vm1525_vm9, %v2219_v21  ;;  %v4907_v21 = vld [vmem:[%s6957_s12 + $0x48] sm:$0xff]  ;;  %v4902_v9 = vld [vmem:[%s6957_s12 + $0x20] sm:$0xff] }
 0x74e   :  { %v2371_v56 = vpop.f32.mrf.mxu0 }
 0x756   :  { %v2373_v44 = vpop.f32.mrf.mxu0 }
 0x757   :  { %v2386_v58 = vpack.c.bf16 %v2373_v44, %v2371_v56  ;;  %v4898_v56 = vld [vmem:[%s6957_s12] sm:$0xff] }
 0x759   :  { %4417 = vmatmul.msk.bf16.vlgmr.msrb.gmra.mxu1 %vm1525_vm9, %v2386_v58 }
 0x75e   :  { %v2376_v62 = vpop.f32.mrf.mxu0 }
 0x766   :  { %v2378_v14 = vpop.f32.mrf.mxu0 }
 0x767   :  { %v2387_v55 = vpack.c.bf16 %v2378_v14, %v2376_v62 }
 0x769   :  { %4418 = vmatmul.msk.bf16.gmra.mxu1 %vm1525_vm9, %v2387_v55  ;;  %v4906_v55 = vld [vmem:[%s6957_s12 + $0x40] sm:$0xff] }
 0x7bc   :  { %v2294_v1 = vpop.f32.mrf.mxu2  ;;  %v2331_v30 = vpop.f32.mrf.mxu3 }
 0x7bd   :  { %v2332_v52 = vadd.f32 %v2331_v30, %v2294_v1 }
 0x7c4   :  { %v2296_v60 = vpop.f32.mrf.mxu2  ;;  %v2333_v27 = vpop.f32.mrf.mxu3 }
 0x7c5   :  { %v2334_v24 = vadd.f32 %v2333_v27, %v2296_v60 }
 0x7cc   :  { %v2299_v49 = vpop.f32.mrf.mxu2  ;;  %v2336_v8 = vpop.f32.mrf.mxu3 }
 0x7cd   :  { %v2337_v22 = vadd.f32 %v2336_v8, %v2299_v49 }
 0x7d4   :  { %v2301_v18 = vpop.f32.mrf.mxu2  ;;  %v2338_v50 = vpop.f32.mrf.mxu3 }
 0x7d5   :  { %v2339_v37 = vadd.f32 %v2338_v50, %v2301_v18 }
 0x7d6   :  { %v2415_v34 = vpop.f32.mrf.mxu1 }
 0x7d7   :  { %v2425_v23 = vadd.f32 %v2415_v34, %v2332_v52 }
 0x7d9   :  { %v2498_v13 = vadd.f32 %v4992_v47, %v2425_v23 }
 0x7db   :  { %v2502_v11 = vmax.f32 %v2498_v13, 0.0  ;;  %v4993_v13 = vld [vmem:[%s6915_s4 + $0x3] ss:$0 sm:$0xff] }
 0x7dd   :  { %v2506_v10 = vmul.f32 %v6275_v46, %v2502_v11 }
 0x7de   :  { %v2417_v63 = vpop.f32.mrf.mxu1 }
 0x7df   :  { %v2426_v4 = vadd.f32 %v2417_v63, %v2334_v24 }
 0x7e1   :  { %v2499_v57 = vadd.f32 %v4992_v47, %v2426_v4 }
 0x7e3   :  { %v2503_v33 = vmax.f32 %v2499_v57, 0.0 }
 0x7e5   :  { %v2507_v26 = vmul.f32 %v6270_v17, %v2503_v33 }
 0x7e6   :  { %v2420_v32 = vpop.f32.mrf.mxu1 }
 0x7e7   :  { %v2427_v42 = vadd.f32 %v2420_v32, %v2337_v22  ;;  %v2511_v40 = vpack.c.bf16 %v2507_v26, %v2506_v10 }
 0x7e9   :  { %v2500_v54 = vadd.f32 %v4992_v47, %v2427_v42 }
 0x7eb   :  { %v2504_v51 = vmax.f32 %v2500_v54, 0.0 }
 0x7ed   :  { %v2508_v16 = vmul.f32 %v6264_v48, %v2504_v51 }
 0x7ee   :  { %v2422_v41 = vpop.f32.mrf.mxu1 }
 0x7ef   :  { %v2428_v19 = vadd.f32 %v2422_v41, %v2339_v37 }
 0x7f1   :  { %v2501_v7 = vadd.f32 %v4992_v47, %v2428_v19 }
 0x7f3   :  { %v2505_v15 = vmax.f32 %v2501_v7, 0.0 }
 0x7f5   :  { %v2509_v3 = vmul.f32 %v6267_v59, %v2505_v15 }
 0x7f7   :  { %v2512_v5 = vpack.c.bf16 %v2509_v3, %v2508_v16 }
 0x7f9   :  { %2519 = vmatpush.bf16.msra.mxu2 %v2512_v5  ;;  %2548 = vmatpush.bf16.msrb.mxu3 %v2512_v5 }
 0x7fd   :  { %2520 = vmatpush.bf16.msra.mxu2 %v2511_v40  ;;  %2549 = vmatpush.bf16.msrb.mxu3 %v2511_v40 }
 0x800   :  { %4423 = vmatmul.msk.bf16.vlgmr.msra.gmra.mxu2 %vm1525_vm9, %v6208_v20  ;;  %4425 = vmatmul.msk.bf16.vlgmr.msrb.gmra.mxu3 %vm1525_vm9, %v6210_v43  ;;  %v4905_v20 = vld [vmem:[%s6957_s12 + $0x38] sm:$0xff] }
 0x801   :  { %2676 = vmatpush.bf16.msrb.mxu2 %v2512_v5  ;;  %v4901_v43 = vld [vmem:[%s6957_s12 + $0x18] sm:$0xff]  ;;  %2606 = vmatpush.bf16.msrb.mxu0 %v4905_v20 }
 0x802   :  { %2655 = vmatpush.bf16.msra.mxu1 %v4901_v43 }
 0x805   :  { %2677 = vmatpush.bf16.msrb.mxu2 %v2511_v40 }
 0x810   :  { %4424 = vmatmul.msk.bf16.gmra.mxu2 %vm1525_vm9, %v6216_v45  ;;  %4426 = vmatmul.msk.bf16.gmra.mxu3 %vm1525_vm9, %v6218_v2  ;;  %v4909_v45 = vld [vmem:[%s6957_s12 + $0x58] sm:$0xff]  ;;  %v4904_v2 = vld [vmem:[%s6957_s12 + $0x30] sm:$0xff] }
 0x811   :  { %2734 = vmatpush.bf16.msra.mxu3 %v4909_v45  ;;  %2607 = vmatpush.bf16.msrb.mxu0 %v4904_v2 }
 0x815   :  { %2735 = vmatpush.bf16.msra.mxu3 %v4908_v53  ;;  %v4911_v53 = vld [vmem:[#allocation6 + $0x8] sm:$0xff] }
 0x819   :  { %2736 = vmatpush.bf16.msra.mxu3 %v4907_v21 }
 0x81d   :  { %2737 = vmatpush.bf16.msra.mxu3 %v4906_v55  ;;  %v4916_v55 = vld [vmem:[%s6958_s7 + $0x18] sm:$0xff] }
 0x820   :  { %4471 = vmatmul.msk.bf16.vlgmr.msrb.gmra.mxu2 %vm1525_vm9, %v6224_v31  ;;  %v4900_v31 = vld [vmem:[%s6957_s12 + $0x10] sm:$0xff] }
 0x821   :  { %2656 = vmatpush.bf16.msra.mxu1 %v4900_v31  ;;  %2961 = vmatpush.bf16.msrb.mxu3 %v4916_v55 }
 0x825   :  { %2657 = vmatpush.bf16.msra.mxu1 %v4899_v35 }
 0x829   :  { %2658 = vmatpush.bf16.msra.mxu1 %v4898_v56 }
 0x830   :  { %4472 = vmatmul.msk.bf16.gmra.mxu2 %vm1525_vm9, %v6228_v61  ;;  %v4903_v61 = vld [vmem:[%s6957_s12 + $0x28] sm:$0xff] }
 0x831   :  { %2608 = vmatpush.bf16.msrb.mxu0 %v4903_v61 }
 0x835   :  { %2609 = vmatpush.bf16.msrb.mxu0 %v4902_v9 }
 0x883   :  { %v2522_v38 = vpop.f32.mrf.mxu2  ;;  %v2551_v12 = vpop.f32.mrf.mxu3 }
 0x88b   :  { %v2524_v44 = vpop.f32.mrf.mxu2  ;;  %v2553_v58 = vpop.f32.mrf.mxu3 }
 0x88c   :  { %v2540_v62 = vpack.c.bf16 %v2524_v44, %v2522_v38  ;;  %v2570_v14 = vpack.c.bf16 %v2553_v58, %v2551_v12  ;;  %v4910_v12 = vld [vmem:[#allocation6] sm:$0xff]  ;;  %v6342_v58 = vld [vmem:[#allocation10] sm:$0xff] }
 0x88e   :  { %4451 = vmatmul.msk.bf16.vlgmr.msrb.gmra.mxu0 %vm1288_vm12, %v2570_v14  ;;  %4469 = vmatmul.msk.bf16.vlgmr.msra.gmra.mxu1 %vm1288_vm12, %v2540_v62  ;;  %v6350_v62 = vld [vmem:[#allocation10 + $0x10] sm:$0xff]  ;;  %v4921_v14 = vld [vmem:[%s6958_s7 + $0x38] sm:$0xff] }
 0x88f   :  { %2920 = vmatpush.bf16.msra.mxu2 %v4921_v14 }
 0x893   :  { %v2527_v1 = vpop.f32.mrf.mxu2  ;;  %v2556_v30 = vpop.f32.mrf.mxu3 }
 0x89b   :  { %v2529_v60 = vpop.f32.mrf.mxu2  ;;  %v2558_v34 = vpop.f32.mrf.mxu3 }
 0x89c   :  { %v2541_v27 = vpack.c.bf16 %v2529_v60, %v2527_v1  ;;  %v2571_v63 = vpack.c.bf16 %v2558_v34, %v2556_v30  ;;  %v4920_v1 = vld [vmem:[%s6958_s7 + $0x30] sm:$0xff]  ;;  %v4926_v60 = vld [vmem:[%s6958_s7 + $0x58] sm:$0xff]  ;;  %v4919_v34 = vld [vmem:[%s6958_s7 + $0x28] sm:$0xff] }
 0x89d   :  { %v4915_v30 = vld [vmem:[%s6958_s7 + $0x10] sm:$0xff]  ;;  %2921 = vmatpush.bf16.msra.mxu2 %v4920_v1 }
 0x89e   :  { %4452 = vmatmul.msk.bf16.gmra.mxu0 %vm1288_vm12, %v2571_v63  ;;  %4470 = vmatmul.msk.bf16.gmra.mxu1 %vm1288_vm12, %v2541_v27  ;;  %v4914_v27 = vld [vmem:[%s6958_s7 + $0x8] sm:$0xff]  ;;  %v4918_v63 = vld [vmem:[%s6958_s7 + $0x20] sm:$0xff] }
 0x89f   :  { %2962 = vmatpush.bf16.msrb.mxu3 %v4915_v30 }
 0x8a1   :  { %2922 = vmatpush.bf16.msra.mxu2 %v4919_v34 }
 0x8a3   :  { %v2679_v49 = vpop.f32.mrf.mxu2  ;;  %2963 = vmatpush.bf16.msrb.mxu3 %v4914_v27  ;;  %v6557_v27 = vld [vmem:[#allocation12] sm:$0xff] }
 0x8a5   :  { %2923 = vmatpush.bf16.msra.mxu2 %v4918_v63 }
 0x8ab   :  { %v2681_v8 = vpop.f32.mrf.mxu2 }
 0x8ac   :  { %v2698_v32 = vpack.c.bf16 %v2681_v8, %v2679_v49  ;;  %v4913_v49 = vld [vmem:[%s6958_s7] sm:$0xff]  ;;  %v4925_v8 = vld [vmem:[%s6958_s7 + $0x50] sm:$0xff] }
 0x8ad   :  { %2964 = vmatpush.bf16.msrb.mxu3 %v4913_v49  ;;  %v5190_v49 = vmov 32.0  }
 0x8ae   :  { %4497 = vmatmul.msk.bf16.vlgmr.msra.gmra.mxu3 %vm1288_vm12, %v2698_v32  ;;  %v4924_v32 = vld [vmem:[%s6958_s7 + $0x48] sm:$0xff]  ;;  %4995 = vrcp.f32 %v5190_v49 }
 0x8b3   :  { %v2684_v22 = vpop.f32.mrf.mxu2 }
 0x8bb   :  { %v2686_v24 = vpop.f32.mrf.mxu2 }
 0x8bc   :  { %v2699_v42 = vpack.c.bf16 %v2686_v24, %v2684_v22  ;;  %v4923_v22 = vld [vmem:[%s6958_s7 + $0x40] sm:$0xff]  ;;  %v6393_v24 = vld [vmem:[%s6786_s22 + $0x78] sm:$0xff]  ;;  %s6967_s7 = sld [smem:[#allocation51_spill]] }
 0x8bd   :  { %3110 = vmatpush.msrb.mxu2 %v6393_v24 }
 0x8be   :  { %4498 = vmatmul.msk.bf16.gmra.mxu3 %vm1288_vm12, %v2699_v42 }
 0x90b   :  { %v2611_v18 = vpop.f32.mrf.mxu0  ;;  %v2660_v50 = vpop.f32.mrf.mxu1 }
 0x90c   :  { %v2661_v19 = vadd.f32 %v2660_v50, %v2611_v18 }
 0x913   :  { %v2613_v52 = vpop.f32.mrf.mxu0  ;;  %v2662_v47 = vpop.f32.mrf.mxu1 }
 0x914   :  { %v2663_v37 = vadd.f32 %v2662_v47, %v2613_v52 }
 0x91b   :  { %v2616_v0 = vpop.f32.mrf.mxu0  ;;  %v2665_v23 = vpop.f32.mrf.mxu1 }
 0x91c   :  { %v2666_v54 = vadd.f32 %v2665_v23, %v2616_v0 }
 0x923   :  { %v2618_v41 = vpop.f32.mrf.mxu0  ;;  %v2667_v57 = vpop.f32.mrf.mxu1 }
 0x924   :  { %v2668_v33 = vadd.f32 %v2667_v57, %v2618_v41  ;;  %v6429_v41 = vld [vmem:[%s6786_s22 + $0x50] sm:$0xff]  ;;  %v6438_v57 = vld [vmem:[%s6786_s22 + $0x48] sm:$0xff] }
 0x931   :  { %v2739_v4 = vpop.f32.mrf.mxu3 }
 0x932   :  { %v2749_v7 = vadd.f32 %v2739_v4, %v2661_v19  ;;  %v6443_v19 = vld [vmem:[%s6786_s22 + $0x40] sm:$0xff] }
 0x934   :  { %v2754_v26 = vadd.f32 %v4993_v13, %v2749_v7 }
 0x936   :  { %v2758_v43 = vmax.f32 %v2754_v26, 0.0  ;;  %v6471_v26 = vld [vmem:[#allocation12 + $0x8] sm:$0xff] }
 0x938   :  { %v2762_v35 = vmul.f32 %v6275_v46, %v2758_v43  ;;  %v6344_v46 = vld [vmem:[#allocation10 + $0x8] sm:$0xff] }
 0x939   :  { %v2741_v28 = vpop.f32.mrf.mxu3 }
 0x93a   :  { %v2750_v51 = vadd.f32 %v2741_v28, %v2663_v37  ;;  %v6415_v37 = vld [vmem:[%s6786_s22 + $0x60] sm:$0xff] }
 0x93c   :  { %v2755_v16 = vadd.f32 %v4993_v13, %v2750_v51 }
 0x93e   :  { %v2759_v40 = vmax.f32 %v2755_v16, 0.0  ;;  %v3053_v16 = vand.u32 7, %v6900_v36  ;;  %v6481_v36 = vld [vmem:[%s6786_s22 + $0x20] sm:$0xff] }
 0x940   :  { %v2763_v31 = vmul.f32 %v6270_v17, %v2759_v40  ;;  %vm6491_vm10 = vcmp.le.s32.totalorder %v3053_v16, 4 }
 0x941   :  { %v2744_v39 = vpop.f32.mrf.mxu3 }
 0x942   :  { %v2751_v29 = vadd.f32 %v2744_v39, %v2666_v54  ;;  %v2766_v38 = vpack.c.bf16 %v2763_v31, %v2762_v35  ;;  %v6403_v39 = vld [vmem:[%s6786_s22 + $0x70] sm:$0xff]  ;;  %v6410_v54 = vld [vmem:[%s6786_s22 + $0x68] sm:$0xff] }
 0x943   :  { %3111 = vmatpush.msrb.mxu2 %v6403_v39 }
 0x944   :  { %v2756_v15 = vadd.f32 %v4993_v13, %v2751_v29  ;;  %v6422_v29 = vld [vmem:[%s6786_s22 + $0x58] sm:$0xff] }
 0x945   :  { %3112 = vmatpush.msrb.mxu2 %v6410_v54 }
 0x946   :  { %v2760_v5 = vmax.f32 %v2756_v15, 0.0  ;;  %v6459_v15 = vld [vmem:[#allocation12 + $0x18] sm:$0xff] }
 0x947   :  { %3113 = vmatpush.msrb.mxu2 %v6415_v37  ;;  %3149 = vmatpush.msra.mxu3 %v6459_v15 }
 0x948   :  { %v2764_v45 = vmul.f32 %v6264_v48, %v2760_v5  ;;  %v3060_v5 = vand.u32 7, %v6914_v6 }
 0x949   :  { %v2746_v11 = vpop.f32.mrf.mxu3  ;;  %3114 = vmatpush.msrb.mxu2 %v6422_v29 }
 0x94a   :  { %v2752_v3 = vadd.f32 %v2746_v11, %v2668_v33  ;;  %v6457_v33 = vld [vmem:[%s6786_s22 + $0x30] sm:$0xff]  ;;  %v6461_v11 = vld [vmem:[#allocation12 + $0x10] sm:$0xff]  ;;  %vm6502_vm0 = vcmp.ge.s32.totalorder %v3060_v5, 1  ;;  %vm6506_vm4 = vcmp.le.s32.totalorder %v3060_v5, 4 }
 0x94b   :  { %3115 = vmatpush.msrb.mxu2 %v6429_v41  ;;  %3150 = vmatpush.msra.mxu3 %v6461_v11  ;;  %vm3078_vm13 = vmand %vm6502_vm0, %vm6506_vm4 }
 0x94c   :  { %v2757_v10 = vadd.f32 %v4993_v13, %v2752_v3  ;;  %v6450_v13 = vld [vmem:[%s6786_s22 + $0x38] sm:$0xff]  ;;  %v6469_v3 = vld [vmem:[%s6786_s22 + $0x28] sm:$0xff] }
 0x94d   :  { %3116 = vmatpush.msrb.mxu2 %v6438_v57  ;;  %3151 = vmatpush.msra.mxu3 %v6471_v26 }
 0x94e   :  { %v2761_v20 = vmax.f32 %v2757_v10, 0.0 }
 0x94f   :  { %3117 = vmatpush.msrb.mxu2 %v6443_v19  ;;  %3152 = vmatpush.msra.mxu3 %v6557_v27 }
 0x950   :  { %v2765_v2 = vmul.f32 %v6267_v59, %v2761_v20  ;;  %v6498_v20 = vld [vmem:[%s6786_s22 + $0x18] sm:$0xff] }
 0x951   :  { %3118 = vmatpush.msrb.mxu2 %v6450_v13 }
 0x952   :  { %v2767_v61 = vpack.c.bf16 %v2765_v2, %v2764_v45  ;;  %v6514_v2 = vld [vmem:[%s6786_s22 + $0x10] sm:$0xff] }
 0x953   :  { %3119 = vmatpush.msrb.mxu2 %v6457_v33 }
 0x954   :  { %2784 = vmatpush.bf16.msra.mxu0 %v2767_v61  ;;  %2809 = vmatpush.bf16.msrb.mxu1 %v2767_v61 }
 0x955   :  { %3120 = vmatpush.msrb.mxu2 %v6469_v3 }
 0x957   :  { %3121 = vmatpush.msrb.mxu2 %v6481_v36 }
 0x958   :  { %2785 = vmatpush.bf16.msra.mxu0 %v2766_v38  ;;  %2810 = vmatpush.bf16.msrb.mxu1 %v2766_v38  ;;  %v6529_v38 = vld [vmem:[%s6786_s22 + $0x8] sm:$0xff] }
 0x959   :  { %3122 = vmatpush.msrb.mxu2 %v6498_v20 }
 0x95b   :  { %4503 = vmatmul.msk.bf16.vlgmr.msra.gmra.mxu0 %vm1525_vm9, %v4910_v12  ;;  %4508 = vmatmul.msk.bf16.vlgmr.msrb.gmra.mxu1 %vm1525_vm9, %v4911_v53 }
 0x95c   :  { %3123 = vmatpush.msrb.mxu2 %v6514_v2 }
 0x95e   :  { %3124 = vmatpush.msrb.mxu2 %v6529_v38 }
 0x9d8   :  { %v2787_v21 = vpop.f32.mrf.mxu0  ;;  %v2812_v48 = vpop.f32.mrf.mxu1 }
 0x9d9   :  { %v2817_v56 = vmax.f32 %v2787_v21, %v2812_v48  ;;  %v6536_v21 = vld [vmem:[%s6786_s22] sm:$0xff] }
 0x9da   :  { %3125 = vmatpush.msrb.mxu2 %v6536_v21 }
 0x9e0   :  { %v2789_v9 = vpop.f32.mrf.mxu0  ;;  %v2814_v59 = vpop.f32.mrf.mxu1 }
 0x9e1   :  { %v2818_v17 = vmax.f32 %v2789_v9, %v2814_v59  ;;  %v6543_v59 = vsel %vm3078_vm13, 1.0, %v5189_v25 }
 0x9e3   :  { %v2819_v44 = vpack.c.bf16 %v2818_v17, %v2817_v56 }
 0x9e5   :  { %2838 = vmatpush.bf16.msrb.mxu0 %v2819_v44  ;;  %2872 = vmatpush.bf16.msra.mxu1 %v2819_v44 }
 0x9e8   :  { %4513 = vmatmul.msk.bf16.vlgmr.msrb.gmra.mxu0 %vm2827_vm1, %v6342_v58  ;;  %4518 = vmatmul.msk.bf16.vlgmr.msra.gmra.mxu1 %vm2827_vm1, %v6344_v46 }
 0x9e9   :  { %2989 = vmatpush.bf16.msra.mxu0 %v2819_v44  ;;  %3037 = vmatpush.bf16.msrb.mxu1 %v4926_v60 }
 0x9ed   :  { %3038 = vmatpush.bf16.msrb.mxu1 %v4925_v8  ;;  %3179 = vmatpush.msrb.mxu0 %v6393_v24  ;;  %v4996_v8 = vpop.eup %4995 }
 0x9ee   :  { %vm3162_vm3 = vweird.f32 %v4996_v8 }
 0x9ef   :  { %3180 = vmatpush.msrb.mxu0 %v6403_v39 }
 0x9f1   :  { %3039 = vmatpush.bf16.msrb.mxu1 %v4924_v32  ;;  %3181 = vmatpush.msrb.mxu0 %v6410_v54  ;;  %v3158_v32 = vmul.f32 32.0, %v4996_v8 }
 0x9f3   :  { %3182 = vmatpush.msrb.mxu0 %v6415_v37 }
 0x9f5   :  { %3040 = vmatpush.bf16.msrb.mxu1 %v4923_v22  ;;  %3183 = vmatpush.msrb.mxu0 %v6422_v29  ;;  %v3159_v22 = vsub.f32 1.0, %v3158_v32  ;;  %v4948_v32 = vld [vmem:[%s6967_s7 + $0xa8] sm:$0xff] }
 0x9f7   :  { %3184 = vmatpush.msrb.mxu0 %v6429_v41 }
 0x9f8   :  { %4565 = vmatmul.msk.bf16.vlgmr.msra.gmra.mxu0 %vm2827_vm1, %v6350_v62 }
 0x9f9   :  { %3185 = vmatpush.msrb.mxu0 %v6438_v57  ;;  %3214 = vmatpush.msra.mxu1 %v6459_v15 }
 0x9fb   :  { %3186 = vmatpush.msrb.mxu0 %v6443_v19  ;;  %3215 = vmatpush.msra.mxu1 %v6461_v11 }
 0x9fd   :  { %3187 = vmatpush.msrb.mxu0 %v6450_v13  ;;  %3216 = vmatpush.msra.mxu1 %v6471_v26 }
 0x9ff   :  { %3188 = vmatpush.msrb.mxu0 %v6457_v33  ;;  %3217 = vmatpush.msra.mxu1 %v6557_v27 }
 0xa01   :  { %3189 = vmatpush.msrb.mxu0 %v6469_v3 }
 0xa03   :  { %3190 = vmatpush.msrb.mxu0 %v6481_v36 }
 0xa05   :  { %3191 = vmatpush.msrb.mxu0 %v6498_v20 }
 0xa07   :  { %3192 = vmatpush.msrb.mxu0 %v6514_v2 }
 0xa09   :  { %3193 = vmatpush.msrb.mxu0 %v6529_v38 }
 0xa0b   :  { %3194 = vmatpush.msrb.mxu0 %v6536_v21 }
 0xa65   :  { %v2840_v42 = vpop.f32.mrf.mxu0  ;;  %v2874_v18 = vpop.f32.mrf.mxu1 }
 0xa6d   :  { %v2842_v50 = vpop.f32.mrf.mxu0  ;;  %v2876_v52 = vpop.f32.mrf.mxu1 }
 0xa6e   :  { %v2853_v47 = vpack.c.bf16 %v2842_v50, %v2840_v42  ;;  %v2888_v4 = vpack.c.bf16 %v2876_v52, %v2874_v18  ;;  %v3160_v42 = vmul.f32 %v4996_v8, %v3159_v22 }
 0xa70   :  { %4543 = vmatmul.msk.bf16.vlgmr.msra.gmra.mxu2 %vm1288_vm12, %v2888_v4  ;;  %4560 = vmatmul.msk.bf16.vlgmr.msrb.gmra.mxu3 %vm1288_vm12, %v2853_v47  ;;  %v3161_v18 = vadd.f32 %v4996_v8, %v3160_v42 }
 0xa72   :  { %v6562_v50 = vsel %vm3162_vm3, %v4996_v8, %v3161_v18  ;;  %v3084_v8 = vld [vmem:[#allocation4 + $0x1] sm:$0x1] }
 0xa75   :  { %v2991_v28 = vpop.f32.mrf.mxu0 }
 0xa7d   :  { %v2993_v0 = vpop.f32.mrf.mxu0 }
 0xa7e   :  { %v3005_v23 = vpack.c.bf16 %v2993_v0, %v2991_v28 }
 0xa80   :  { %4590 = vmatmul.msk.bf16.vlgmr.msrb.gmra.mxu1 %vm1288_vm12, %v3005_v23  ;;  %vm6487_vm12 = vcmp.ge.s32.totalorder %v3053_v16, 1 }
 0xa81   :  { %vm3077_vm11 = vmand %vm6487_vm12, %vm6491_vm10 }
 0xa82   :  { %v6540_v48 = vsel %vm3077_vm11, 1.0, %v5189_v25 }
 0xaf3   :  { %v2925_v51 = vpop.f32.mrf.mxu2  ;;  %v2966_v7 = vpop.f32.mrf.mxu3 }
 0xaf4   :  { %v2967_v35 = vadd.f32 %v2966_v7, %v2925_v51 }
 0xafb   :  { %v2927_v31 = vpop.f32.mrf.mxu2  ;;  %v2968_v61 = vpop.f32.mrf.mxu3 }
 0xafc   :  { %v2969_v53 = vadd.f32 %v2968_v61, %v2927_v31 }
 0xafd   :  { %v3042_v10 = vpop.f32.mrf.mxu1 }
 0xafe   :  { %v3047_v12 = vadd.f32 %v3042_v10, %v2967_v35 }
 0xb00   :  { %v6549_v17 = vmul.f32 %v6540_v48, %v3047_v12 }
 0xb05   :  { %v3044_v9 = vpop.f32.mrf.mxu1 }
 0xb06   :  { %v3048_v56 = vadd.f32 %v3044_v9, %v2969_v53 }
 0xb08   :  { %v6552_v44 = vmul.f32 %v6543_v59, %v3048_v56 }
 0xb0a   :  { %v3087_v14 = vadd.f32 %v6552_v44, %v6549_v17 }
 0xb0c   :  { %v3088_v25 = vrot.slane %v3087_v14, 4 }
 0xb0e   :  { %v3089_v55 = vadd.f32 %v3088_v25, %v3087_v14 }
 0xb10   :  { %v3090_v1 = vrot.slane %v3089_v55, 2 }
 0xb12   :  { %v3091_v30 = vadd.f32 %v3090_v1, %v3089_v55  ;;  %v4950_v55 = vld [vmem:[%s6967_s7 + $0xb8] sm:$0xff] }
 0xb13   :  { %3515 = vmatpush.bf16.msra.mxu0 %v4950_v55  ;;  %v4927_v55 = vld [vmem:[%s6967_s7] sm:$0xff] }
 0xb14   :  { %v3092_v60 = vrot.slane %v3091_v30, 1 }
 0xb16   :  { %v3093_v34 = vadd.f32 %v3092_v60, %v3091_v30  ;;  %v3083_v30 = vld [vmem:[#allocation4] sm:$0x1] }
 0xb18   :  { %3126 = vmatmul.f32.vlgmr.msrb.gmra.mxu2 %v3093_v34  ;;  %v4949_v34 = vld [vmem:[%s6967_s7 + $0xb0] sm:$0xff] }
 0xb19   :  { %3516 = vmatpush.bf16.msra.mxu0 %v4949_v34 }
 0xb1d   :  { %3517 = vmatpush.bf16.msra.mxu0 %v4948_v32 }
 0xb9b   :  { %v3127_v63 = vpop.f32.mrf.mxu2 }
 0xb9c   :  { %4593 = vmatmul.msk.f32.vlgmr.msra.gmra.mxu3 %vm1525_vm9, %v3127_v63 }
 0xc1f   :  { %v3154_v52 = vpop.f32.mrf.mxu3 }
 0xc20   :  { %v3164_v47 = vmul.f32 %v6562_v50, %v3154_v52 }
 0xc22   :  { %v3165_v4 = vperm.slane %v3164_v47, 0 }
 0xc24   :  { %v3166_v28 = vsub.f32 %v6549_v17, %v3165_v4  ;;  %v3167_v0 = vsub.f32 %v6552_v44, %v3165_v4 }
 0xc26   :  { %v3168_v23 = vmul.f32 %v6540_v48, %v3166_v28  ;;  %v3169_v51 = vmul.f32 %v6543_v59, %v3167_v0 }
 0xc28   :  { %v3170_v7 = vmul.f32 %v3168_v23, %v3168_v23  ;;  %v3171_v16 = vmul.f32 %v3169_v51, %v3169_v51 }
 0xc2a   :  { %v3172_v5 = vadd.f32 %v3171_v16, %v3170_v7 }
 0xc2c   :  { %v3173_v10 = vrot.slane %v3172_v5, 4 }
 0xc2e   :  { %v3174_v6 = vadd.f32 %v3173_v10, %v3172_v5 }
 0xc30   :  { %v3175_v40 = vrot.slane %v3174_v6, 2 }
 0xc32   :  { %v3176_v43 = vadd.f32 %v3175_v40, %v3174_v6  ;;  %v4933_v6 = vld [vmem:[%s6967_s7 + $0x30] sm:$0xff]  ;;  %v4940_v40 = vld [vmem:[%s6967_s7 + $0x68] sm:$0xff] }
 0xc34   :  { %v3177_v45 = vrot.slane %v3176_v43, 1 }
 0xc36   :  { %v3178_v31 = vadd.f32 %v3177_v45, %v3176_v43  ;;  %v4932_v43 = vld [vmem:[%s6967_s7 + $0x28] sm:$0xff]  ;;  %v4937_v45 = vld [vmem:[%s6967_s7 + $0x50] sm:$0xff] }
 0xc38   :  { %3195 = vmatmul.f32.vlgmr.msrb.gmra.mxu0 %v3178_v31  ;;  %v4947_v31 = vld [vmem:[%s6967_s7 + $0xa0] sm:$0xff] }
 0xc39   :  { %3518 = vmatpush.bf16.msra.mxu0 %v4947_v31 }
 0xcb5   :  { %v3196_v61 = vpop.f32.mrf.mxu0 }
 0xcb6   :  { %4594 = vmatmul.msk.f32.vlgmr.msra.gmra.mxu1 %vm1525_vm9, %v3196_v61  ;;  %v4930_v61 = vld [vmem:[%s6967_s7 + $0x18] sm:$0xff] }
 0xd33   :  { %v3219_v35 = vpop.f32.mrf.mxu1 }
 0xd34   :  { %v3222_v12 = vmul.f32 %v3219_v35, %v6562_v50  ;;  %v4936_v35 = vld [vmem:[%s6967_s7 + $0x48] sm:$0xff] }
 0xd36   :  { %v3223_v53 = vadd.f32 1e-05, %v3222_v12  ;;  %v4946_v12 = vld [vmem:[%s6967_s7 + $0x98] sm:$0xff] }
 0xd37   :  { %3519 = vmatpush.bf16.msra.mxu0 %v4946_v12 }
 0xd38   :  { %4997 = vrsqrt.f32 %v3223_v53  ;;  %vm3230_vm15 = vweird.f32 %v3223_v53 }
 0xd3e   :  { %v4998_v9 = vpop.eup %4997 }
 0xd3f   :  { %v3225_v56 = vmul.f32 %v4998_v9, %v3223_v53  ;;  %vm3231_vm14 = vweird.f32 %v4998_v9  ;;  %v4929_v53 = vld [vmem:[%s6967_s7 + $0x10] sm:$0xff] }
 0xd40   :  { %vm3232_vm2 = vmor %vm3230_vm15, %vm3231_vm14 }
 0xd41   :  { %v3226_v14 = vmul.f32 %v4998_v9, %v3225_v56  ;;  %v4945_v56 = vld [vmem:[%s6967_s7 + $0x90] sm:$0xff] }
 0xd42   :  { %3520 = vmatpush.bf16.msra.mxu0 %v4945_v56 }
 0xd43   :  { %v3227_v25 = vmul.f32 0.5, %v3226_v14  ;;  %v4928_v14 = vld [vmem:[%s6967_s7 + $0x8] sm:$0xff] }
 0xd45   :  { %v3228_v1 = vsub.f32 1.5, %v3227_v25  ;;  %v4944_v25 = vld [vmem:[%s6967_s7 + $0x88] sm:$0xff] }
 0xd46   :  { %3521 = vmatpush.bf16.msra.mxu0 %v4944_v25  ;;  %v3532_v25 = vld [vmem:[#allocation4 + $0x3] sm:$0x1] }
 0xd47   :  { %v3229_v60 = vmul.f32 %v4998_v9, %v3228_v1  ;;  %v4943_v1 = vld [vmem:[%s6967_s7 + $0x80] sm:$0xff] }
 0xd49   :  { %v3233_v63 = vsel %vm3232_vm2, %v4998_v9, %v3229_v60  ;;  %v4935_v9 = vld [vmem:[%s6967_s7 + $0x40] sm:$0xff] }
 0xd4a   :  { %v3234_v49 = vmul.f32 %v3233_v63, %v3083_v30  ;;  %3522 = vmatpush.bf16.msra.mxu0 %v4943_v1 }
 0xd4c   :  { %v3235_v22 = vmul.f32 %v3234_v49, %v3164_v47  ;;  %v3237_v42 = vperm.slane %v3234_v49, 0  ;;  %v4942_v47 = vld [vmem:[%s6967_s7 + $0x78] sm:$0xff] }
 0xd4e   :  { %v3236_v18 = vsub.f32 %v3084_v8, %v3235_v22  ;;  %v3238_v52 = vmul.f32 %v3237_v42, %v6549_v17  ;;  %v3239_v4 = vmul.f32 %v3237_v42, %v6552_v44  ;;  %v4934_v17 = vld [vmem:[%s6967_s7 + $0x38] sm:$0xff]  ;;  %v4941_v44 = vld [vmem:[%s6967_s7 + $0x70] sm:$0xff] }
 0xd50   :  { %v3240_v28 = vperm.slane %v3236_v18, 0 }
 0xd52   :  { %v3241_v0 = vadd.f32 %v3240_v28, %v3238_v52  ;;  %v3242_v23 = vadd.f32 %v3240_v28, %v3239_v4 }
 0xd54   :  { %v3243_v51 = vmax.f32 %v3241_v0, 0.0  ;;  %v3244_v7 = vmax.f32 %v3242_v23, 0.0 }
 0xd56   :  { %v3245_v16 = vmul.f32 %v6540_v48, %v3243_v51  ;;  %v3246_v5 = vmul.f32 %v6543_v59, %v3244_v7 }
 0xd58   :  { %v3247_v10 = vpack.c.bf16 %v3246_v5, %v3245_v16 }
 0xd5a   :  { %3255 = vmatpush.bf16.msrb.mxu3 %v3247_v10  ;;  %3286 = vmatpush.bf16.msrb.mxu1 %v3247_v10 }
 0xd5b   :  { %3442 = vmatpush.bf16.msra.mxu2 %v3247_v10 }
 0xd5d   :  { %4595 = vmatmul.msk.bf16.vlgmr.msrb.gmra.mxu3 %vm2827_vm1, %v6342_v58  ;;  %4596 = vmatmul.msk.bf16.vlgmr.msrb.gmra.mxu1 %vm2827_vm1, %v6344_v46  ;;  %v4939_v58 = vld [vmem:[%s6967_s7 + $0x60] sm:$0xff] }
 0xd5e   :  { %3359 = vmatpush.bf16.msra.mxu3 %v4942_v47  ;;  %3421 = vmatpush.bf16.msra.mxu1 %v4934_v17  ;;  %v4931_v46 = vld [vmem:[%s6967_s7 + $0x20] sm:$0xff] }
 0xd5f   :  { %3542 = vmatpush.msrb.mxu2 %v6393_v24 }
 0xd60   :  { %4677 = vmatmul.msk.bf16.vlgmr.msra.gmra.mxu2 %vm2827_vm1, %v6350_v62  ;;  %v4938_v62 = vld [vmem:[%s6967_s7 + $0x58] sm:$0xff] }
 0xd61   :  { %3543 = vmatpush.msrb.mxu2 %v6403_v39 }
 0xd62   :  { %3360 = vmatpush.bf16.msra.mxu3 %v4941_v44  ;;  %3422 = vmatpush.bf16.msra.mxu1 %v4933_v6 }
 0xd63   :  { %3544 = vmatpush.msrb.mxu2 %v6410_v54 }
 0xd65   :  { %3545 = vmatpush.msrb.mxu2 %v6415_v37 }
 0xd66   :  { %3361 = vmatpush.bf16.msra.mxu3 %v4940_v40  ;;  %3423 = vmatpush.bf16.msra.mxu1 %v4932_v43 }
 0xd67   :  { %3546 = vmatpush.msrb.mxu2 %v6422_v29 }
 0xd69   :  { %3547 = vmatpush.msrb.mxu2 %v6429_v41 }
 0xd6a   :  { %3362 = vmatpush.bf16.msra.mxu3 %v4939_v58  ;;  %3424 = vmatpush.bf16.msra.mxu1 %v4931_v46 }
 0xd6b   :  { %3548 = vmatpush.msrb.mxu2 %v6438_v57 }
 0xd6d   :  { %3549 = vmatpush.msrb.mxu2 %v6443_v19 }
 0xd6e   :  { %3363 = vmatpush.bf16.msra.mxu3 %v4938_v62  ;;  %3425 = vmatpush.bf16.msra.mxu1 %v4930_v61 }
 0xd6f   :  { %3550 = vmatpush.msrb.mxu2 %v6450_v13 }
 0xd71   :  { %3551 = vmatpush.msrb.mxu2 %v6457_v33 }
 0xd72   :  { %3364 = vmatpush.bf16.msra.mxu3 %v4937_v45  ;;  %3426 = vmatpush.bf16.msra.mxu1 %v4929_v53  ;;  %v3531_v53 = vld [vmem:[#allocation4 + $0x2] sm:$0x1] }
 0xd73   :  { %3552 = vmatpush.msrb.mxu2 %v6469_v3 }
 0xd75   :  { %3553 = vmatpush.msrb.mxu2 %v6481_v36 }
 0xd76   :  { %3365 = vmatpush.bf16.msra.mxu3 %v4936_v35  ;;  %3427 = vmatpush.bf16.msra.mxu1 %v4928_v14 }
 0xd77   :  { %3554 = vmatpush.msrb.mxu2 %v6498_v20 }
 0xd79   :  { %3555 = vmatpush.msrb.mxu2 %v6514_v2 }
 0xd7a   :  { %3366 = vmatpush.bf16.msra.mxu3 %v4935_v9  ;;  %3428 = vmatpush.bf16.msra.mxu1 %v4927_v55 }
 0xd7b   :  { %3556 = vmatpush.msrb.mxu2 %v6529_v38 }
 0xd7d   :  { %3557 = vmatpush.msrb.mxu2 %v6536_v21 }
 0xd7e   :  { %3577 = vmatpush.msrb.mxu3 %v6459_v15  ;;  %3600 = vmatpush.msrb.mxu1 %v6393_v24 }
 0xd7f   :  { %3635 = vmatpush.msra.mxu2 %v6459_v15 }
 0xd80   :  { %3578 = vmatpush.msrb.mxu3 %v6461_v11  ;;  %3601 = vmatpush.msrb.mxu1 %v6403_v39 }
 0xd81   :  { %3636 = vmatpush.msra.mxu2 %v6461_v11 }
 0xd82   :  { %3579 = vmatpush.msrb.mxu3 %v6471_v26  ;;  %3602 = vmatpush.msrb.mxu1 %v6410_v54 }
 0xd83   :  { %3637 = vmatpush.msra.mxu2 %v6471_v26 }
 0xd84   :  { %3580 = vmatpush.msrb.mxu3 %v6557_v27  ;;  %3603 = vmatpush.msrb.mxu1 %v6415_v37 }
 0xd85   :  { %3638 = vmatpush.msra.mxu2 %v6557_v27 }
 0xd86   :  { %3604 = vmatpush.msrb.mxu1 %v6422_v29 }
 0xd88   :  { %3605 = vmatpush.msrb.mxu1 %v6429_v41 }
 0xd8a   :  { %3606 = vmatpush.msrb.mxu1 %v6438_v57 }
 0xd8c   :  { %3607 = vmatpush.msrb.mxu1 %v6443_v19 }
 0xd8e   :  { %3608 = vmatpush.msrb.mxu1 %v6450_v13 }
 0xd90   :  { %3609 = vmatpush.msrb.mxu1 %v6457_v33 }
 0xd92   :  { %3610 = vmatpush.msrb.mxu1 %v6469_v3 }
 0xd94   :  { %3611 = vmatpush.msrb.mxu1 %v6481_v36 }
 0xd96   :  { %3612 = vmatpush.msrb.mxu1 %v6498_v20 }
 0xd98   :  { %3613 = vmatpush.msrb.mxu1 %v6514_v2 }
 0xd9a   :  { %3614 = vmatpush.msrb.mxu1 %v6529_v38 }
 0xd9c   :  { %3615 = vmatpush.msrb.mxu1 %v6536_v21 }
 0xdda   :  { %v3288_v15 = vpop.f32.mrf.mxu1 }
 0xde0   :  { %v3257_v24 = vpop.f32.mrf.mxu3 }
 0xde2   :  { %v3290_v54 = vpop.f32.mrf.mxu1 }
 0xde3   :  { %v3444_v39 = vpop.f32.mrf.mxu2  ;;  %v3310_v37 = vpack.c.bf16 %v3290_v54, %v3288_v15 }
 0xde5   :  { %3367 = vmatmul.bf16.vlgmr.msra.gmra.mxu3 %v3310_v37 }
 0xde8   :  { %v3259_v29 = vpop.f32.mrf.mxu3 }
 0xde9   :  { %v3278_v41 = vpack.c.bf16 %v3259_v29, %v3257_v24 }
 0xdeb   :  { %v3446_v57 = vpop.f32.mrf.mxu2  ;;  %3429 = vmatmul.bf16.vlgmr.msra.gmra.mxu1 %v3278_v41 }
 0xdec   :  { %v3466_v19 = vpack.c.bf16 %v3446_v57, %v3444_v39 }
 0xdee   :  { %3523 = vmatmul.bf16.vlgmr.msra.gmra.mxu0 %v3466_v19 }
 0xe68   :  { %v3368_v13 = vpop.f32.mrf.mxu3  ;;  %v3430_v33 = vpop.f32.mrf.mxu1 }
 0xe69   :  { %v3431_v3 = vadd.f32 %v3430_v33, %v3368_v13  ;;  %v4951_v33 = vld [vmem:[#allocation7] sm:$0xff] }
 0xe6b   :  { %v3524_v11 = vpop.f32.mrf.mxu0 }
 0xe6c   :  { %v3529_v20 = vadd.f32 %v3524_v11, %v3431_v3  ;;  %v4952_v11 = vld [vmem:[#allocation7 + $0x8] sm:$0xff] }
 0xe6d   :  { %v4968_v3 = vld [vmem:[%s6968_s2 + $0x78] sm:$0xff] }
 0xe6e   :  { %v3533_v60 = vmul.f32 %v6540_v48, %v3529_v20 }
 0xe70   :  { %v3370_v26 = vpop.f32.mrf.mxu3  ;;  %v3432_v36 = vpop.f32.mrf.mxu1 }
 0xe71   :  { %v3433_v27 = vadd.f32 %v3432_v36, %v3370_v26  ;;  %v4965_v36 = vld [vmem:[%s6968_s2 + $0x60] sm:$0xff] }
 0xe73   :  { %v3526_v30 = vpop.f32.mrf.mxu0 }
 0xe74   :  { %v3530_v2 = vadd.f32 %v3526_v30, %v3433_v27  ;;  %v4964_v27 = vld [vmem:[%s6968_s2 + $0x58] sm:$0xff]  ;;  %v4963_v30 = vld [vmem:[%s6968_s2 + $0x50] sm:$0xff] }
 0xe76   :  { %v3534_v38 = vmul.f32 %v6543_v59, %v3530_v2 }
 0xe78   :  { %v3535_v34 = vadd.f32 %v3534_v38, %v3533_v60 }
 0xe7a   :  { %v3536_v63 = vrot.slane %v3535_v34, 4 }
 0xe7c   :  { %v3537_v49 = vadd.f32 %v3536_v63, %v3535_v34  ;;  %v4960_v63 = vld [vmem:[%s6968_s2 + $0x38] sm:$0xff] }
 0xe7e   :  { %v3538_v21 = vrot.slane %v3537_v49, 2 }
 0xe80   :  { %v3539_v8 = vadd.f32 %v3538_v21, %v3537_v49  ;;  %v3721_v21 = vld [vmem:[%s6781_s17] sm:$0x1] }
 0xe82   :  { %v3540_v32 = vrot.slane %v3539_v8, 1 }
 0xe84   :  { %v3541_v22 = vadd.f32 %v3540_v32, %v3539_v8  ;;  %v4739_v8 = vld [vmem:[%s6781_s17 + $0x1] sm:$0x1]  ;;  %v4959_v32 = vld [vmem:[%s6968_s2 + $0x30] sm:$0xff] }
 0xe86   :  { %3558 = vmatmul.f32.vlgmr.msrb.gmra.mxu2 %v3541_v22  ;;  %v4958_v22 = vld [vmem:[%s6968_s2 + $0x28] sm:$0xff] }
 0xf09   :  { %v3559_v42 = vpop.f32.mrf.mxu2 }
 0xf0a   :  { %4726 = vmatmul.msk.f32.vlgmr.msrb.gmra.mxu3 %vm1525_vm9, %v3559_v42  ;;  %v4957_v42 = vld [vmem:[%s6968_s2 + $0x20] sm:$0xff] }
 0xf8d   :  { %v3582_v18 = vpop.f32.mrf.mxu3 }
 0xf8e   :  { %v3585_v52 = vmul.f32 %v3582_v18, %v6562_v50  ;;  %v4956_v18 = vld [vmem:[%s6968_s2 + $0x18] sm:$0xff] }
 0xf90   :  { %v3586_v4 = vperm.slane %v3585_v52, 0 }
 0xf92   :  { %v3587_v28 = vsub.f32 %v3533_v60, %v3586_v4  ;;  %v3588_v0 = vsub.f32 %v3534_v38, %v3586_v4  ;;  %v4954_v4 = vld [vmem:[%s6968_s2 + $0x8] sm:$0xff] }
 0xf94   :  { %v3589_v23 = vmul.f32 %v6540_v48, %v3587_v28  ;;  %v3590_v51 = vmul.f32 %v6543_v59, %v3588_v0  ;;  %v4953_v28 = vld [vmem:[%s6968_s2] sm:$0xff]  ;;  %v4962_v0 = vld [vmem:[%s6968_s2 + $0x48] sm:$0xff] }
 0xf96   :  { %v3591_v7 = vmul.f32 %v3589_v23, %v3589_v23  ;;  %v3592_v16 = vmul.f32 %v3590_v51, %v3590_v51  ;;  %v4961_v23 = vld [vmem:[%s6968_s2 + $0x40] sm:$0xff] }
 0xf98   :  { %v3593_v5 = vadd.f32 %v3592_v16, %v3591_v7 }
 0xf9a   :  { %v3594_v47 = vrot.slane %v3593_v5, 4 }
 0xf9c   :  { %v3595_v10 = vadd.f32 %v3594_v47, %v3593_v5 }
 0xf9e   :  { %v3596_v17 = vrot.slane %v3595_v10, 2 }
 0xfa0   :  { %v3597_v44 = vadd.f32 %v3596_v17, %v3595_v10 }
 0xfa2   :  { %v3598_v6 = vrot.slane %v3597_v44, 1 }
 0xfa4   :  { %v3599_v40 = vadd.f32 %v3598_v6, %v3597_v44  ;;  %v4994_v44 = vld [vmem:[#allocation2] ss:$0 sm:$0xff] }
 0xfa6   :  { %3616 = vmatmul.f32.vlgmr.msrb.gmra.mxu1 %v3599_v40 }
0x1023   :  { %v3617_v43 = vpop.f32.mrf.mxu1 }
0x1024   :  { %4727 = vmatmul.msk.f32.vlgmr.msra.gmra.mxu2 %vm1525_vm9, %v3617_v43  ;;  %vm3919_vm9 = vcmask 779264  }
0x10a7   :  { %v3640_v58 = vpop.f32.mrf.mxu2 }
0x10a8   :  { %v3643_v46 = vmul.f32 %v3640_v58, %v6562_v50 }
0x10aa   :  { %v3644_v62 = vadd.f32 1e-05, %v3643_v46 }
0x10ac   :  { %4999 = vrsqrt.f32 %v3644_v62  ;;  %vm3651_vm6 = vweird.f32 %v3644_v62 }
0x10b2   :  { %v5000_v45 = vpop.eup %4999 }
0x10b3   :  { %v3646_v31 = vmul.f32 %v5000_v45, %v3644_v62  ;;  %vm3652_vm5 = vweird.f32 %v5000_v45 }
0x10b4   :  { %vm3653_vm7 = vmor %vm3651_vm6, %vm3652_vm5 }
0x10b5   :  { %v3647_v61 = vmul.f32 %v5000_v45, %v3646_v31 }
0x10b7   :  { %v3648_v35 = vmul.f32 0.5, %v3647_v61 }
0x10b9   :  { %v3649_v12 = vsub.f32 1.5, %v3648_v35 }
0x10bb   :  { %v3650_v9 = vmul.f32 %v5000_v45, %v3649_v12 }
0x10bd   :  { %v3654_v56 = vsel %vm3653_vm7, %v5000_v45, %v3650_v9 }
0x10be   :  { %v3655_v14 = vmul.f32 %v3654_v56, %v3531_v53 }
0x10c0   :  { %v3656_v55 = vmul.f32 %v3655_v14, %v3585_v52  ;;  %v3658_v1 = vperm.slane %v3655_v14, 0  ;;  %v4955_v52 = vld [vmem:[%s6968_s2 + $0x10] sm:$0xff] }
0x10c2   :  { %v3657_v15 = vsub.f32 %v3532_v25, %v3656_v55  ;;  %v3659_v24 = vmul.f32 %v3658_v1, %v3533_v60  ;;  %v3660_v50 = vmul.f32 %v3658_v1, %v3534_v38 }
0x10c4   :  { %v3661_v39 = vperm.slane %v3657_v15, 0 }
0x10c6   :  { %v3662_v54 = vadd.f32 %v3661_v39, %v3659_v24  ;;  %v3663_v37 = vadd.f32 %v3661_v39, %v3660_v50 }
0x10c8   :  { %v3664_v29 = vmax.f32 %v3662_v54, 0.0  ;;  %v3665_v41 = vmax.f32 %v3663_v37, 0.0 }
0x10ca   :  { %v3666_v57 = vmul.f32 %v6540_v48, %v3664_v29  ;;  %v3667_v19 = vmul.f32 %v6543_v59, %v3665_v41  ;;  %v4967_v48 = vld [vmem:[%s6968_s2 + $0x70] sm:$0xff]  ;;  %v4966_v59 = vld [vmem:[%s6968_s2 + $0x68] sm:$0xff] }
0x10cc   :  { %v3668_v13 = vpack.c.bf16 %v3667_v19, %v3666_v57 }
0x10ce   :  { %3686 = vmatpush.bf16.msra.mxu3 %v3668_v13  ;;  %3711 = vmatpush.bf16.msrb.mxu0 %v3668_v13 }
0x10d1   :  { %4732 = vmatmul.msk.bf16.vlgmr.msra.gmra.mxu3 %vm2827_vm1, %v4951_v33  ;;  %4737 = vmatmul.msk.bf16.vlgmr.msrb.gmra.mxu0 %vm2827_vm1, %v4952_v11 }
0x10d2   :  { %3839 = vmatpush.bf16.msra.mxu0 %v4968_v3 }
0x10d6   :  { %3840 = vmatpush.bf16.msra.mxu0 %v4967_v48 }
0x10da   :  { %3841 = vmatpush.bf16.msra.mxu0 %v4966_v59 }
0x10de   :  { %3842 = vmatpush.bf16.msra.mxu0 %v4965_v36 }
0x10e2   :  { %3843 = vmatpush.bf16.msra.mxu0 %v4964_v27 }
0x10e6   :  { %3844 = vmatpush.bf16.msra.mxu0 %v4963_v30 }
0x10ea   :  { %3845 = vmatpush.bf16.msra.mxu0 %v4962_v0 }
0x10ee   :  { %3846 = vmatpush.bf16.msra.mxu0 %v4961_v23 }
0x114e   :  { %v3713_v26 = vpop.f32.mrf.mxu0 }
0x1154   :  { %v3688_v20 = vpop.f32.mrf.mxu3 }
0x1155   :  { %v3718_v38 = vmax.f32 %v3688_v20, %v3713_v26 }
0x1156   :  { %v3715_v60 = vpop.f32.mrf.mxu0 }
0x115c   :  { %v3690_v2 = vpop.f32.mrf.mxu3 }
0x115d   :  { %v3719_v34 = vmax.f32 %v3690_v2, %v3715_v60 }
0x115f   :  { %v3720_v49 = vpack.c.bf16 %v3719_v34, %v3718_v38 }
0x1161   :  { %3732 = vmatpush.bf16.msrb.mxu2 %v3720_v49  ;;  %3767 = vmatpush.bf16.msrb.mxu3 %v3720_v49 }
0x1164   :  { %4738 = vmatmul.msk.bf16.vlgmr.msrb.gmra.mxu2 %vm2827_vm1, %v3721_v21  ;;  %4740 = vmatmul.msk.bf16.vlgmr.msrb.gmra.mxu3 %vm2827_vm1, %v4739_v8 }
0x1165   :  { %3900 = vmatpush.bf16.msra.mxu2 %v4960_v63 }
0x1169   :  { %3901 = vmatpush.bf16.msra.mxu2 %v4959_v32 }
0x116d   :  { %3902 = vmatpush.bf16.msra.mxu2 %v4958_v22 }
0x1171   :  { %3903 = vmatpush.bf16.msra.mxu2 %v4957_v42 }
0x1175   :  { %3904 = vmatpush.bf16.msra.mxu2 %v4956_v18 }
0x1179   :  { %3905 = vmatpush.bf16.msra.mxu2 %v4955_v52 }
0x117d   :  { %3906 = vmatpush.bf16.msra.mxu2 %v4954_v4 }
0x1181   :  { %3907 = vmatpush.bf16.msra.mxu2 %v4953_v28 }
0x11e7   :  { %v3734_v51 = vpop.f32.mrf.mxu2  ;;  %v3769_v7 = vpop.f32.mrf.mxu3 }
0x11e8   :  { %v3754_v16 = vpack.c.bf16 %v3734_v51, %v3734_v51  ;;  %v3790_v5 = vpack.c.bf16 %v3769_v7, %v3769_v7 }
0x11ea   :  { %3908 = vmatmul.bf16.vlgmr.msra.gmra.mxu2 %v3754_v16  ;;  %3847 = vmatmul.bf16.vlgmr.msra.gmra.mxu0 %v3790_v5 }
0x11ef   :  { %v3736_v47 = vpop.f32.mrf.mxu2  ;;  %v3771_v10 = vpop.f32.mrf.mxu3 }
0x1267   :  { %v3848_v17 = vpop.f32.mrf.mxu0 }
0x126d   :  { %v3909_v6 = vpop.f32.mrf.mxu2 }
0x126e   :  { %v3910_v40 = vadd.f32 %v3909_v6, %v3848_v17 }
0x126f   :  { %v3850_v43 = vpop.f32.mrf.mxu0 }
0x1270   :  { %v3917_v58 = vadd.f32 %v4994_v44, %v3910_v40 }
0x1272   :  { %v3918_v46 = vmax.f32 %v3917_v58, 0.0 }
0x1274   :  { %3920 = vst.msk [vmem:[%s6788_s24] sm:$0x3] %vm3919_vm9, %v3918_v46 }
0x1275   :  { %v3911_v62 = vpop.f32.mrf.mxu2 }
0x1276   :  { %3925 = vsyncpa [#allocation3], 1 }
0x1277   :  { %3926 = vsyncpa [#allocation5], 1 }
0x1278   :  { %3927 = vsyncpa [#allocation8], 1 }
0x1279   :  { %3928 = vsyncpa [#allocation11], 1 }

</bundles_post_ra>
